<compile_context>
chip_gen: v7x
topology: tpu7x:2x2x1
jax: 0.10.0
libtpu: 0.0.40
codegen_flags: <defaults>
</compile_context>

<pallas_src>
import functools

import jax
import jax.numpy as jnp
from jax import lax
from jax.experimental import pallas as pl
from jax.experimental.pallas import tpu as pltpu


# ---------------------------------------------------------------------------
# Fused kernel: qkv projection -> multi-head attention -> output projection
# ---------------------------------------------------------------------------
def _fused_attention_kernel(x_ref, wqkv_ref, bqkv_ref, wproj_ref, bproj_ref,
                            o_ref, q_scr, k_scr, v_scr, oheads_scr,
                            *, num_heads, head_dim):
    # x_ref:      (Bt, N, C)   activations for one batch block
    # wqkv_ref:   (C, 3C)      softmax scale pre-folded into the q columns
    # bqkv_ref:   (1, 3C)
    # wproj_ref:  (C, C)       bproj_ref: (1, C)
    # o_ref:      (Bt, N, C)
    # q/k/v_scr:  (H*Bt, N, hd) bf16 head-major staging scratch
    # oheads_scr: (Bt, N, C)    bf16 head-concat staging scratch
    Bt, N, C = x_ref.shape
    H, hd = num_heads, head_dim

    # --- qkv projection: one full-width MXU matmul over all Bt*N rows (bf16 in, f32 acc)
    x2d = x_ref[...].reshape(Bt * N, C).astype(jnp.bfloat16)
    qkv = jnp.dot(x2d, wqkv_ref[...].astype(jnp.bfloat16),
                  preferred_element_type=jnp.float32)
    qkv = qkv + bqkv_ref[...].astype(jnp.float32)                  # (Bt*N, 3C) f32
    qkv = qkv.reshape(Bt, N, 3 * C)

    # --- stage q/k/v head-major into VMEM scratch (bf16); the attention loop below then
    #     reads aligned (N, hd) ref views instead of re-slicing a big live value.
    for h in range(H):
        lo = h * hd
        q_scr[pl.ds(h * Bt, Bt)] = qkv[:, :, lo:lo + hd].astype(jnp.bfloat16)
        k_scr[pl.ds(h * Bt, Bt)] = qkv[:, :, C + lo:C + lo + hd].astype(jnp.bfloat16)
        v_scr[pl.ds(h * Bt, Bt)] = qkv[:, :, 2 * C + lo:2 * C + lo + hd].astype(jnp.bfloat16)

    # --- per-(head, batch) attention; matmuls bf16 -> f32 acc, softmax math in f32.
    for h in range(H):
        lo = h * hd
        for b in range(Bt):
            idx = h * Bt + b
            q = q_scr[idx]                                         # (N, hd) bf16 (scaled)
            k = k_scr[idx]
            v = v_scr[idx]
            # scores: contract last dims of both operands -> no transposed copy of k.
            s = lax.dot_general(q, k, (((1,), (1,)), ((), ())),
                                preferred_element_type=jnp.float32)  # (N, N) f32
            s = s - jnp.max(s, axis=-1, keepdims=True)
            p = jnp.exp(s)
            # softmax denominator on the EUP (approx reciprocal, off the VALU slots).
            p = p * pl.reciprocal(jnp.sum(p, axis=-1, keepdims=True), approx=True)
            o_h = jnp.dot(p.astype(jnp.bfloat16), v,
                          preferred_element_type=jnp.float32)        # (N, hd) f32
            # concatenate heads by writing into the (Bt, N, C) staging scratch.
            oheads_scr[b, :, lo:lo + hd] = o_h.astype(jnp.bfloat16)

    # --- output projection: ONE (Bt*N, C) @ (C, C) matmul with full contraction depth C.
    o_all = oheads_scr[...].reshape(Bt * N, C)                     # bf16
    out = jnp.dot(o_all, wproj_ref[...].astype(jnp.bfloat16),
                  preferred_element_type=jnp.float32)
    out = out + bproj_ref[...].astype(jnp.float32)
    o_ref[...] = out.reshape(Bt, N, C).astype(o_ref.dtype)         # lane-dense (Bt, N, C)


# ---------------------------------------------------------------------------
# Wrapper: one pallas_call, grid over batch blocks, weights resident in VMEM
# ---------------------------------------------------------------------------
def _pick_block_b(B, N, C, itemsize, max_block_bytes=4 << 20):
    """Largest divisor of B whose (Bt, N, C) x-block fits the per-step budget."""
    bb = 1
    for cand in range(1, B + 1):
        if B % cand == 0 and cand * N * C * itemsize <= max_block_bytes:
            bb = cand
    return bb


def attention_forward(x, params, num_heads, block_b=None):
    B, N, C = x.shape
    assert C % num_heads == 0
    hd = C // num_heads
    scale = hd ** (-0.5)

    if block_b is None:
        block_b = _pick_block_b(B, N, C, x.dtype.itemsize)
    assert B % block_b == 0
    Bt = block_b
    num_steps = B // Bt
    # NOTE: on v7x (2 TensorCores) prefer an even grid length so the "parallel"
    # batch axis keeps both cores busy.

    # Fold the softmax scale into the q columns of the qkv projection (free at runtime).
    w_qkv = params["w_qkv"].at[:, :C].multiply(scale)
    b_qkv = params["b_qkv"].at[:C].multiply(scale).reshape(1, 3 * C)
    w_proj = params["w_proj"]
    b_proj = params["b_proj"].reshape(1, C)

    kern = functools.partial(_fused_attention_kernel,
                             num_heads=num_heads, head_dim=hd)

    # Explicit VMEM budget (v7x has only 64 MiB physical / 32 MiB default scoped).
    est = (
        4 * Bt * N * C * x.dtype.itemsize                         # x + out, double-buffered
        + 2 * (C * 3 * C + 3 * C + C * C + C) * w_qkv.dtype.itemsize  # weights (<=2 copies)
        + 3 * num_heads * Bt * N * hd * 2                          # q/k/v scratch (bf16)
        + Bt * N * C * 2                                           # head-concat scratch (bf16)
    )
    vmem_limit = int(min(max(2 * est, 32 << 20), 64 << 20))

    scratch_shapes = [
        pltpu.VMEM((num_heads * Bt, N, hd), jnp.bfloat16),         # q (head-major)
        pltpu.VMEM((num_heads * Bt, N, hd), jnp.bfloat16),         # k
        pltpu.VMEM((num_heads * Bt, N, hd), jnp.bfloat16),         # v
        pltpu.VMEM((Bt, N, C), jnp.bfloat16),                      # concat-heads staging
    ]

    def make(single_buffer_weights):
        def const_spec(shape):
            idx_map = lambda g: tuple(0 for _ in shape)            # grid-invariant block
            if single_buffer_weights:
                # One VMEM copy is enough for grid-invariant operands.
                return pl.BlockSpec(shape, idx_map, pipeline_mode=pl.Buffered(1))
            return pl.BlockSpec(shape, idx_map)

        return pl.pallas_call(
            kern,
            out_shape=jax.ShapeDtypeStruct((B, N, C), x.dtype),
            grid=(num_steps,),
            in_specs=[
                pl.BlockSpec((Bt, N, C), lambda g: (g, 0, 0)),     # x: Bt batches per step
                const_spec((C, 3 * C)),                            # w_qkv (resident)
                const_spec((1, 3 * C)),                            # b_qkv
                const_spec((C, C)),                                # w_proj
                const_spec((1, C)),                                # b_proj
            ],
            out_specs=pl.BlockSpec((Bt, N, C), lambda g: (g, 0, 0)),
            scratch_shapes=scratch_shapes,
            compiler_params=pltpu.CompilerParams(
                dimension_semantics=("parallel",),
                vmem_limit_bytes=vmem_limit),
        )

    args = (x, w_qkv, b_qkv, w_proj, b_proj)
    try:
        return make(True)(*args)
    except Exception:
        # pl.Buffered(1) (single-buffered weights) not supported by this JAX version:
        # fall back to default double buffering (identical numerics).
        return make(False)(*args)


# ---------------------------------------------------------------------------
# Pure-JAX reference mirroring the PyTorch module (f32 throughout)
# ---------------------------------------------------------------------------
def reference_forward(x, params, num_heads):
    B, N, C = x.shape
    hd = C // num_heads
    scale = hd ** (-0.5)
    qkv = x @ params["w_qkv"] + params["b_qkv"]
    qkv = qkv.reshape(B, N, 3, num_heads, hd).transpose(2, 0, 3, 1, 4)
    q, k, v = qkv[0], qkv[1], qkv[2]
    attn = jnp.einsum("bhqd,bhkd->bhqk", q, k) * scale
    attn = jax.nn.softmax(attn, axis=-1)
    o = jnp.einsum("bhqk,bhkd->bhqd", attn, v)
    o = o.transpose(0, 2, 1, 3).reshape(B, N, C)
    return o @ params["w_proj"] + params["b_proj"]


# ---------------------------------------------------------------------------
# Driver
# ---------------------------------------------------------------------------
if __name__ == "__main__":
    B, N, C = 2, 16, 48          # small shapes; C divisible by num_heads=6
    num_heads = 6

    key = jax.random.PRNGKey(0)
    kx, kw1, kb1, kw2, kb2 = jax.random.split(key, 5)

    x = jax.random.normal(kx, (B, N, C), dtype=jnp.float32)
    params = {
        "w_qkv":  0.02 * jax.random.normal(kw1, (C, 3 * C), dtype=jnp.float32),
        "b_qkv":  0.01 * jax.random.normal(kb1, (3 * C,), dtype=jnp.float32),
        "w_proj": 0.02 * jax.random.normal(kw2, (C, C), dtype=jnp.float32),
        "b_proj": 0.01 * jax.random.normal(kb2, (C,), dtype=jnp.float32),
    }

    out = attention_forward(x, params, num_heads)
    out = jax.block_until_ready(out)

    ref = reference_forward(x, params, num_heads)
    assert out.shape == (B, N, C)
    # bf16 MXU operands + EUP approx reciprocal -> slightly relaxed tolerance.
    assert jnp.allclose(out, ref, atol=5e-3, rtol=1e-2), "mismatch vs reference"

    print("KERNEL_OK")
</pallas_src>

<mosaic_0001>
module attributes {stable_mosaic.version = 11 : i64} {
  func.func @_fused_attention_kernel(%arg0: i32, %arg1: memref<2x16x48xf32, #tpu.memory_space<vmem>>, %arg2: memref<48x144xf32, #tpu.memory_space<vmem>>, %arg3: memref<1x144xf32, #tpu.memory_space<vmem>>, %arg4: memref<48x48xf32, #tpu.memory_space<vmem>>, %arg5: memref<1x48xf32, #tpu.memory_space<vmem>>, %arg6: memref<2x16x48xf32, #tpu.memory_space<vmem>>, %arg7: memref<12x16x8xbf16, #tpu.memory_space<vmem>>, %arg8: memref<12x16x8xbf16, #tpu.memory_space<vmem>>, %arg9: memref<12x16x8xbf16, #tpu.memory_space<vmem>>, %arg10: memref<2x16x48xbf16, #tpu.memory_space<vmem>>) attributes {dimension_semantics = [#tpu.dimension_semantics<parallel>], iteration_bounds = array<i64: 1>, scalar_prefetch = 0 : i64, scratch_operands = 4 : i64, tpu.core_type = #tpu.core_type<tc>, window_params = [{transform_indices = @transform_0, window_bounds = array<i64: 2, 16, 48>}, {pipeline_mode = #tpu.pipeline_mode<synchronous>, transform_indices = @transform_1, window_bounds = array<i64: 48, 144>}, {pipeline_mode = #tpu.pipeline_mode<synchronous>, transform_indices = @transform_2, window_bounds = array<i64: 1, 144>}, {pipeline_mode = #tpu.pipeline_mode<synchronous>, transform_indices = @transform_3, window_bounds = array<i64: 48, 48>}, {pipeline_mode = #tpu.pipeline_mode<synchronous>, transform_indices = @transform_4, window_bounds = array<i64: 1, 48>}, {transform_indices = @transform_5, window_bounds = array<i64: 2, 16, 48>}]} {
    %c0 = arith.constant 0 : index
    %c0_0 = arith.constant 0 : index
    %c0_1 = arith.constant 0 : index
    %0 = vector.load %arg1[%c0, %c0_0, %c0_1] : memref<2x16x48xf32, #tpu.memory_space<vmem>>, vector<2x16x48xf32>
    %1 = vector.shape_cast %0 : vector<2x16x48xf32> to vector<32x48xf32>
    %2 = arith.truncf %1 : vector<32x48xf32> to vector<32x48xbf16>
    %c0_2 = arith.constant 0 : index
    %c0_3 = arith.constant 0 : index
    %3 = vector.load %arg2[%c0_2, %c0_3] : memref<48x144xf32, #tpu.memory_space<vmem>>, vector<48x144xf32>
    %4 = arith.truncf %3 : vector<48x144xf32> to vector<48x144xbf16>
    %cst = arith.constant dense<0.000000e+00> : vector<32x144xf32>
    %5 = tpu.matmul %2, %4, %cst {dimension_numbers = #tpu.dot_dimension_numbers<[1], [0], [0], [1], [0, 0, 1, 1], [], []>} : vector<32x48xbf16>, vector<48x144xbf16>, vector<32x144xf32> -> vector<32x144xf32>
    %c0_4 = arith.constant 0 : index
    %c0_5 = arith.constant 0 : index
    %6 = vector.load %arg3[%c0_4, %c0_5] : memref<1x144xf32, #tpu.memory_space<vmem>>, vector<1x144xf32>
    %7 = vector.broadcast %6 : vector<1x144xf32> to vector<32x144xf32>
    %8 = arith.addf %5, %7 : vector<32x144xf32>
    %9 = vector.shape_cast %8 : vector<32x144xf32> to vector<2x16x144xf32>
    %10 = vector.extract_strided_slice %9 {offsets = [0, 0, 0], sizes = [2, 16, 8], strides = [1, 1, 1]} : vector<2x16x144xf32> to vector<2x16x8xf32>
    %11 = arith.truncf %10 : vector<2x16x8xf32> to vector<2x16x8xbf16>
    %c0_6 = arith.constant 0 : index
    %c0_7 = arith.constant 0 : index
    %c0_8 = arith.constant 0 : index
    %12 = vector.load %arg7[%c0_6, %c0_7, %c0_8] : memref<12x16x8xbf16, #tpu.memory_space<vmem>>, vector<2x16x8xbf16>
    tpu.vector_store %arg7[%c0_6, %c0_7, %c0_8], %11 {strides = array<i32>} : memref<12x16x8xbf16, #tpu.memory_space<vmem>>, vector<2x16x8xbf16>,
    %13 = vector.extract_strided_slice %9 {offsets = [0, 0, 48], sizes = [2, 16, 8], strides = [1, 1, 1]} : vector<2x16x144xf32> to vector<2x16x8xf32>
    %14 = arith.truncf %13 : vector<2x16x8xf32> to vector<2x16x8xbf16>
    %c0_9 = arith.constant 0 : index
    %c0_10 = arith.constant 0 : index
    %c0_11 = arith.constant 0 : index
    %15 = vector.load %arg8[%c0_9, %c0_10, %c0_11] : memref<12x16x8xbf16, #tpu.memory_space<vmem>>, vector<2x16x8xbf16>
    tpu.vector_store %arg8[%c0_9, %c0_10, %c0_11], %14 {strides = array<i32>} : memref<12x16x8xbf16, #tpu.memory_space<vmem>>, vector<2x16x8xbf16>,
    %16 = vector.extract_strided_slice %9 {offsets = [0, 0, 96], sizes = [2, 16, 8], strides = [1, 1, 1]} : vector<2x16x144xf32> to vector<2x16x8xf32>
    %17 = arith.truncf %16 : vector<2x16x8xf32> to vector<2x16x8xbf16>
    %c0_12 = arith.constant 0 : index
    %c0_13 = arith.constant 0 : index
    %c0_14 = arith.constant 0 : index
    %18 = vector.load %arg9[%c0_12, %c0_13, %c0_14] : memref<12x16x8xbf16, #tpu.memory_space<vmem>>, vector<2x16x8xbf16>
    tpu.vector_store %arg9[%c0_12, %c0_13, %c0_14], %17 {strides = array<i32>} : memref<12x16x8xbf16, #tpu.memory_space<vmem>>, vector<2x16x8xbf16>,
    %19 = vector.extract_strided_slice %9 {offsets = [0, 0, 8], sizes = [2, 16, 8], strides = [1, 1, 1]} : vector<2x16x144xf32> to vector<2x16x8xf32>
    %20 = arith.truncf %19 : vector<2x16x8xf32> to vector<2x16x8xbf16>
    %c2 = arith.constant 2 : index
    %c0_15 = arith.constant 0 : index
    %c0_16 = arith.constant 0 : index
    %21 = vector.load %arg7[%c2, %c0_15, %c0_16] : memref<12x16x8xbf16, #tpu.memory_space<vmem>>, vector<2x16x8xbf16>
    tpu.vector_store %arg7[%c2, %c0_15, %c0_16], %20 {strides = array<i32>} : memref<12x16x8xbf16, #tpu.memory_space<vmem>>, vector<2x16x8xbf16>,
    %22 = vector.extract_strided_slice %9 {offsets = [0, 0, 56], sizes = [2, 16, 8], strides = [1, 1, 1]} : vector<2x16x144xf32> to vector<2x16x8xf32>
    %23 = arith.truncf %22 : vector<2x16x8xf32> to vector<2x16x8xbf16>
    %c2_17 = arith.constant 2 : index
    %c0_18 = arith.constant 0 : index
    %c0_19 = arith.constant 0 : index
    %24 = vector.load %arg8[%c2_17, %c0_18, %c0_19] : memref<12x16x8xbf16, #tpu.memory_space<vmem>>, vector<2x16x8xbf16>
    tpu.vector_store %arg8[%c2_17, %c0_18, %c0_19], %23 {strides = array<i32>} : memref<12x16x8xbf16, #tpu.memory_space<vmem>>, vector<2x16x8xbf16>,
    %25 = vector.extract_strided_slice %9 {offsets = [0, 0, 104], sizes = [2, 16, 8], strides = [1, 1, 1]} : vector<2x16x144xf32> to vector<2x16x8xf32>
    %26 = arith.truncf %25 : vector<2x16x8xf32> to vector<2x16x8xbf16>
    %c2_20 = arith.constant 2 : index
    %c0_21 = arith.constant 0 : index
    %c0_22 = arith.constant 0 : index
    %27 = vector.load %arg9[%c2_20, %c0_21, %c0_22] : memref<12x16x8xbf16, #tpu.memory_space<vmem>>, vector<2x16x8xbf16>
    tpu.vector_store %arg9[%c2_20, %c0_21, %c0_22], %26 {strides = array<i32>} : memref<12x16x8xbf16, #tpu.memory_space<vmem>>, vector<2x16x8xbf16>,
    %28 = vector.extract_strided_slice %9 {offsets = [0, 0, 16], sizes = [2, 16, 8], strides = [1, 1, 1]} : vector<2x16x144xf32> to vector<2x16x8xf32>
    %29 = arith.truncf %28 : vector<2x16x8xf32> to vector<2x16x8xbf16>
    %c4 = arith.constant 4 : index
    %c0_23 = arith.constant 0 : index
    %c0_24 = arith.constant 0 : index
    %30 = vector.load %arg7[%c4, %c0_23, %c0_24] : memref<12x16x8xbf16, #tpu.memory_space<vmem>>, vector<2x16x8xbf16>
    tpu.vector_store %arg7[%c4, %c0_23, %c0_24], %29 {strides = array<i32>} : memref<12x16x8xbf16, #tpu.memory_space<vmem>>, vector<2x16x8xbf16>,
    %31 = vector.extract_strided_slice %9 {offsets = [0, 0, 64], sizes = [2, 16, 8], strides = [1, 1, 1]} : vector<2x16x144xf32> to vector<2x16x8xf32>
    %32 = arith.truncf %31 : vector<2x16x8xf32> to vector<2x16x8xbf16>
    %c4_25 = arith.constant 4 : index
    %c0_26 = arith.constant 0 : index
    %c0_27 = arith.constant 0 : index
    %33 = vector.load %arg8[%c4_25, %c0_26, %c0_27] : memref<12x16x8xbf16, #tpu.memory_space<vmem>>, vector<2x16x8xbf16>
    tpu.vector_store %arg8[%c4_25, %c0_26, %c0_27], %32 {strides = array<i32>} : memref<12x16x8xbf16, #tpu.memory_space<vmem>>, vector<2x16x8xbf16>,
    %34 = vector.extract_strided_slice %9 {offsets = [0, 0, 112], sizes = [2, 16, 8], strides = [1, 1, 1]} : vector<2x16x144xf32> to vector<2x16x8xf32>
    %35 = arith.truncf %34 : vector<2x16x8xf32> to vector<2x16x8xbf16>
    %c4_28 = arith.constant 4 : index
    %c0_29 = arith.constant 0 : index
    %c0_30 = arith.constant 0 : index
    %36 = vector.load %arg9[%c4_28, %c0_29, %c0_30] : memref<12x16x8xbf16, #tpu.memory_space<vmem>>, vector<2x16x8xbf16>
    tpu.vector_store %arg9[%c4_28, %c0_29, %c0_30], %35 {strides = array<i32>} : memref<12x16x8xbf16, #tpu.memory_space<vmem>>, vector<2x16x8xbf16>,
    %37 = vector.extract_strided_slice %9 {offsets = [0, 0, 24], sizes = [2, 16, 8], strides = [1, 1, 1]} : vector<2x16x144xf32> to vector<2x16x8xf32>
    %38 = arith.truncf %37 : vector<2x16x8xf32> to vector<2x16x8xbf16>
    %c6 = arith.constant 6 : index
    %c0_31 = arith.constant 0 : index
    %c0_32 = arith.constant 0 : index
    %39 = vector.load %arg7[%c6, %c0_31, %c0_32] : memref<12x16x8xbf16, #tpu.memory_space<vmem>>, vector<2x16x8xbf16>
    tpu.vector_store %arg7[%c6, %c0_31, %c0_32], %38 {strides = array<i32>} : memref<12x16x8xbf16, #tpu.memory_space<vmem>>, vector<2x16x8xbf16>,
    %40 = vector.extract_strided_slice %9 {offsets = [0, 0, 72], sizes = [2, 16, 8], strides = [1, 1, 1]} : vector<2x16x144xf32> to vector<2x16x8xf32>
    %41 = arith.truncf %40 : vector<2x16x8xf32> to vector<2x16x8xbf16>
    %c6_33 = arith.constant 6 : index
    %c0_34 = arith.constant 0 : index
    %c0_35 = arith.constant 0 : index
    %42 = vector.load %arg8[%c6_33, %c0_34, %c0_35] : memref<12x16x8xbf16, #tpu.memory_space<vmem>>, vector<2x16x8xbf16>
    tpu.vector_store %arg8[%c6_33, %c0_34, %c0_35], %41 {strides = array<i32>} : memref<12x16x8xbf16, #tpu.memory_space<vmem>>, vector<2x16x8xbf16>,
    %43 = vector.extract_strided_slice %9 {offsets = [0, 0, 120], sizes = [2, 16, 8], strides = [1, 1, 1]} : vector<2x16x144xf32> to vector<2x16x8xf32>
    %44 = arith.truncf %43 : vector<2x16x8xf32> to vector<2x16x8xbf16>
    %c6_36 = arith.constant 6 : index
    %c0_37 = arith.constant 0 : index
    %c0_38 = arith.constant 0 : index
    %45 = vector.load %arg9[%c6_36, %c0_37, %c0_38] : memref<12x16x8xbf16, #tpu.memory_space<vmem>>, vector<2x16x8xbf16>
    tpu.vector_store %arg9[%c6_36, %c0_37, %c0_38], %44 {strides = array<i32>} : memref<12x16x8xbf16, #tpu.memory_space<vmem>>, vector<2x16x8xbf16>,
    %46 = vector.extract_strided_slice %9 {offsets = [0, 0, 32], sizes = [2, 16, 8], strides = [1, 1, 1]} : vector<2x16x144xf32> to vector<2x16x8xf32>
    %47 = arith.truncf %46 : vector<2x16x8xf32> to vector<2x16x8xbf16>
    %c8 = arith.constant 8 : index
    %c0_39 = arith.constant 0 : index
    %c0_40 = arith.constant 0 : index
    %48 = vector.load %arg7[%c8, %c0_39, %c0_40] : memref<12x16x8xbf16, #tpu.memory_space<vmem>>, vector<2x16x8xbf16>
    tpu.vector_store %arg7[%c8, %c0_39, %c0_40], %47 {strides = array<i32>} : memref<12x16x8xbf16, #tpu.memory_space<vmem>>, vector<2x16x8xbf16>,
    %49 = vector.extract_strided_slice %9 {offsets = [0, 0, 80], sizes = [2, 16, 8], strides = [1, 1, 1]} : vector<2x16x144xf32> to vector<2x16x8xf32>
    %50 = arith.truncf %49 : vector<2x16x8xf32> to vector<2x16x8xbf16>
    %c8_41 = arith.constant 8 : index
    %c0_42 = arith.constant 0 : index
    %c0_43 = arith.constant 0 : index
    %51 = vector.load %arg8[%c8_41, %c0_42, %c0_43] : memref<12x16x8xbf16, #tpu.memory_space<vmem>>, vector<2x16x8xbf16>
    tpu.vector_store %arg8[%c8_41, %c0_42, %c0_43], %50 {strides = array<i32>} : memref<12x16x8xbf16, #tpu.memory_space<vmem>>, vector<2x16x8xbf16>,
    %52 = vector.extract_strided_slice %9 {offsets = [0, 0, 128], sizes = [2, 16, 8], strides = [1, 1, 1]} : vector<2x16x144xf32> to vector<2x16x8xf32>
    %53 = arith.truncf %52 : vector<2x16x8xf32> to vector<2x16x8xbf16>
    %c8_44 = arith.constant 8 : index
    %c0_45 = arith.constant 0 : index
    %c0_46 = arith.constant 0 : index
    %54 = vector.load %arg9[%c8_44, %c0_45, %c0_46] : memref<12x16x8xbf16, #tpu.memory_space<vmem>>, vector<2x16x8xbf16>
    tpu.vector_store %arg9[%c8_44, %c0_45, %c0_46], %53 {strides = array<i32>} : memref<12x16x8xbf16, #tpu.memory_space<vmem>>, vector<2x16x8xbf16>,
    %55 = vector.extract_strided_slice %9 {offsets = [0, 0, 40], sizes = [2, 16, 8], strides = [1, 1, 1]} : vector<2x16x144xf32> to vector<2x16x8xf32>
    %56 = arith.truncf %55 : vector<2x16x8xf32> to vector<2x16x8xbf16>
    %c10 = arith.constant 10 : index
    %c0_47 = arith.constant 0 : index
    %c0_48 = arith.constant 0 : index
    %57 = vector.load %arg7[%c10, %c0_47, %c0_48] : memref<12x16x8xbf16, #tpu.memory_space<vmem>>, vector<2x16x8xbf16>
    tpu.vector_store %arg7[%c10, %c0_47, %c0_48], %56 {strides = array<i32>} : memref<12x16x8xbf16, #tpu.memory_space<vmem>>, vector<2x16x8xbf16>,
    %58 = vector.extract_strided_slice %9 {offsets = [0, 0, 88], sizes = [2, 16, 8], strides = [1, 1, 1]} : vector<2x16x144xf32> to vector<2x16x8xf32>
    %59 = arith.truncf %58 : vector<2x16x8xf32> to vector<2x16x8xbf16>
    %c10_49 = arith.constant 10 : index
    %c0_50 = arith.constant 0 : index
    %c0_51 = arith.constant 0 : index
    %60 = vector.load %arg8[%c10_49, %c0_50, %c0_51] : memref<12x16x8xbf16, #tpu.memory_space<vmem>>, vector<2x16x8xbf16>
    tpu.vector_store %arg8[%c10_49, %c0_50, %c0_51], %59 {strides = array<i32>} : memref<12x16x8xbf16, #tpu.memory_space<vmem>>, vector<2x16x8xbf16>,
    %61 = vector.extract_strided_slice %9 {offsets = [0, 0, 136], sizes = [2, 16, 8], strides = [1, 1, 1]} : vector<2x16x144xf32> to vector<2x16x8xf32>
    %62 = arith.truncf %61 : vector<2x16x8xf32> to vector<2x16x8xbf16>
    %c10_52 = arith.constant 10 : index
    %c0_53 = arith.constant 0 : index
    %c0_54 = arith.constant 0 : index
    %63 = vector.load %arg9[%c10_52, %c0_53, %c0_54] : memref<12x16x8xbf16, #tpu.memory_space<vmem>>, vector<2x16x8xbf16>
    tpu.vector_store %arg9[%c10_52, %c0_53, %c0_54], %62 {strides = array<i32>} : memref<12x16x8xbf16, #tpu.memory_space<vmem>>, vector<2x16x8xbf16>,
    %c0_55 = arith.constant 0 : index
    %c0_56 = arith.constant 0 : index
    %c0_57 = arith.constant 0 : index
    %64 = vector.load %arg7[%c0_55, %c0_56, %c0_57] : memref<12x16x8xbf16, #tpu.memory_space<vmem>>, vector<1x16x8xbf16>
    %65 = vector.shape_cast %64 : vector<1x16x8xbf16> to vector<16x8xbf16>
    %c0_58 = arith.constant 0 : index
    %c0_59 = arith.constant 0 : index
    %c0_60 = arith.constant 0 : index
    %66 = vector.load %arg8[%c0_58, %c0_59, %c0_60] : memref<12x16x8xbf16, #tpu.memory_space<vmem>>, vector<1x16x8xbf16>
    %67 = vector.shape_cast %66 : vector<1x16x8xbf16> to vector<16x8xbf16>
    %c0_61 = arith.constant 0 : index
    %c0_62 = arith.constant 0 : index
    %c0_63 = arith.constant 0 : index
    %68 = vector.load %arg9[%c0_61, %c0_62, %c0_63] : memref<12x16x8xbf16, #tpu.memory_space<vmem>>, vector<1x16x8xbf16>
    %69 = vector.shape_cast %68 : vector<1x16x8xbf16> to vector<16x8xbf16>
    %cst_64 = arith.constant dense<0.000000e+00> : vector<16x16xf32>
    %70 = tpu.matmul %65, %67, %cst_64 {dimension_numbers = #tpu.dot_dimension_numbers<[1], [1], [0], [0], [0, 0, 1, 0], [], []>} : vector<16x8xbf16>, vector<16x8xbf16>, vector<16x16xf32> -> vector<16x16xf32>
    %cst_65 = arith.constant dense<0xFF800000> : vector<16xf32>
    %71 = vector.multi_reduction <maximumf>, %70, %cst_65 [1] : vector<16x16xf32> to vector<16xf32>
    %72 = vector.shape_cast %71 : vector<16xf32> to vector<16x1xf32>
    %73 = vector.broadcast %72 : vector<16x1xf32> to vector<16x16xf32>
    %74 = arith.subf %70, %73 : vector<16x16xf32>
    %75 = math.exp %74 : vector<16x16xf32>
    %cst_66 = arith.constant dense<0.000000e+00> : vector<16xf32>
    %76 = vector.multi_reduction <add>, %75, %cst_66 [1] : vector<16x16xf32> to vector<16xf32>
    %77 = vector.shape_cast %76 : vector<16xf32> to vector<16x1xf32>
    %78 = tpu.reciprocal %77 {approx = true} : vector<16x1xf32> -> vector<16x1xf32>
    %79 = vector.broadcast %78 : vector<16x1xf32> to vector<16x16xf32>
    %80 = arith.mulf %75, %79 : vector<16x16xf32>
    %81 = arith.truncf %80 : vector<16x16xf32> to vector<16x16xbf16>
    %cst_67 = arith.constant dense<0.000000e+00> : vector<16x8xf32>
    %82 = tpu.matmul %81, %69, %cst_67 {dimension_numbers = #tpu.dot_dimension_numbers<[1], [0], [0], [1], [0, 0, 1, 1], [], []>} : vector<16x16xbf16>, vector<16x8xbf16>, vector<16x8xf32> -> vector<16x8xf32>
    %83 = arith.truncf %82 : vector<16x8xf32> to vector<16x8xbf16>
    %c0_68 = arith.constant 0 : index
    %c0_69 = arith.constant 0 : index
    %c0_70 = arith.constant 0 : index
    %84 = vector.load %arg10[%c0_68, %c0_69, %c0_70] : memref<2x16x48xbf16, #tpu.memory_space<vmem>>, vector<1x16x8xbf16>
    %85 = vector.shape_cast %84 : vector<1x16x8xbf16> to vector<16x8xbf16>
    %86 = vector.shape_cast %83 : vector<16x8xbf16> to vector<1x16x8xbf16>
    tpu.vector_store %arg10[%c0_68, %c0_69, %c0_70], %86 {strides = array<i32>} : memref<2x16x48xbf16, #tpu.memory_space<vmem>>, vector<1x16x8xbf16>,
    %c1 = arith.constant 1 : index
    %c0_71 = arith.constant 0 : index
    %c0_72 = arith.constant 0 : index
    %87 = vector.load %arg7[%c1, %c0_71, %c0_72] : memref<12x16x8xbf16, #tpu.memory_space<vmem>>, vector<1x16x8xbf16>
    %88 = vector.shape_cast %87 : vector<1x16x8xbf16> to vector<16x8xbf16>
    %c1_73 = arith.constant 1 : index
    %c0_74 = arith.constant 0 : index
    %c0_75 = arith.constant 0 : index
    %89 = vector.load %arg8[%c1_73, %c0_74, %c0_75] : memref<12x16x8xbf16, #tpu.memory_space<vmem>>, vector<1x16x8xbf16>
    %90 = vector.shape_cast %89 : vector<1x16x8xbf16> to vector<16x8xbf16>
    %c1_76 = arith.constant 1 : index
    %c0_77 = arith.constant 0 : index
    %c0_78 = arith.constant 0 : index
    %91 = vector.load %arg9[%c1_76, %c0_77, %c0_78] : memref<12x16x8xbf16, #tpu.memory_space<vmem>>, vector<1x16x8xbf16>
    %92 = vector.shape_cast %91 : vector<1x16x8xbf16> to vector<16x8xbf16>
    %cst_79 = arith.constant dense<0.000000e+00> : vector<16x16xf32>
    %93 = tpu.matmul %88, %90, %cst_79 {dimension_numbers = #tpu.dot_dimension_numbers<[1], [1], [0], [0], [0, 0, 1, 0], [], []>} : vector<16x8xbf16>, vector<16x8xbf16>, vector<16x16xf32> -> vector<16x16xf32>
    %cst_80 = arith.constant dense<0xFF800000> : vector<16xf32>
    %94 = vector.multi_reduction <maximumf>, %93, %cst_80 [1] : vector<16x16xf32> to vector<16xf32>
    %95 = vector.shape_cast %94 : vector<16xf32> to vector<16x1xf32>
    %96 = vector.broadcast %95 : vector<16x1xf32> to vector<16x16xf32>
    %97 = arith.subf %93, %96 : vector<16x16xf32>
    %98 = math.exp %97 : vector<16x16xf32>
    %cst_81 = arith.constant dense<0.000000e+00> : vector<16xf32>
    %99 = vector.multi_reduction <add>, %98, %cst_81 [1] : vector<16x16xf32> to vector<16xf32>
    %100 = vector.shape_cast %99 : vector<16xf32> to vector<16x1xf32>
    %101 = tpu.reciprocal %100 {approx = true} : vector<16x1xf32> -> vector<16x1xf32>
    %102 = vector.broadcast %101 : vector<16x1xf32> to vector<16x16xf32>
    %103 = arith.mulf %98, %102 : vector<16x16xf32>
    %104 = arith.truncf %103 : vector<16x16xf32> to vector<16x16xbf16>
    %cst_82 = arith.constant dense<0.000000e+00> : vector<16x8xf32>
    %105 = tpu.matmul %104, %92, %cst_82 {dimension_numbers = #tpu.dot_dimension_numbers<[1], [0], [0], [1], [0, 0, 1, 1], [], []>} : vector<16x16xbf16>, vector<16x8xbf16>, vector<16x8xf32> -> vector<16x8xf32>
    %106 = arith.truncf %105 : vector<16x8xf32> to vector<16x8xbf16>
    %c1_83 = arith.constant 1 : index
    %c0_84 = arith.constant 0 : index
    %c0_85 = arith.constant 0 : index
    %107 = vector.load %arg10[%c1_83, %c0_84, %c0_85] : memref<2x16x48xbf16, #tpu.memory_space<vmem>>, vector<1x16x8xbf16>
    %108 = vector.shape_cast %107 : vector<1x16x8xbf16> to vector<16x8xbf16>
    %109 = vector.shape_cast %106 : vector<16x8xbf16> to vector<1x16x8xbf16>
    tpu.vector_store %arg10[%c1_83, %c0_84, %c0_85], %109 {strides = array<i32>} : memref<2x16x48xbf16, #tpu.memory_space<vmem>>, vector<1x16x8xbf16>,
    %c2_86 = arith.constant 2 : index
    %c0_87 = arith.constant 0 : index
    %c0_88 = arith.constant 0 : index
    %110 = vector.load %arg7[%c2_86, %c0_87, %c0_88] : memref<12x16x8xbf16, #tpu.memory_space<vmem>>, vector<1x16x8xbf16>
    %111 = vector.shape_cast %110 : vector<1x16x8xbf16> to vector<16x8xbf16>
    %c2_89 = arith.constant 2 : index
    %c0_90 = arith.constant 0 : index
    %c0_91 = arith.constant 0 : index
    %112 = vector.load %arg8[%c2_89, %c0_90, %c0_91] : memref<12x16x8xbf16, #tpu.memory_space<vmem>>, vector<1x16x8xbf16>
    %113 = vector.shape_cast %112 : vector<1x16x8xbf16> to vector<16x8xbf16>
    %c2_92 = arith.constant 2 : index
    %c0_93 = arith.constant 0 : index
    %c0_94 = arith.constant 0 : index
    %114 = vector.load %arg9[%c2_92, %c0_93, %c0_94] : memref<12x16x8xbf16, #tpu.memory_space<vmem>>, vector<1x16x8xbf16>
    %115 = vector.shape_cast %114 : vector<1x16x8xbf16> to vector<16x8xbf16>
    %cst_95 = arith.constant dense<0.000000e+00> : vector<16x16xf32>
    %116 = tpu.matmul %111, %113, %cst_95 {dimension_numbers = #tpu.dot_dimension_numbers<[1], [1], [0], [0], [0, 0, 1, 0], [], []>} : vector<16x8xbf16>, vector<16x8xbf16>, vector<16x16xf32> -> vector<16x16xf32>
    %cst_96 = arith.constant dense<0xFF800000> : vector<16xf32>
    %117 = vector.multi_reduction <maximumf>, %116, %cst_96 [1] : vector<16x16xf32> to vector<16xf32>
    %118 = vector.shape_cast %117 : vector<16xf32> to vector<16x1xf32>
    %119 = vector.broadcast %118 : vector<16x1xf32> to vector<16x16xf32>
    %120 = arith.subf %116, %119 : vector<16x16xf32>
    %121 = math.exp %120 : vector<16x16xf32>
    %cst_97 = arith.constant dense<0.000000e+00> : vector<16xf32>
    %122 = vector.multi_reduction <add>, %121, %cst_97 [1] : vector<16x16xf32> to vector<16xf32>
    %123 = vector.shape_cast %122 : vector<16xf32> to vector<16x1xf32>
    %124 = tpu.reciprocal %123 {approx = true} : vector<16x1xf32> -> vector<16x1xf32>
    %125 = vector.broadcast %124 : vector<16x1xf32> to vector<16x16xf32>
    %126 = arith.mulf %121, %125 : vector<16x16xf32>
    %127 = arith.truncf %126 : vector<16x16xf32> to vector<16x16xbf16>
    %cst_98 = arith.constant dense<0.000000e+00> : vector<16x8xf32>
    %128 = tpu.matmul %127, %115, %cst_98 {dimension_numbers = #tpu.dot_dimension_numbers<[1], [0], [0], [1], [0, 0, 1, 1], [], []>} : vector<16x16xbf16>, vector<16x8xbf16>, vector<16x8xf32> -> vector<16x8xf32>
    %129 = arith.truncf %128 : vector<16x8xf32> to vector<16x8xbf16>
    %c0_99 = arith.constant 0 : index
    %c0_100 = arith.constant 0 : index
    %c8_101 = arith.constant 8 : index
    %130 = vector.load %arg10[%c0_99, %c0_100, %c8_101] : memref<2x16x48xbf16, #tpu.memory_space<vmem>>, vector<1x16x8xbf16>
    %131 = vector.shape_cast %130 : vector<1x16x8xbf16> to vector<16x8xbf16>
    %132 = vector.shape_cast %129 : vector<16x8xbf16> to vector<1x16x8xbf16>
    tpu.vector_store %arg10[%c0_99, %c0_100, %c8_101], %132 {strides = array<i32>} : memref<2x16x48xbf16, #tpu.memory_space<vmem>>, vector<1x16x8xbf16>,
    %c3 = arith.constant 3 : index
    %c0_102 = arith.constant 0 : index
    %c0_103 = arith.constant 0 : index
    %133 = vector.load %arg7[%c3, %c0_102, %c0_103] : memref<12x16x8xbf16, #tpu.memory_space<vmem>>, vector<1x16x8xbf16>
    %134 = vector.shape_cast %133 : vector<1x16x8xbf16> to vector<16x8xbf16>
    %c3_104 = arith.constant 3 : index
    %c0_105 = arith.constant 0 : index
    %c0_106 = arith.constant 0 : index
    %135 = vector.load %arg8[%c3_104, %c0_105, %c0_106] : memref<12x16x8xbf16, #tpu.memory_space<vmem>>, vector<1x16x8xbf16>
    %136 = vector.shape_cast %135 : vector<1x16x8xbf16> to vector<16x8xbf16>
    %c3_107 = arith.constant 3 : index
    %c0_108 = arith.constant 0 : index
    %c0_109 = arith.constant 0 : index
    %137 = vector.load %arg9[%c3_107, %c0_108, %c0_109] : memref<12x16x8xbf16, #tpu.memory_space<vmem>>, vector<1x16x8xbf16>
    %138 = vector.shape_cast %137 : vector<1x16x8xbf16> to vector<16x8xbf16>
    %cst_110 = arith.constant dense<0.000000e+00> : vector<16x16xf32>
    %139 = tpu.matmul %134, %136, %cst_110 {dimension_numbers = #tpu.dot_dimension_numbers<[1], [1], [0], [0], [0, 0, 1, 0], [], []>} : vector<16x8xbf16>, vector<16x8xbf16>, vector<16x16xf32> -> vector<16x16xf32>
    %cst_111 = arith.constant dense<0xFF800000> : vector<16xf32>
    %140 = vector.multi_reduction <maximumf>, %139, %cst_111 [1] : vector<16x16xf32> to vector<16xf32>
    %141 = vector.shape_cast %140 : vector<16xf32> to vector<16x1xf32>
    %142 = vector.broadcast %141 : vector<16x1xf32> to vector<16x16xf32>
    %143 = arith.subf %139, %142 : vector<16x16xf32>
    %144 = math.exp %143 : vector<16x16xf32>
    %cst_112 = arith.constant dense<0.000000e+00> : vector<16xf32>
    %145 = vector.multi_reduction <add>, %144, %cst_112 [1] : vector<16x16xf32> to vector<16xf32>
    %146 = vector.shape_cast %145 : vector<16xf32> to vector<16x1xf32>
    %147 = tpu.reciprocal %146 {approx = true} : vector<16x1xf32> -> vector<16x1xf32>
    %148 = vector.broadcast %147 : vector<16x1xf32> to vector<16x16xf32>
    %149 = arith.mulf %144, %148 : vector<16x16xf32>
    %150 = arith.truncf %149 : vector<16x16xf32> to vector<16x16xbf16>
    %cst_113 = arith.constant dense<0.000000e+00> : vector<16x8xf32>
    %151 = tpu.matmul %150, %138, %cst_113 {dimension_numbers = #tpu.dot_dimension_numbers<[1], [0], [0], [1], [0, 0, 1, 1], [], []>} : vector<16x16xbf16>, vector<16x8xbf16>, vector<16x8xf32> -> vector<16x8xf32>
    %152 = arith.truncf %151 : vector<16x8xf32> to vector<16x8xbf16>
    %c1_114 = arith.constant 1 : index
    %c0_115 = arith.constant 0 : index
    %c8_116 = arith.constant 8 : index
    %153 = vector.load %arg10[%c1_114, %c0_115, %c8_116] : memref<2x16x48xbf16, #tpu.memory_space<vmem>>, vector<1x16x8xbf16>
    %154 = vector.shape_cast %153 : vector<1x16x8xbf16> to vector<16x8xbf16>
    %155 = vector.shape_cast %152 : vector<16x8xbf16> to vector<1x16x8xbf16>
    tpu.vector_store %arg10[%c1_114, %c0_115, %c8_116], %155 {strides = array<i32>} : memref<2x16x48xbf16, #tpu.memory_space<vmem>>, vector<1x16x8xbf16>,
    %c4_117 = arith.constant 4 : index
    %c0_118 = arith.constant 0 : index
    %c0_119 = arith.constant 0 : index
    %156 = vector.load %arg7[%c4_117, %c0_118, %c0_119] : memref<12x16x8xbf16, #tpu.memory_space<vmem>>, vector<1x16x8xbf16>
    %157 = vector.shape_cast %156 : vector<1x16x8xbf16> to vector<16x8xbf16>
    %c4_120 = arith.constant 4 : index
    %c0_121 = arith.constant 0 : index
    %c0_122 = arith.constant 0 : index
    %158 = vector.load %arg8[%c4_120, %c0_121, %c0_122] : memref<12x16x8xbf16, #tpu.memory_space<vmem>>, vector<1x16x8xbf16>
    %159 = vector.shape_cast %158 : vector<1x16x8xbf16> to vector<16x8xbf16>
    %c4_123 = arith.constant 4 : index
    %c0_124 = arith.constant 0 : index
    %c0_125 = arith.constant 0 : index
    %160 = vector.load %arg9[%c4_123, %c0_124, %c0_125] : memref<12x16x8xbf16, #tpu.memory_space<vmem>>, vector<1x16x8xbf16>
    %161 = vector.shape_cast %160 : vector<1x16x8xbf16> to vector<16x8xbf16>
    %cst_126 = arith.constant dense<0.000000e+00> : vector<16x16xf32>
    %162 = tpu.matmul %157, %159, %cst_126 {dimension_numbers = #tpu.dot_dimension_numbers<[1], [1], [0], [0], [0, 0, 1, 0], [], []>} : vector<16x8xbf16>, vector<16x8xbf16>, vector<16x16xf32> -> vector<16x16xf32>
    %cst_127 = arith.constant dense<0xFF800000> : vector<16xf32>
    %163 = vector.multi_reduction <maximumf>, %162, %cst_127 [1] : vector<16x16xf32> to vector<16xf32>
    %164 = vector.shape_cast %163 : vector<16xf32> to vector<16x1xf32>
    %165 = vector.broadcast %164 : vector<16x1xf32> to vector<16x16xf32>
    %166 = arith.subf %162, %165 : vector<16x16xf32>
    %167 = math.exp %166 : vector<16x16xf32>
    %cst_128 = arith.constant dense<0.000000e+00> : vector<16xf32>
    %168 = vector.multi_reduction <add>, %167, %cst_128 [1] : vector<16x16xf32> to vector<16xf32>
    %169 = vector.shape_cast %168 : vector<16xf32> to vector<16x1xf32>
    %170 = tpu.reciprocal %169 {approx = true} : vector<16x1xf32> -> vector<16x1xf32>
    %171 = vector.broadcast %170 : vector<16x1xf32> to vector<16x16xf32>
    %172 = arith.mulf %167, %171 : vector<16x16xf32>
    %173 = arith.truncf %172 : vector<16x16xf32> to vector<16x16xbf16>
    %cst_129 = arith.constant dense<0.000000e+00> : vector<16x8xf32>
    %174 = tpu.matmul %173, %161, %cst_129 {dimension_numbers = #tpu.dot_dimension_numbers<[1], [0], [0], [1], [0, 0, 1, 1], [], []>} : vector<16x16xbf16>, vector<16x8xbf16>, vector<16x8xf32> -> vector<16x8xf32>
    %175 = arith.truncf %174 : vector<16x8xf32> to vector<16x8xbf16>
    %c0_130 = arith.constant 0 : index
    %c0_131 = arith.constant 0 : index
    %c16 = arith.constant 16 : index
    %176 = vector.load %arg10[%c0_130, %c0_131, %c16] : memref<2x16x48xbf16, #tpu.memory_space<vmem>>, vector<1x16x8xbf16>
    %177 = vector.shape_cast %176 : vector<1x16x8xbf16> to vector<16x8xbf16>
    %178 = vector.shape_cast %175 : vector<16x8xbf16> to vector<1x16x8xbf16>
    tpu.vector_store %arg10[%c0_130, %c0_131, %c16], %178 {strides = array<i32>} : memref<2x16x48xbf16, #tpu.memory_space<vmem>>, vector<1x16x8xbf16>,
    %c5 = arith.constant 5 : index
    %c0_132 = arith.constant 0 : index
    %c0_133 = arith.constant 0 : index
    %179 = vector.load %arg7[%c5, %c0_132, %c0_133] : memref<12x16x8xbf16, #tpu.memory_space<vmem>>, vector<1x16x8xbf16>
    %180 = vector.shape_cast %179 : vector<1x16x8xbf16> to vector<16x8xbf16>
    %c5_134 = arith.constant 5 : index
    %c0_135 = arith.constant 0 : index
    %c0_136 = arith.constant 0 : index
    %181 = vector.load %arg8[%c5_134, %c0_135, %c0_136] : memref<12x16x8xbf16, #tpu.memory_space<vmem>>, vector<1x16x8xbf16>
    %182 = vector.shape_cast %181 : vector<1x16x8xbf16> to vector<16x8xbf16>
    %c5_137 = arith.constant 5 : index
    %c0_138 = arith.constant 0 : index
    %c0_139 = arith.constant 0 : index
    %183 = vector.load %arg9[%c5_137, %c0_138, %c0_139] : memref<12x16x8xbf16, #tpu.memory_space<vmem>>, vector<1x16x8xbf16>
    %184 = vector.shape_cast %183 : vector<1x16x8xbf16> to vector<16x8xbf16>
    %cst_140 = arith.constant dense<0.000000e+00> : vector<16x16xf32>
    %185 = tpu.matmul %180, %182, %cst_140 {dimension_numbers = #tpu.dot_dimension_numbers<[1], [1], [0], [0], [0, 0, 1, 0], [], []>} : vector<16x8xbf16>, vector<16x8xbf16>, vector<16x16xf32> -> vector<16x16xf32>
    %cst_141 = arith.constant dense<0xFF800000> : vector<16xf32>
    %186 = vector.multi_reduction <maximumf>, %185, %cst_141 [1] : vector<16x16xf32> to vector<16xf32>
    %187 = vector.shape_cast %186 : vector<16xf32> to vector<16x1xf32>
    %188 = vector.broadcast %187 : vector<16x1xf32> to vector<16x16xf32>
    %189 = arith.subf %185, %188 : vector<16x16xf32>
    %190 = math.exp %189 : vector<16x16xf32>
    %cst_142 = arith.constant dense<0.000000e+00> : vector<16xf32>
    %191 = vector.multi_reduction <add>, %190, %cst_142 [1] : vector<16x16xf32> to vector<16xf32>
    %192 = vector.shape_cast %191 : vector<16xf32> to vector<16x1xf32>
    %193 = tpu.reciprocal %192 {approx = true} : vector<16x1xf32> -> vector<16x1xf32>
    %194 = vector.broadcast %193 : vector<16x1xf32> to vector<16x16xf32>
    %195 = arith.mulf %190, %194 : vector<16x16xf32>
    %196 = arith.truncf %195 : vector<16x16xf32> to vector<16x16xbf16>
    %cst_143 = arith.constant dense<0.000000e+00> : vector<16x8xf32>
    %197 = tpu.matmul %196, %184, %cst_143 {dimension_numbers = #tpu.dot_dimension_numbers<[1], [0], [0], [1], [0, 0, 1, 1], [], []>} : vector<16x16xbf16>, vector<16x8xbf16>, vector<16x8xf32> -> vector<16x8xf32>
    %198 = arith.truncf %197 : vector<16x8xf32> to vector<16x8xbf16>
    %c1_144 = arith.constant 1 : index
    %c0_145 = arith.constant 0 : index
    %c16_146 = arith.constant 16 : index
    %199 = vector.load %arg10[%c1_144, %c0_145, %c16_146] : memref<2x16x48xbf16, #tpu.memory_space<vmem>>, vector<1x16x8xbf16>
    %200 = vector.shape_cast %199 : vector<1x16x8xbf16> to vector<16x8xbf16>
    %201 = vector.shape_cast %198 : vector<16x8xbf16> to vector<1x16x8xbf16>
    tpu.vector_store %arg10[%c1_144, %c0_145, %c16_146], %201 {strides = array<i32>} : memref<2x16x48xbf16, #tpu.memory_space<vmem>>, vector<1x16x8xbf16>,
    %c6_147 = arith.constant 6 : index
    %c0_148 = arith.constant 0 : index
    %c0_149 = arith.constant 0 : index
    %202 = vector.load %arg7[%c6_147, %c0_148, %c0_149] : memref<12x16x8xbf16, #tpu.memory_space<vmem>>, vector<1x16x8xbf16>
    %203 = vector.shape_cast %202 : vector<1x16x8xbf16> to vector<16x8xbf16>
    %c6_150 = arith.constant 6 : index
    %c0_151 = arith.constant 0 : index
    %c0_152 = arith.constant 0 : index
    %204 = vector.load %arg8[%c6_150, %c0_151, %c0_152] : memref<12x16x8xbf16, #tpu.memory_space<vmem>>, vector<1x16x8xbf16>
    %205 = vector.shape_cast %204 : vector<1x16x8xbf16> to vector<16x8xbf16>
    %c6_153 = arith.constant 6 : index
    %c0_154 = arith.constant 0 : index
    %c0_155 = arith.constant 0 : index
    %206 = vector.load %arg9[%c6_153, %c0_154, %c0_155] : memref<12x16x8xbf16, #tpu.memory_space<vmem>>, vector<1x16x8xbf16>
    %207 = vector.shape_cast %206 : vector<1x16x8xbf16> to vector<16x8xbf16>
    %cst_156 = arith.constant dense<0.000000e+00> : vector<16x16xf32>
    %208 = tpu.matmul %203, %205, %cst_156 {dimension_numbers = #tpu.dot_dimension_numbers<[1], [1], [0], [0], [0, 0, 1, 0], [], []>} : vector<16x8xbf16>, vector<16x8xbf16>, vector<16x16xf32> -> vector<16x16xf32>
    %cst_157 = arith.constant dense<0xFF800000> : vector<16xf32>
    %209 = vector.multi_reduction <maximumf>, %208, %cst_157 [1] : vector<16x16xf32> to vector<16xf32>
    %210 = vector.shape_cast %209 : vector<16xf32> to vector<16x1xf32>
    %211 = vector.broadcast %210 : vector<16x1xf32> to vector<16x16xf32>
    %212 = arith.subf %208, %211 : vector<16x16xf32>
    %213 = math.exp %212 : vector<16x16xf32>
    %cst_158 = arith.constant dense<0.000000e+00> : vector<16xf32>
    %214 = vector.multi_reduction <add>, %213, %cst_158 [1] : vector<16x16xf32> to vector<16xf32>
    %215 = vector.shape_cast %214 : vector<16xf32> to vector<16x1xf32>
    %216 = tpu.reciprocal %215 {approx = true} : vector<16x1xf32> -> vector<16x1xf32>
    %217 = vector.broadcast %216 : vector<16x1xf32> to vector<16x16xf32>
    %218 = arith.mulf %213, %217 : vector<16x16xf32>
    %219 = arith.truncf %218 : vector<16x16xf32> to vector<16x16xbf16>
    %cst_159 = arith.constant dense<0.000000e+00> : vector<16x8xf32>
    %220 = tpu.matmul %219, %207, %cst_159 {dimension_numbers = #tpu.dot_dimension_numbers<[1], [0], [0], [1], [0, 0, 1, 1], [], []>} : vector<16x16xbf16>, vector<16x8xbf16>, vector<16x8xf32> -> vector<16x8xf32>
    %221 = arith.truncf %220 : vector<16x8xf32> to vector<16x8xbf16>
    %c0_160 = arith.constant 0 : index
    %c0_161 = arith.constant 0 : index
    %c24 = arith.constant 24 : index
    %222 = vector.load %arg10[%c0_160, %c0_161, %c24] : memref<2x16x48xbf16, #tpu.memory_space<vmem>>, vector<1x16x8xbf16>
    %223 = vector.shape_cast %222 : vector<1x16x8xbf16> to vector<16x8xbf16>
    %224 = vector.shape_cast %221 : vector<16x8xbf16> to vector<1x16x8xbf16>
    tpu.vector_store %arg10[%c0_160, %c0_161, %c24], %224 {strides = array<i32>} : memref<2x16x48xbf16, #tpu.memory_space<vmem>>, vector<1x16x8xbf16>,
    %c7 = arith.constant 7 : index
    %c0_162 = arith.constant 0 : index
    %c0_163 = arith.constant 0 : index
    %225 = vector.load %arg7[%c7, %c0_162, %c0_163] : memref<12x16x8xbf16, #tpu.memory_space<vmem>>, vector<1x16x8xbf16>
    %226 = vector.shape_cast %225 : vector<1x16x8xbf16> to vector<16x8xbf16>
    %c7_164 = arith.constant 7 : index
    %c0_165 = arith.constant 0 : index
    %c0_166 = arith.constant 0 : index
    %227 = vector.load %arg8[%c7_164, %c0_165, %c0_166] : memref<12x16x8xbf16, #tpu.memory_space<vmem>>, vector<1x16x8xbf16>
    %228 = vector.shape_cast %227 : vector<1x16x8xbf16> to vector<16x8xbf16>
    %c7_167 = arith.constant 7 : index
    %c0_168 = arith.constant 0 : index
    %c0_169 = arith.constant 0 : index
    %229 = vector.load %arg9[%c7_167, %c0_168, %c0_169] : memref<12x16x8xbf16, #tpu.memory_space<vmem>>, vector<1x16x8xbf16>
    %230 = vector.shape_cast %229 : vector<1x16x8xbf16> to vector<16x8xbf16>
    %cst_170 = arith.constant dense<0.000000e+00> : vector<16x16xf32>
    %231 = tpu.matmul %226, %228, %cst_170 {dimension_numbers = #tpu.dot_dimension_numbers<[1], [1], [0], [0], [0, 0, 1, 0], [], []>} : vector<16x8xbf16>, vector<16x8xbf16>, vector<16x16xf32> -> vector<16x16xf32>
    %cst_171 = arith.constant dense<0xFF800000> : vector<16xf32>
    %232 = vector.multi_reduction <maximumf>, %231, %cst_171 [1] : vector<16x16xf32> to vector<16xf32>
    %233 = vector.shape_cast %232 : vector<16xf32> to vector<16x1xf32>
    %234 = vector.broadcast %233 : vector<16x1xf32> to vector<16x16xf32>
    %235 = arith.subf %231, %234 : vector<16x16xf32>
    %236 = math.exp %235 : vector<16x16xf32>
    %cst_172 = arith.constant dense<0.000000e+00> : vector<16xf32>
    %237 = vector.multi_reduction <add>, %236, %cst_172 [1] : vector<16x16xf32> to vector<16xf32>
    %238 = vector.shape_cast %237 : vector<16xf32> to vector<16x1xf32>
    %239 = tpu.reciprocal %238 {approx = true} : vector<16x1xf32> -> vector<16x1xf32>
    %240 = vector.broadcast %239 : vector<16x1xf32> to vector<16x16xf32>
    %241 = arith.mulf %236, %240 : vector<16x16xf32>
    %242 = arith.truncf %241 : vector<16x16xf32> to vector<16x16xbf16>
    %cst_173 = arith.constant dense<0.000000e+00> : vector<16x8xf32>
    %243 = tpu.matmul %242, %230, %cst_173 {dimension_numbers = #tpu.dot_dimension_numbers<[1], [0], [0], [1], [0, 0, 1, 1], [], []>} : vector<16x16xbf16>, vector<16x8xbf16>, vector<16x8xf32> -> vector<16x8xf32>
    %244 = arith.truncf %243 : vector<16x8xf32> to vector<16x8xbf16>
    %c1_174 = arith.constant 1 : index
    %c0_175 = arith.constant 0 : index
    %c24_176 = arith.constant 24 : index
    %245 = vector.load %arg10[%c1_174, %c0_175, %c24_176] : memref<2x16x48xbf16, #tpu.memory_space<vmem>>, vector<1x16x8xbf16>
    %246 = vector.shape_cast %245 : vector<1x16x8xbf16> to vector<16x8xbf16>
    %247 = vector.shape_cast %244 : vector<16x8xbf16> to vector<1x16x8xbf16>
    tpu.vector_store %arg10[%c1_174, %c0_175, %c24_176], %247 {strides = array<i32>} : memref<2x16x48xbf16, #tpu.memory_space<vmem>>, vector<1x16x8xbf16>,
    %c8_177 = arith.constant 8 : index
    %c0_178 = arith.constant 0 : index
    %c0_179 = arith.constant 0 : index
    %248 = vector.load %arg7[%c8_177, %c0_178, %c0_179] : memref<12x16x8xbf16, #tpu.memory_space<vmem>>, vector<1x16x8xbf16>
    %249 = vector.shape_cast %248 : vector<1x16x8xbf16> to vector<16x8xbf16>
    %c8_180 = arith.constant 8 : index
    %c0_181 = arith.constant 0 : index
    %c0_182 = arith.constant 0 : index
    %250 = vector.load %arg8[%c8_180, %c0_181, %c0_182] : memref<12x16x8xbf16, #tpu.memory_space<vmem>>, vector<1x16x8xbf16>
    %251 = vector.shape_cast %250 : vector<1x16x8xbf16> to vector<16x8xbf16>
    %c8_183 = arith.constant 8 : index
    %c0_184 = arith.constant 0 : index
    %c0_185 = arith.constant 0 : index
    %252 = vector.load %arg9[%c8_183, %c0_184, %c0_185] : memref<12x16x8xbf16, #tpu.memory_space<vmem>>, vector<1x16x8xbf16>
    %253 = vector.shape_cast %252 : vector<1x16x8xbf16> to vector<16x8xbf16>
    %cst_186 = arith.constant dense<0.000000e+00> : vector<16x16xf32>
    %254 = tpu.matmul %249, %251, %cst_186 {dimension_numbers = #tpu.dot_dimension_numbers<[1], [1], [0], [0], [0, 0, 1, 0], [], []>} : vector<16x8xbf16>, vector<16x8xbf16>, vector<16x16xf32> -> vector<16x16xf32>
    %cst_187 = arith.constant dense<0xFF800000> : vector<16xf32>
    %255 = vector.multi_reduction <maximumf>, %254, %cst_187 [1] : vector<16x16xf32> to vector<16xf32>
    %256 = vector.shape_cast %255 : vector<16xf32> to vector<16x1xf32>
    %257 = vector.broadcast %256 : vector<16x1xf32> to vector<16x16xf32>
    %258 = arith.subf %254, %257 : vector<16x16xf32>
    %259 = math.exp %258 : vector<16x16xf32>
    %cst_188 = arith.constant dense<0.000000e+00> : vector<16xf32>
    %260 = vector.multi_reduction <add>, %259, %cst_188 [1] : vector<16x16xf32> to vector<16xf32>
    %261 = vector.shape_cast %260 : vector<16xf32> to vector<16x1xf32>
    %262 = tpu.reciprocal %261 {approx = true} : vector<16x1xf32> -> vector<16x1xf32>
    %263 = vector.broadcast %262 : vector<16x1xf32> to vector<16x16xf32>
    %264 = arith.mulf %259, %263 : vector<16x16xf32>
    %265 = arith.truncf %264 : vector<16x16xf32> to vector<16x16xbf16>
    %cst_189 = arith.constant dense<0.000000e+00> : vector<16x8xf32>
    %266 = tpu.matmul %265, %253, %cst_189 {dimension_numbers = #tpu.dot_dimension_numbers<[1], [0], [0], [1], [0, 0, 1, 1], [], []>} : vector<16x16xbf16>, vector<16x8xbf16>, vector<16x8xf32> -> vector<16x8xf32>
    %267 = arith.truncf %266 : vector<16x8xf32> to vector<16x8xbf16>
    %c0_190 = arith.constant 0 : index
    %c0_191 = arith.constant 0 : index
    %c32 = arith.constant 32 : index
    %268 = vector.load %arg10[%c0_190, %c0_191, %c32] : memref<2x16x48xbf16, #tpu.memory_space<vmem>>, vector<1x16x8xbf16>
    %269 = vector.shape_cast %268 : vector<1x16x8xbf16> to vector<16x8xbf16>
    %270 = vector.shape_cast %267 : vector<16x8xbf16> to vector<1x16x8xbf16>
    tpu.vector_store %arg10[%c0_190, %c0_191, %c32], %270 {strides = array<i32>} : memref<2x16x48xbf16, #tpu.memory_space<vmem>>, vector<1x16x8xbf16>,
    %c9 = arith.constant 9 : index
    %c0_192 = arith.constant 0 : index
    %c0_193 = arith.constant 0 : index
    %271 = vector.load %arg7[%c9, %c0_192, %c0_193] : memref<12x16x8xbf16, #tpu.memory_space<vmem>>, vector<1x16x8xbf16>
    %272 = vector.shape_cast %271 : vector<1x16x8xbf16> to vector<16x8xbf16>
    %c9_194 = arith.constant 9 : index
    %c0_195 = arith.constant 0 : index
    %c0_196 = arith.constant 0 : index
    %273 = vector.load %arg8[%c9_194, %c0_195, %c0_196] : memref<12x16x8xbf16, #tpu.memory_space<vmem>>, vector<1x16x8xbf16>
    %274 = vector.shape_cast %273 : vector<1x16x8xbf16> to vector<16x8xbf16>
    %c9_197 = arith.constant 9 : index
    %c0_198 = arith.constant 0 : index
    %c0_199 = arith.constant 0 : index
    %275 = vector.load %arg9[%c9_197, %c0_198, %c0_199] : memref<12x16x8xbf16, #tpu.memory_space<vmem>>, vector<1x16x8xbf16>
    %276 = vector.shape_cast %275 : vector<1x16x8xbf16> to vector<16x8xbf16>
    %cst_200 = arith.constant dense<0.000000e+00> : vector<16x16xf32>
    %277 = tpu.matmul %272, %274, %cst_200 {dimension_numbers = #tpu.dot_dimension_numbers<[1], [1], [0], [0], [0, 0, 1, 0], [], []>} : vector<16x8xbf16>, vector<16x8xbf16>, vector<16x16xf32> -> vector<16x16xf32>
    %cst_201 = arith.constant dense<0xFF800000> : vector<16xf32>
    %278 = vector.multi_reduction <maximumf>, %277, %cst_201 [1] : vector<16x16xf32> to vector<16xf32>
    %279 = vector.shape_cast %278 : vector<16xf32> to vector<16x1xf32>
    %280 = vector.broadcast %279 : vector<16x1xf32> to vector<16x16xf32>
    %281 = arith.subf %277, %280 : vector<16x16xf32>
    %282 = math.exp %281 : vector<16x16xf32>
    %cst_202 = arith.constant dense<0.000000e+00> : vector<16xf32>
    %283 = vector.multi_reduction <add>, %282, %cst_202 [1] : vector<16x16xf32> to vector<16xf32>
    %284 = vector.shape_cast %283 : vector<16xf32> to vector<16x1xf32>
    %285 = tpu.reciprocal %284 {approx = true} : vector<16x1xf32> -> vector<16x1xf32>
    %286 = vector.broadcast %285 : vector<16x1xf32> to vector<16x16xf32>
    %287 = arith.mulf %282, %286 : vector<16x16xf32>
    %288 = arith.truncf %287 : vector<16x16xf32> to vector<16x16xbf16>
    %cst_203 = arith.constant dense<0.000000e+00> : vector<16x8xf32>
    %289 = tpu.matmul %288, %276, %cst_203 {dimension_numbers = #tpu.dot_dimension_numbers<[1], [0], [0], [1], [0, 0, 1, 1], [], []>} : vector<16x16xbf16>, vector<16x8xbf16>, vector<16x8xf32> -> vector<16x8xf32>
    %290 = arith.truncf %289 : vector<16x8xf32> to vector<16x8xbf16>
    %c1_204 = arith.constant 1 : index
    %c0_205 = arith.constant 0 : index
    %c32_206 = arith.constant 32 : index
    %291 = vector.load %arg10[%c1_204, %c0_205, %c32_206] : memref<2x16x48xbf16, #tpu.memory_space<vmem>>, vector<1x16x8xbf16>
    %292 = vector.shape_cast %291 : vector<1x16x8xbf16> to vector<16x8xbf16>
    %293 = vector.shape_cast %290 : vector<16x8xbf16> to vector<1x16x8xbf16>
    tpu.vector_store %arg10[%c1_204, %c0_205, %c32_206], %293 {strides = array<i32>} : memref<2x16x48xbf16, #tpu.memory_space<vmem>>, vector<1x16x8xbf16>,
    %c10_207 = arith.constant 10 : index
    %c0_208 = arith.constant 0 : index
    %c0_209 = arith.constant 0 : index
    %294 = vector.load %arg7[%c10_207, %c0_208, %c0_209] : memref<12x16x8xbf16, #tpu.memory_space<vmem>>, vector<1x16x8xbf16>
    %295 = vector.shape_cast %294 : vector<1x16x8xbf16> to vector<16x8xbf16>
    %c10_210 = arith.constant 10 : index
    %c0_211 = arith.constant 0 : index
    %c0_212 = arith.constant 0 : index
    %296 = vector.load %arg8[%c10_210, %c0_211, %c0_212] : memref<12x16x8xbf16, #tpu.memory_space<vmem>>, vector<1x16x8xbf16>
    %297 = vector.shape_cast %296 : vector<1x16x8xbf16> to vector<16x8xbf16>
    %c10_213 = arith.constant 10 : index
    %c0_214 = arith.constant 0 : index
    %c0_215 = arith.constant 0 : index
    %298 = vector.load %arg9[%c10_213, %c0_214, %c0_215] : memref<12x16x8xbf16, #tpu.memory_space<vmem>>, vector<1x16x8xbf16>
    %299 = vector.shape_cast %298 : vector<1x16x8xbf16> to vector<16x8xbf16>
    %cst_216 = arith.constant dense<0.000000e+00> : vector<16x16xf32>
    %300 = tpu.matmul %295, %297, %cst_216 {dimension_numbers = #tpu.dot_dimension_numbers<[1], [1], [0], [0], [0, 0, 1, 0], [], []>} : vector<16x8xbf16>, vector<16x8xbf16>, vector<16x16xf32> -> vector<16x16xf32>
    %cst_217 = arith.constant dense<0xFF800000> : vector<16xf32>
    %301 = vector.multi_reduction <maximumf>, %300, %cst_217 [1] : vector<16x16xf32> to vector<16xf32>
    %302 = vector.shape_cast %301 : vector<16xf32> to vector<16x1xf32>
    %303 = vector.broadcast %302 : vector<16x1xf32> to vector<16x16xf32>
    %304 = arith.subf %300, %303 : vector<16x16xf32>
    %305 = math.exp %304 : vector<16x16xf32>
    %cst_218 = arith.constant dense<0.000000e+00> : vector<16xf32>
    %306 = vector.multi_reduction <add>, %305, %cst_218 [1] : vector<16x16xf32> to vector<16xf32>
    %307 = vector.shape_cast %306 : vector<16xf32> to vector<16x1xf32>
    %308 = tpu.reciprocal %307 {approx = true} : vector<16x1xf32> -> vector<16x1xf32>
    %309 = vector.broadcast %308 : vector<16x1xf32> to vector<16x16xf32>
    %310 = arith.mulf %305, %309 : vector<16x16xf32>
    %311 = arith.truncf %310 : vector<16x16xf32> to vector<16x16xbf16>
    %cst_219 = arith.constant dense<0.000000e+00> : vector<16x8xf32>
    %312 = tpu.matmul %311, %299, %cst_219 {dimension_numbers = #tpu.dot_dimension_numbers<[1], [0], [0], [1], [0, 0, 1, 1], [], []>} : vector<16x16xbf16>, vector<16x8xbf16>, vector<16x8xf32> -> vector<16x8xf32>
    %313 = arith.truncf %312 : vector<16x8xf32> to vector<16x8xbf16>
    %c0_220 = arith.constant 0 : index
    %c0_221 = arith.constant 0 : index
    %c40 = arith.constant 40 : index
    %314 = vector.load %arg10[%c0_220, %c0_221, %c40] : memref<2x16x48xbf16, #tpu.memory_space<vmem>>, vector<1x16x8xbf16>
    %315 = vector.shape_cast %314 : vector<1x16x8xbf16> to vector<16x8xbf16>
    %316 = vector.shape_cast %313 : vector<16x8xbf16> to vector<1x16x8xbf16>
    tpu.vector_store %arg10[%c0_220, %c0_221, %c40], %316 {strides = array<i32>} : memref<2x16x48xbf16, #tpu.memory_space<vmem>>, vector<1x16x8xbf16>,
    %c11 = arith.constant 11 : index
    %c0_222 = arith.constant 0 : index
    %c0_223 = arith.constant 0 : index
    %317 = vector.load %arg7[%c11, %c0_222, %c0_223] : memref<12x16x8xbf16, #tpu.memory_space<vmem>>, vector<1x16x8xbf16>
    %318 = vector.shape_cast %317 : vector<1x16x8xbf16> to vector<16x8xbf16>
    %c11_224 = arith.constant 11 : index
    %c0_225 = arith.constant 0 : index
    %c0_226 = arith.constant 0 : index
    %319 = vector.load %arg8[%c11_224, %c0_225, %c0_226] : memref<12x16x8xbf16, #tpu.memory_space<vmem>>, vector<1x16x8xbf16>
    %320 = vector.shape_cast %319 : vector<1x16x8xbf16> to vector<16x8xbf16>
    %c11_227 = arith.constant 11 : index
    %c0_228 = arith.constant 0 : index
    %c0_229 = arith.constant 0 : index
    %321 = vector.load %arg9[%c11_227, %c0_228, %c0_229] : memref<12x16x8xbf16, #tpu.memory_space<vmem>>, vector<1x16x8xbf16>
    %322 = vector.shape_cast %321 : vector<1x16x8xbf16> to vector<16x8xbf16>
    %cst_230 = arith.constant dense<0.000000e+00> : vector<16x16xf32>
    %323 = tpu.matmul %318, %320, %cst_230 {dimension_numbers = #tpu.dot_dimension_numbers<[1], [1], [0], [0], [0, 0, 1, 0], [], []>} : vector<16x8xbf16>, vector<16x8xbf16>, vector<16x16xf32> -> vector<16x16xf32>
    %cst_231 = arith.constant dense<0xFF800000> : vector<16xf32>
    %324 = vector.multi_reduction <maximumf>, %323, %cst_231 [1] : vector<16x16xf32> to vector<16xf32>
    %325 = vector.shape_cast %324 : vector<16xf32> to vector<16x1xf32>
    %326 = vector.broadcast %325 : vector<16x1xf32> to vector<16x16xf32>
    %327 = arith.subf %323, %326 : vector<16x16xf32>
    %328 = math.exp %327 : vector<16x16xf32>
    %cst_232 = arith.constant dense<0.000000e+00> : vector<16xf32>
    %329 = vector.multi_reduction <add>, %328, %cst_232 [1] : vector<16x16xf32> to vector<16xf32>
    %330 = vector.shape_cast %329 : vector<16xf32> to vector<16x1xf32>
    %331 = tpu.reciprocal %330 {approx = true} : vector<16x1xf32> -> vector<16x1xf32>
    %332 = vector.broadcast %331 : vector<16x1xf32> to vector<16x16xf32>
    %333 = arith.mulf %328, %332 : vector<16x16xf32>
    %334 = arith.truncf %333 : vector<16x16xf32> to vector<16x16xbf16>
    %cst_233 = arith.constant dense<0.000000e+00> : vector<16x8xf32>
    %335 = tpu.matmul %334, %322, %cst_233 {dimension_numbers = #tpu.dot_dimension_numbers<[1], [0], [0], [1], [0, 0, 1, 1], [], []>} : vector<16x16xbf16>, vector<16x8xbf16>, vector<16x8xf32> -> vector<16x8xf32>
    %336 = arith.truncf %335 : vector<16x8xf32> to vector<16x8xbf16>
    %c1_234 = arith.constant 1 : index
    %c0_235 = arith.constant 0 : index
    %c40_236 = arith.constant 40 : index
    %337 = vector.load %arg10[%c1_234, %c0_235, %c40_236] : memref<2x16x48xbf16, #tpu.memory_space<vmem>>, vector<1x16x8xbf16>
    %338 = vector.shape_cast %337 : vector<1x16x8xbf16> to vector<16x8xbf16>
    %339 = vector.shape_cast %336 : vector<16x8xbf16> to vector<1x16x8xbf16>
    tpu.vector_store %arg10[%c1_234, %c0_235, %c40_236], %339 {strides = array<i32>} : memref<2x16x48xbf16, #tpu.memory_space<vmem>>, vector<1x16x8xbf16>,
    %c0_237 = arith.constant 0 : index
    %c0_238 = arith.constant 0 : index
    %c0_239 = arith.constant 0 : index
    %340 = vector.load %arg10[%c0_237, %c0_238, %c0_239] : memref<2x16x48xbf16, #tpu.memory_space<vmem>>, vector<2x16x48xbf16>
    %341 = vector.shape_cast %340 : vector<2x16x48xbf16> to vector<32x48xbf16>
    %c0_240 = arith.constant 0 : index
    %c0_241 = arith.constant 0 : index
    %342 = vector.load %arg4[%c0_240, %c0_241] : memref<48x48xf32, #tpu.memory_space<vmem>>, vector<48x48xf32>
    %343 = arith.truncf %342 : vector<48x48xf32> to vector<48x48xbf16>
    %cst_242 = arith.constant dense<0.000000e+00> : vector<32x48xf32>
    %344 = tpu.matmul %341, %343, %cst_242 {dimension_numbers = #tpu.dot_dimension_numbers<[1], [0], [0], [1], [0, 0, 1, 1], [], []>} : vector<32x48xbf16>, vector<48x48xbf16>, vector<32x48xf32> -> vector<32x48xf32>
    %c0_243 = arith.constant 0 : index
    %c0_244 = arith.constant 0 : index
    %345 = vector.load %arg5[%c0_243, %c0_244] : memref<1x48xf32, #tpu.memory_space<vmem>>, vector<1x48xf32>
    %346 = vector.broadcast %345 : vector<1x48xf32> to vector<32x48xf32>
    %347 = arith.addf %344, %346 : vector<32x48xf32>
    %348 = vector.shape_cast %347 : vector<32x48xf32> to vector<2x16x48xf32>
    %c0_245 = arith.constant 0 : index
    %c0_246 = arith.constant 0 : index
    %c0_247 = arith.constant 0 : index
    %349 = vector.load %arg6[%c0_245, %c0_246, %c0_247] : memref<2x16x48xf32, #tpu.memory_space<vmem>>, vector<2x16x48xf32>
    tpu.vector_store %arg6[%c0_245, %c0_246, %c0_247], %348 {strides = array<i32>} : memref<2x16x48xf32, #tpu.memory_space<vmem>>, vector<2x16x48xf32>,
    return
  }
  func.func @transform_0(%arg0: i32) -> (i32, i32, i32) {
    %c0_i32 = arith.constant 0 : i32
    %c0_i32_0 = arith.constant 0 : i32
    %c0_i32_1 = arith.constant 0 : i32
    return %arg0, %c0_i32, %c0_i32_0 : i32, i32, i32
  }
  func.func @transform_1(%arg0: i32) -> (i32, i32) {
    %c0_i32 = arith.constant 0 : i32
    %c0_i32_0 = arith.constant 0 : i32
    %c0_i32_1 = arith.constant 0 : i32
    return %c0_i32, %c0_i32_0 : i32, i32
  }
  func.func @transform_2(%arg0: i32) -> (i32, i32) {
    %c0_i32 = arith.constant 0 : i32
    %c0_i32_0 = arith.constant 0 : i32
    %c0_i32_1 = arith.constant 0 : i32
    return %c0_i32, %c0_i32_0 : i32, i32
  }
  func.func @transform_3(%arg0: i32) -> (i32, i32) {
    %c0_i32 = arith.constant 0 : i32
    %c0_i32_0 = arith.constant 0 : i32
    %c0_i32_1 = arith.constant 0 : i32
    return %c0_i32, %c0_i32_0 : i32, i32
  }
  func.func @transform_4(%arg0: i32) -> (i32, i32) {
    %c0_i32 = arith.constant 0 : i32
    %c0_i32_0 = arith.constant 0 : i32
    %c0_i32_1 = arith.constant 0 : i32
    return %c0_i32, %c0_i32_0 : i32, i32
  }
  func.func @transform_5(%arg0: i32) -> (i32, i32, i32) {
    %c0_i32 = arith.constant 0 : i32
    %c0_i32_0 = arith.constant 0 : i32
    %c0_i32_1 = arith.constant 0 : i32
    return %arg0, %c0_i32, %c0_i32_0 : i32, i32, i32
  }
}

module attributes {stable_mosaic.version = 11 : i64} {
  func.func @_fused_attention_kernel(%arg0: i32, %arg1: memref<2x16x48xf32, #tpu.memory_space<vmem>>, %arg2: memref<48x144xf32, #tpu.memory_space<vmem>>, %arg3: memref<1x144xf32, #tpu.memory_space<vmem>>, %arg4: memref<48x48xf32, #tpu.memory_space<vmem>>, %arg5: memref<1x48xf32, #tpu.memory_space<vmem>>, %arg6: memref<2x16x48xf32, #tpu.memory_space<vmem>>, %arg7: memref<12x16x8xbf16, #tpu.memory_space<vmem>>, %arg8: memref<12x16x8xbf16, #tpu.memory_space<vmem>>, %arg9: memref<12x16x8xbf16, #tpu.memory_space<vmem>>, %arg10: memref<2x16x48xbf16, #tpu.memory_space<vmem>>) attributes {dimension_semantics = [#tpu.dimension_semantics<parallel>], iteration_bounds = array<i64: 1>, scalar_prefetch = 0 : i64, scratch_operands = 4 : i64, tpu.core_type = #tpu.core_type<tc>, window_params = [{transform_indices = @transform_0, window_bounds = array<i64: 2, 16, 48>}, {pipeline_mode = #tpu.pipeline_mode<synchronous>, transform_indices = @transform_1, window_bounds = array<i64: 48, 144>}, {pipeline_mode = #tpu.pipeline_mode<synchronous>, transform_indices = @transform_2, window_bounds = array<i64: 1, 144>}, {pipeline_mode = #tpu.pipeline_mode<synchronous>, transform_indices = @transform_3, window_bounds = array<i64: 48, 48>}, {pipeline_mode = #tpu.pipeline_mode<synchronous>, transform_indices = @transform_4, window_bounds = array<i64: 1, 48>}, {transform_indices = @transform_5, window_bounds = array<i64: 2, 16, 48>}]} {
    %c0 = arith.constant 0 : index
    %c0_0 = arith.constant 0 : index
    %c0_1 = arith.constant 0 : index
    %0 = vector.load %arg1[%c0, %c0_0, %c0_1] : memref<2x16x48xf32, #tpu.memory_space<vmem>>, vector<2x16x48xf32>
    %1 = vector.shape_cast %0 : vector<2x16x48xf32> to vector<32x48xf32>
    %2 = arith.truncf %1 : vector<32x48xf32> to vector<32x48xbf16>
    %c0_2 = arith.constant 0 : index
    %c0_3 = arith.constant 0 : index
    %3 = vector.load %arg2[%c0_2, %c0_3] : memref<48x144xf32, #tpu.memory_space<vmem>>, vector<48x144xf32>
    %4 = arith.truncf %3 : vector<48x144xf32> to vector<48x144xbf16>
    %cst = arith.constant dense<0.000000e+00> : vector<32x144xf32>
    %5 = tpu.matmul %2, %4, %cst {dimension_numbers = #tpu.dot_dimension_numbers<[1], [0], [0], [1], [0, 0, 1, 1], [], []>} : vector<32x48xbf16>, vector<48x144xbf16>, vector<32x144xf32> -> vector<32x144xf32>
    %c0_4 = arith.constant 0 : index
    %c0_5 = arith.constant 0 : index
    %6 = vector.load %arg3[%c0_4, %c0_5] : memref<1x144xf32, #tpu.memory_space<vmem>>, vector<1x144xf32>
    %7 = vector.broadcast %6 : vector<1x144xf32> to vector<32x144xf32>
    %8 = arith.addf %5, %7 : vector<32x144xf32>
    %9 = vector.shape_cast %8 : vector<32x144xf32> to vector<2x16x144xf32>
    %10 = vector.extract_strided_slice %9 {offsets = [0, 0, 0], sizes = [2, 16, 8], strides = [1, 1, 1]} : vector<2x16x144xf32> to vector<2x16x8xf32>
    %11 = arith.truncf %10 : vector<2x16x8xf32> to vector<2x16x8xbf16>
    %c0_6 = arith.constant 0 : index
    %c0_7 = arith.constant 0 : index
    %c0_8 = arith.constant 0 : index
    %12 = vector.load %arg7[%c0_6, %c0_7, %c0_8] : memref<12x16x8xbf16, #tpu.memory_space<vmem>>, vector<2x16x8xbf16>
    tpu.vector_store %arg7[%c0_6, %c0_7, %c0_8], %11 {strides = array<i32>} : memref<12x16x8xbf16, #tpu.memory_space<vmem>>, vector<2x16x8xbf16>,
    %13 = vector.extract_strided_slice %9 {offsets = [0, 0, 48], sizes = [2, 16, 8], strides = [1, 1, 1]} : vector<2x16x144xf32> to vector<2x16x8xf32>
    %14 = arith.truncf %13 : vector<2x16x8xf32> to vector<2x16x8xbf16>
    %c0_9 = arith.constant 0 : index
    %c0_10 = arith.constant 0 : index
    %c0_11 = arith.constant 0 : index
    %15 = vector.load %arg8[%c0_9, %c0_10, %c0_11] : memref<12x16x8xbf16, #tpu.memory_space<vmem>>, vector<2x16x8xbf16>
    tpu.vector_store %arg8[%c0_9, %c0_10, %c0_11], %14 {strides = array<i32>} : memref<12x16x8xbf16, #tpu.memory_space<vmem>>, vector<2x16x8xbf16>,
    %16 = vector.extract_strided_slice %9 {offsets = [0, 0, 96], sizes = [2, 16, 8], strides = [1, 1, 1]} : vector<2x16x144xf32> to vector<2x16x8xf32>
    %17 = arith.truncf %16 : vector<2x16x8xf32> to vector<2x16x8xbf16>
    %c0_12 = arith.constant 0 : index
    %c0_13 = arith.constant 0 : index
    %c0_14 = arith.constant 0 : index
    %18 = vector.load %arg9[%c0_12, %c0_13, %c0_14] : memref<12x16x8xbf16, #tpu.memory_space<vmem>>, vector<2x16x8xbf16>
    tpu.vector_store %arg9[%c0_12, %c0_13, %c0_14], %17 {strides = array<i32>} : memref<12x16x8xbf16, #tpu.memory_space<vmem>>, vector<2x16x8xbf16>,
    %19 = vector.extract_strided_slice %9 {offsets = [0, 0, 8], sizes = [2, 16, 8], strides = [1, 1, 1]} : vector<2x16x144xf32> to vector<2x16x8xf32>
    %20 = arith.truncf %19 : vector<2x16x8xf32> to vector<2x16x8xbf16>
    %c2 = arith.constant 2 : index
    %c0_15 = arith.constant 0 : index
    %c0_16 = arith.constant 0 : index
    %21 = vector.load %arg7[%c2, %c0_15, %c0_16] : memref<12x16x8xbf16, #tpu.memory_space<vmem>>, vector<2x16x8xbf16>
    tpu.vector_store %arg7[%c2, %c0_15, %c0_16], %20 {strides = array<i32>} : memref<12x16x8xbf16, #tpu.memory_space<vmem>>, vector<2x16x8xbf16>,
    %22 = vector.extract_strided_slice %9 {offsets = [0, 0, 56], sizes = [2, 16, 8], strides = [1, 1, 1]} : vector<2x16x144xf32> to vector<2x16x8xf32>
    %23 = arith.truncf %22 : vector<2x16x8xf32> to vector<2x16x8xbf16>
    %c2_17 = arith.constant 2 : index
    %c0_18 = arith.constant 0 : index
    %c0_19 = arith.constant 0 : index
    %24 = vector.load %arg8[%c2_17, %c0_18, %c0_19] : memref<12x16x8xbf16, #tpu.memory_space<vmem>>, vector<2x16x8xbf16>
    tpu.vector_store %arg8[%c2_17, %c0_18, %c0_19], %23 {strides = array<i32>} : memref<12x16x8xbf16, #tpu.memory_space<vmem>>, vector<2x16x8xbf16>,
    %25 = vector.extract_strided_slice %9 {offsets = [0, 0, 104], sizes = [2, 16, 8], strides = [1, 1, 1]} : vector<2x16x144xf32> to vector<2x16x8xf32>
    %26 = arith.truncf %25 : vector<2x16x8xf32> to vector<2x16x8xbf16>
    %c2_20 = arith.constant 2 : index
    %c0_21 = arith.constant 0 : index
    %c0_22 = arith.constant 0 : index
    %27 = vector.load %arg9[%c2_20, %c0_21, %c0_22] : memref<12x16x8xbf16, #tpu.memory_space<vmem>>, vector<2x16x8xbf16>
    tpu.vector_store %arg9[%c2_20, %c0_21, %c0_22], %26 {strides = array<i32>} : memref<12x16x8xbf16, #tpu.memory_space<vmem>>, vector<2x16x8xbf16>,
    %28 = vector.extract_strided_slice %9 {offsets = [0, 0, 16], sizes = [2, 16, 8], strides = [1, 1, 1]} : vector<2x16x144xf32> to vector<2x16x8xf32>
    %29 = arith.truncf %28 : vector<2x16x8xf32> to vector<2x16x8xbf16>
    %c4 = arith.constant 4 : index
    %c0_23 = arith.constant 0 : index
    %c0_24 = arith.constant 0 : index
    %30 = vector.load %arg7[%c4, %c0_23, %c0_24] : memref<12x16x8xbf16, #tpu.memory_space<vmem>>, vector<2x16x8xbf16>
    tpu.vector_store %arg7[%c4, %c0_23, %c0_24], %29 {strides = array<i32>} : memref<12x16x8xbf16, #tpu.memory_space<vmem>>, vector<2x16x8xbf16>,
    %31 = vector.extract_strided_slice %9 {offsets = [0, 0, 64], sizes = [2, 16, 8], strides = [1, 1, 1]} : vector<2x16x144xf32> to vector<2x16x8xf32>
    %32 = arith.truncf %31 : vector<2x16x8xf32> to vector<2x16x8xbf16>
    %c4_25 = arith.constant 4 : index
    %c0_26 = arith.constant 0 : index
    %c0_27 = arith.constant 0 : index
    %33 = vector.load %arg8[%c4_25, %c0_26, %c0_27] : memref<12x16x8xbf16, #tpu.memory_space<vmem>>, vector<2x16x8xbf16>
    tpu.vector_store %arg8[%c4_25, %c0_26, %c0_27], %32 {strides = array<i32>} : memref<12x16x8xbf16, #tpu.memory_space<vmem>>, vector<2x16x8xbf16>,
    %34 = vector.extract_strided_slice %9 {offsets = [0, 0, 112], sizes = [2, 16, 8], strides = [1, 1, 1]} : vector<2x16x144xf32> to vector<2x16x8xf32>
    %35 = arith.truncf %34 : vector<2x16x8xf32> to vector<2x16x8xbf16>
    %c4_28 = arith.constant 4 : index
    %c0_29 = arith.constant 0 : index
    %c0_30 = arith.constant 0 : index
    %36 = vector.load %arg9[%c4_28, %c0_29, %c0_30] : memref<12x16x8xbf16, #tpu.memory_space<vmem>>, vector<2x16x8xbf16>
    tpu.vector_store %arg9[%c4_28, %c0_29, %c0_30], %35 {strides = array<i32>} : memref<12x16x8xbf16, #tpu.memory_space<vmem>>, vector<2x16x8xbf16>,
    %37 = vector.extract_strided_slice %9 {offsets = [0, 0, 24], sizes = [2, 16, 8], strides = [1, 1, 1]} : vector<2x16x144xf32> to vector<2x16x8xf32>
    %38 = arith.truncf %37 : vector<2x16x8xf32> to vector<2x16x8xbf16>
    %c6 = arith.constant 6 : index
    %c0_31 = arith.constant 0 : index
    %c0_32 = arith.constant 0 : index
    %39 = vector.load %arg7[%c6, %c0_31, %c0_32] : memref<12x16x8xbf16, #tpu.memory_space<vmem>>, vector<2x16x8xbf16>
    tpu.vector_store %arg7[%c6, %c0_31, %c0_32], %38 {strides = array<i32>} : memref<12x16x8xbf16, #tpu.memory_space<vmem>>, vector<2x16x8xbf16>,
    %40 = vector.extract_strided_slice %9 {offsets = [0, 0, 72], sizes = [2, 16, 8], strides = [1, 1, 1]} : vector<2x16x144xf32> to vector<2x16x8xf32>
    %41 = arith.truncf %40 : vector<2x16x8xf32> to vector<2x16x8xbf16>
    %c6_33 = arith.constant 6 : index
    %c0_34 = arith.constant 0 : index
    %c0_35 = arith.constant 0 : index
    %42 = vector.load %arg8[%c6_33, %c0_34, %c0_35] : memref<12x16x8xbf16, #tpu.memory_space<vmem>>, vector<2x16x8xbf16>
    tpu.vector_store %arg8[%c6_33, %c0_34, %c0_35], %41 {strides = array<i32>} : memref<12x16x8xbf16, #tpu.memory_space<vmem>>, vector<2x16x8xbf16>,
    %43 = vector.extract_strided_slice %9 {offsets = [0, 0, 120], sizes = [2, 16, 8], strides = [1, 1, 1]} : vector<2x16x144xf32> to vector<2x16x8xf32>
    %44 = arith.truncf %43 : vector<2x16x8xf32> to vector<2x16x8xbf16>
    %c6_36 = arith.constant 6 : index
    %c0_37 = arith.constant 0 : index
    %c0_38 = arith.constant 0 : index
    %45 = vector.load %arg9[%c6_36, %c0_37, %c0_38] : memref<12x16x8xbf16, #tpu.memory_space<vmem>>, vector<2x16x8xbf16>
    tpu.vector_store %arg9[%c6_36, %c0_37, %c0_38], %44 {strides = array<i32>} : memref<12x16x8xbf16, #tpu.memory_space<vmem>>, vector<2x16x8xbf16>,
    %46 = vector.extract_strided_slice %9 {offsets = [0, 0, 32], sizes = [2, 16, 8], strides = [1, 1, 1]} : vector<2x16x144xf32> to vector<2x16x8xf32>
    %47 = arith.truncf %46 : vector<2x16x8xf32> to vector<2x16x8xbf16>
    %c8 = arith.constant 8 : index
    %c0_39 = arith.constant 0 : index
    %c0_40 = arith.constant 0 : index
    %48 = vector.load %arg7[%c8, %c0_39, %c0_40] : memref<12x16x8xbf16, #tpu.memory_space<vmem>>, vector<2x16x8xbf16>
    tpu.vector_store %arg7[%c8, %c0_39, %c0_40], %47 {strides = array<i32>} : memref<12x16x8xbf16, #tpu.memory_space<vmem>>, vector<2x16x8xbf16>,
    %49 = vector.extract_strided_slice %9 {offsets = [0, 0, 80], sizes = [2, 16, 8], strides = [1, 1, 1]} : vector<2x16x144xf32> to vector<2x16x8xf32>
    %50 = arith.truncf %49 : vector<2x16x8xf32> to vector<2x16x8xbf16>
    %c8_41 = arith.constant 8 : index
    %c0_42 = arith.constant 0 : index
    %c0_43 = arith.constant 0 : index
    %51 = vector.load %arg8[%c8_41, %c0_42, %c0_43] : memref<12x16x8xbf16, #tpu.memory_space<vmem>>, vector<2x16x8xbf16>
    tpu.vector_store %arg8[%c8_41, %c0_42, %c0_43], %50 {strides = array<i32>} : memref<12x16x8xbf16, #tpu.memory_space<vmem>>, vector<2x16x8xbf16>,
    %52 = vector.extract_strided_slice %9 {offsets = [0, 0, 128], sizes = [2, 16, 8], strides = [1, 1, 1]} : vector<2x16x144xf32> to vector<2x16x8xf32>
    %53 = arith.truncf %52 : vector<2x16x8xf32> to vector<2x16x8xbf16>
    %c8_44 = arith.constant 8 : index
    %c0_45 = arith.constant 0 : index
    %c0_46 = arith.constant 0 : index
    %54 = vector.load %arg9[%c8_44, %c0_45, %c0_46] : memref<12x16x8xbf16, #tpu.memory_space<vmem>>, vector<2x16x8xbf16>
    tpu.vector_store %arg9[%c8_44, %c0_45, %c0_46], %53 {strides = array<i32>} : memref<12x16x8xbf16, #tpu.memory_space<vmem>>, vector<2x16x8xbf16>,
    %55 = vector.extract_strided_slice %9 {offsets = [0, 0, 40], sizes = [2, 16, 8], strides = [1, 1, 1]} : vector<2x16x144xf32> to vector<2x16x8xf32>
    %56 = arith.truncf %55 : vector<2x16x8xf32> to vector<2x16x8xbf16>
    %c10 = arith.constant 10 : index
    %c0_47 = arith.constant 0 : index
    %c0_48 = arith.constant 0 : index
    %57 = vector.load %arg7[%c10, %c0_47, %c0_48] : memref<12x16x8xbf16, #tpu.memory_space<vmem>>, vector<2x16x8xbf16>
    tpu.vector_store %arg7[%c10, %c0_47, %c0_48], %56 {strides = array<i32>} : memref<12x16x8xbf16, #tpu.memory_space<vmem>>, vector<2x16x8xbf16>,
    %58 = vector.extract_strided_slice %9 {offsets = [0, 0, 88], sizes = [2, 16, 8], strides = [1, 1, 1]} : vector<2x16x144xf32> to vector<2x16x8xf32>
    %59 = arith.truncf %58 : vector<2x16x8xf32> to vector<2x16x8xbf16>
    %c10_49 = arith.constant 10 : index
    %c0_50 = arith.constant 0 : index
    %c0_51 = arith.constant 0 : index
    %60 = vector.load %arg8[%c10_49, %c0_50, %c0_51] : memref<12x16x8xbf16, #tpu.memory_space<vmem>>, vector<2x16x8xbf16>
    tpu.vector_store %arg8[%c10_49, %c0_50, %c0_51], %59 {strides = array<i32>} : memref<12x16x8xbf16, #tpu.memory_space<vmem>>, vector<2x16x8xbf16>,
    %61 = vector.extract_strided_slice %9 {offsets = [0, 0, 136], sizes = [2, 16, 8], strides = [1, 1, 1]} : vector<2x16x144xf32> to vector<2x16x8xf32>
    %62 = arith.truncf %61 : vector<2x16x8xf32> to vector<2x16x8xbf16>
    %c10_52 = arith.constant 10 : index
    %c0_53 = arith.constant 0 : index
    %c0_54 = arith.constant 0 : index
    %63 = vector.load %arg9[%c10_52, %c0_53, %c0_54] : memref<12x16x8xbf16, #tpu.memory_space<vmem>>, vector<2x16x8xbf16>
    tpu.vector_store %arg9[%c10_52, %c0_53, %c0_54], %62 {strides = array<i32>} : memref<12x16x8xbf16, #tpu.memory_space<vmem>>, vector<2x16x8xbf16>,
    %c0_55 = arith.constant 0 : index
    %c0_56 = arith.constant 0 : index
    %c0_57 = arith.constant 0 : index
    %64 = vector.load %arg7[%c0_55, %c0_56, %c0_57] : memref<12x16x8xbf16, #tpu.memory_space<vmem>>, vector<1x16x8xbf16>
    %65 = vector.shape_cast %64 : vector<1x16x8xbf16> to vector<16x8xbf16>
    %c0_58 = arith.constant 0 : index
    %c0_59 = arith.constant 0 : index
    %c0_60 = arith.constant 0 : index
    %66 = vector.load %arg8[%c0_58, %c0_59, %c0_60] : memref<12x16x8xbf16, #tpu.memory_space<vmem>>, vector<1x16x8xbf16>
    %67 = vector.shape_cast %66 : vector<1x16x8xbf16> to vector<16x8xbf16>
    %c0_61 = arith.constant 0 : index
    %c0_62 = arith.constant 0 : index
    %c0_63 = arith.constant 0 : index
    %68 = vector.load %arg9[%c0_61, %c0_62, %c0_63] : memref<12x16x8xbf16, #tpu.memory_space<vmem>>, vector<1x16x8xbf16>
    %69 = vector.shape_cast %68 : vector<1x16x8xbf16> to vector<16x8xbf16>
    %cst_64 = arith.constant dense<0.000000e+00> : vector<16x16xf32>
    %70 = tpu.matmul %65, %67, %cst_64 {dimension_numbers = #tpu.dot_dimension_numbers<[1], [1], [0], [0], [0, 0, 1, 0], [], []>} : vector<16x8xbf16>, vector<16x8xbf16>, vector<16x16xf32> -> vector<16x16xf32>
    %cst_65 = arith.constant dense<0xFF800000> : vector<16xf32>
    %71 = vector.multi_reduction <maximumf>, %70, %cst_65 [1] : vector<16x16xf32> to vector<16xf32>
    %72 = vector.shape_cast %71 : vector<16xf32> to vector<16x1xf32>
    %73 = vector.broadcast %72 : vector<16x1xf32> to vector<16x16xf32>
    %74 = arith.subf %70, %73 : vector<16x16xf32>
    %75 = math.exp %74 : vector<16x16xf32>
    %cst_66 = arith.constant dense<0.000000e+00> : vector<16xf32>
    %76 = vector.multi_reduction <add>, %75, %cst_66 [1] : vector<16x16xf32> to vector<16xf32>
    %77 = vector.shape_cast %76 : vector<16xf32> to vector<16x1xf32>
    %78 = tpu.reciprocal %77 {approx = true} : vector<16x1xf32> -> vector<16x1xf32>
    %79 = vector.broadcast %78 : vector<16x1xf32> to vector<16x16xf32>
    %80 = arith.mulf %75, %79 : vector<16x16xf32>
    %81 = arith.truncf %80 : vector<16x16xf32> to vector<16x16xbf16>
    %cst_67 = arith.constant dense<0.000000e+00> : vector<16x8xf32>
    %82 = tpu.matmul %81, %69, %cst_67 {dimension_numbers = #tpu.dot_dimension_numbers<[1], [0], [0], [1], [0, 0, 1, 1], [], []>} : vector<16x16xbf16>, vector<16x8xbf16>, vector<16x8xf32> -> vector<16x8xf32>
    %83 = arith.truncf %82 : vector<16x8xf32> to vector<16x8xbf16>
    %c0_68 = arith.constant 0 : index
    %c0_69 = arith.constant 0 : index
    %c0_70 = arith.constant 0 : index
    %84 = vector.load %arg10[%c0_68, %c0_69, %c0_70] : memref<2x16x48xbf16, #tpu.memory_space<vmem>>, vector<1x16x8xbf16>
    %85 = vector.shape_cast %84 : vector<1x16x8xbf16> to vector<16x8xbf16>
    %86 = vector.shape_cast %83 : vector<16x8xbf16> to vector<1x16x8xbf16>
    tpu.vector_store %arg10[%c0_68, %c0_69, %c0_70], %86 {strides = array<i32>} : memref<2x16x48xbf16, #tpu.memory_space<vmem>>, vector<1x16x8xbf16>,
    %c1 = arith.constant 1 : index
    %c0_71 = arith.constant 0 : index
    %c0_72 = arith.constant 0 : index
    %87 = vector.load %arg7[%c1, %c0_71, %c0_72] : memref<12x16x8xbf16, #tpu.memory_space<vmem>>, vector<1x16x8xbf16>
    %88 = vector.shape_cast %87 : vector<1x16x8xbf16> to vector<16x8xbf16>
    %c1_73 = arith.constant 1 : index
    %c0_74 = arith.constant 0 : index
    %c0_75 = arith.constant 0 : index
    %89 = vector.load %arg8[%c1_73, %c0_74, %c0_75] : memref<12x16x8xbf16, #tpu.memory_space<vmem>>, vector<1x16x8xbf16>
    %90 = vector.shape_cast %89 : vector<1x16x8xbf16> to vector<16x8xbf16>
    %c1_76 = arith.constant 1 : index
    %c0_77 = arith.constant 0 : index
    %c0_78 = arith.constant 0 : index
    %91 = vector.load %arg9[%c1_76, %c0_77, %c0_78] : memref<12x16x8xbf16, #tpu.memory_space<vmem>>, vector<1x16x8xbf16>
    %92 = vector.shape_cast %91 : vector<1x16x8xbf16> to vector<16x8xbf16>
    %cst_79 = arith.constant dense<0.000000e+00> : vector<16x16xf32>
    %93 = tpu.matmul %88, %90, %cst_79 {dimension_numbers = #tpu.dot_dimension_numbers<[1], [1], [0], [0], [0, 0, 1, 0], [], []>} : vector<16x8xbf16>, vector<16x8xbf16>, vector<16x16xf32> -> vector<16x16xf32>
    %cst_80 = arith.constant dense<0xFF800000> : vector<16xf32>
    %94 = vector.multi_reduction <maximumf>, %93, %cst_80 [1] : vector<16x16xf32> to vector<16xf32>
    %95 = vector.shape_cast %94 : vector<16xf32> to vector<16x1xf32>
    %96 = vector.broadcast %95 : vector<16x1xf32> to vector<16x16xf32>
    %97 = arith.subf %93, %96 : vector<16x16xf32>
    %98 = math.exp %97 : vector<16x16xf32>
    %cst_81 = arith.constant dense<0.000000e+00> : vector<16xf32>
    %99 = vector.multi_reduction <add>, %98, %cst_81 [1] : vector<16x16xf32> to vector<16xf32>
    %100 = vector.shape_cast %99 : vector<16xf32> to vector<16x1xf32>
    %101 = tpu.reciprocal %100 {approx = true} : vector<16x1xf32> -> vector<16x1xf32>
    %102 = vector.broadcast %101 : vector<16x1xf32> to vector<16x16xf32>
    %103 = arith.mulf %98, %102 : vector<16x16xf32>
    %104 = arith.truncf %103 : vector<16x16xf32> to vector<16x16xbf16>
    %cst_82 = arith.constant dense<0.000000e+00> : vector<16x8xf32>
    %105 = tpu.matmul %104, %92, %cst_82 {dimension_numbers = #tpu.dot_dimension_numbers<[1], [0], [0], [1], [0, 0, 1, 1], [], []>} : vector<16x16xbf16>, vector<16x8xbf16>, vector<16x8xf32> -> vector<16x8xf32>
    %106 = arith.truncf %105 : vector<16x8xf32> to vector<16x8xbf16>
    %c1_83 = arith.constant 1 : index
    %c0_84 = arith.constant 0 : index
    %c0_85 = arith.constant 0 : index
    %107 = vector.load %arg10[%c1_83, %c0_84, %c0_85] : memref<2x16x48xbf16, #tpu.memory_space<vmem>>, vector<1x16x8xbf16>
    %108 = vector.shape_cast %107 : vector<1x16x8xbf16> to vector<16x8xbf16>
    %109 = vector.shape_cast %106 : vector<16x8xbf16> to vector<1x16x8xbf16>
    tpu.vector_store %arg10[%c1_83, %c0_84, %c0_85], %109 {strides = array<i32>} : memref<2x16x48xbf16, #tpu.memory_space<vmem>>, vector<1x16x8xbf16>,
    %c2_86 = arith.constant 2 : index
    %c0_87 = arith.constant 0 : index
    %c0_88 = arith.constant 0 : index
    %110 = vector.load %arg7[%c2_86, %c0_87, %c0_88] : memref<12x16x8xbf16, #tpu.memory_space<vmem>>, vector<1x16x8xbf16>
    %111 = vector.shape_cast %110 : vector<1x16x8xbf16> to vector<16x8xbf16>
    %c2_89 = arith.constant 2 : index
    %c0_90 = arith.constant 0 : index
    %c0_91 = arith.constant 0 : index
    %112 = vector.load %arg8[%c2_89, %c0_90, %c0_91] : memref<12x16x8xbf16, #tpu.memory_space<vmem>>, vector<1x16x8xbf16>
    %113 = vector.shape_cast %112 : vector<1x16x8xbf16> to vector<16x8xbf16>
    %c2_92 = arith.constant 2 : index
    %c0_93 = arith.constant 0 : index
    %c0_94 = arith.constant 0 : index
    %114 = vector.load %arg9[%c2_92, %c0_93, %c0_94] : memref<12x16x8xbf16, #tpu.memory_space<vmem>>, vector<1x16x8xbf16>
    %115 = vector.shape_cast %114 : vector<1x16x8xbf16> to vector<16x8xbf16>
    %cst_95 = arith.constant dense<0.000000e+00> : vector<16x16xf32>
    %116 = tpu.matmul %111, %113, %cst_95 {dimension_numbers = #tpu.dot_dimension_numbers<[1], [1], [0], [0], [0, 0, 1, 0], [], []>} : vector<16x8xbf16>, vector<16x8xbf16>, vector<16x16xf32> -> vector<16x16xf32>
    %cst_96 = arith.constant dense<0xFF800000> : vector<16xf32>
    %117 = vector.multi_reduction <maximumf>, %116, %cst_96 [1] : vector<16x16xf32> to vector<16xf32>
    %118 = vector.shape_cast %117 : vector<16xf32> to vector<16x1xf32>
    %119 = vector.broadcast %118 : vector<16x1xf32> to vector<16x16xf32>
    %120 = arith.subf %116, %119 : vector<16x16xf32>
    %121 = math.exp %120 : vector<16x16xf32>
    %cst_97 = arith.constant dense<0.000000e+00> : vector<16xf32>
    %122 = vector.multi_reduction <add>, %121, %cst_97 [1] : vector<16x16xf32> to vector<16xf32>
    %123 = vector.shape_cast %122 : vector<16xf32> to vector<16x1xf32>
    %124 = tpu.reciprocal %123 {approx = true} : vector<16x1xf32> -> vector<16x1xf32>
    %125 = vector.broadcast %124 : vector<16x1xf32> to vector<16x16xf32>
    %126 = arith.mulf %121, %125 : vector<16x16xf32>
    %127 = arith.truncf %126 : vector<16x16xf32> to vector<16x16xbf16>
    %cst_98 = arith.constant dense<0.000000e+00> : vector<16x8xf32>
    %128 = tpu.matmul %127, %115, %cst_98 {dimension_numbers = #tpu.dot_dimension_numbers<[1], [0], [0], [1], [0, 0, 1, 1], [], []>} : vector<16x16xbf16>, vector<16x8xbf16>, vector<16x8xf32> -> vector<16x8xf32>
    %129 = arith.truncf %128 : vector<16x8xf32> to vector<16x8xbf16>
    %c0_99 = arith.constant 0 : index
    %c0_100 = arith.constant 0 : index
    %c8_101 = arith.constant 8 : index
    %130 = vector.load %arg10[%c0_99, %c0_100, %c8_101] : memref<2x16x48xbf16, #tpu.memory_space<vmem>>, vector<1x16x8xbf16>
    %131 = vector.shape_cast %130 : vector<1x16x8xbf16> to vector<16x8xbf16>
    %132 = vector.shape_cast %129 : vector<16x8xbf16> to vector<1x16x8xbf16>
    tpu.vector_store %arg10[%c0_99, %c0_100, %c8_101], %132 {strides = array<i32>} : memref<2x16x48xbf16, #tpu.memory_space<vmem>>, vector<1x16x8xbf16>,
    %c3 = arith.constant 3 : index
    %c0_102 = arith.constant 0 : index
    %c0_103 = arith.constant 0 : index
    %133 = vector.load %arg7[%c3, %c0_102, %c0_103] : memref<12x16x8xbf16, #tpu.memory_space<vmem>>, vector<1x16x8xbf16>
    %134 = vector.shape_cast %133 : vector<1x16x8xbf16> to vector<16x8xbf16>
    %c3_104 = arith.constant 3 : index
    %c0_105 = arith.constant 0 : index
    %c0_106 = arith.constant 0 : index
    %135 = vector.load %arg8[%c3_104, %c0_105, %c0_106] : memref<12x16x8xbf16, #tpu.memory_space<vmem>>, vector<1x16x8xbf16>
    %136 = vector.shape_cast %135 : vector<1x16x8xbf16> to vector<16x8xbf16>
    %c3_107 = arith.constant 3 : index
    %c0_108 = arith.constant 0 : index
    %c0_109 = arith.constant 0 : index
    %137 = vector.load %arg9[%c3_107, %c0_108, %c0_109] : memref<12x16x8xbf16, #tpu.memory_space<vmem>>, vector<1x16x8xbf16>
    %138 = vector.shape_cast %137 : vector<1x16x8xbf16> to vector<16x8xbf16>
    %cst_110 = arith.constant dense<0.000000e+00> : vector<16x16xf32>
    %139 = tpu.matmul %134, %136, %cst_110 {dimension_numbers = #tpu.dot_dimension_numbers<[1], [1], [0], [0], [0, 0, 1, 0], [], []>} : vector<16x8xbf16>, vector<16x8xbf16>, vector<16x16xf32> -> vector<16x16xf32>
    %cst_111 = arith.constant dense<0xFF800000> : vector<16xf32>
    %140 = vector.multi_reduction <maximumf>, %139, %cst_111 [1] : vector<16x16xf32> to vector<16xf32>
    %141 = vector.shape_cast %140 : vector<16xf32> to vector<16x1xf32>
    %142 = vector.broadcast %141 : vector<16x1xf32> to vector<16x16xf32>
    %143 = arith.subf %139, %142 : vector<16x16xf32>
    %144 = math.exp %143 : vector<16x16xf32>
    %cst_112 = arith.constant dense<0.000000e+00> : vector<16xf32>
    %145 = vector.multi_reduction <add>, %144, %cst_112 [1] : vector<16x16xf32> to vector<16xf32>
    %146 = vector.shape_cast %145 : vector<16xf32> to vector<16x1xf32>
    %147 = tpu.reciprocal %146 {approx = true} : vector<16x1xf32> -> vector<16x1xf32>
    %148 = vector.broadcast %147 : vector<16x1xf32> to vector<16x16xf32>
    %149 = arith.mulf %144, %148 : vector<16x16xf32>
    %150 = arith.truncf %149 : vector<16x16xf32> to vector<16x16xbf16>
    %cst_113 = arith.constant dense<0.000000e+00> : vector<16x8xf32>
    %151 = tpu.matmul %150, %138, %cst_113 {dimension_numbers = #tpu.dot_dimension_numbers<[1], [0], [0], [1], [0, 0, 1, 1], [], []>} : vector<16x16xbf16>, vector<16x8xbf16>, vector<16x8xf32> -> vector<16x8xf32>
    %152 = arith.truncf %151 : vector<16x8xf32> to vector<16x8xbf16>
    %c1_114 = arith.constant 1 : index
    %c0_115 = arith.constant 0 : index
    %c8_116 = arith.constant 8 : index
    %153 = vector.load %arg10[%c1_114, %c0_115, %c8_116] : memref<2x16x48xbf16, #tpu.memory_space<vmem>>, vector<1x16x8xbf16>
    %154 = vector.shape_cast %153 : vector<1x16x8xbf16> to vector<16x8xbf16>
    %155 = vector.shape_cast %152 : vector<16x8xbf16> to vector<1x16x8xbf16>
    tpu.vector_store %arg10[%c1_114, %c0_115, %c8_116], %155 {strides = array<i32>} : memref<2x16x48xbf16, #tpu.memory_space<vmem>>, vector<1x16x8xbf16>,
    %c4_117 = arith.constant 4 : index
    %c0_118 = arith.constant 0 : index
    %c0_119 = arith.constant 0 : index
    %156 = vector.load %arg7[%c4_117, %c0_118, %c0_119] : memref<12x16x8xbf16, #tpu.memory_space<vmem>>, vector<1x16x8xbf16>
    %157 = vector.shape_cast %156 : vector<1x16x8xbf16> to vector<16x8xbf16>
    %c4_120 = arith.constant 4 : index
    %c0_121 = arith.constant 0 : index
    %c0_122 = arith.constant 0 : index
    %158 = vector.load %arg8[%c4_120, %c0_121, %c0_122] : memref<12x16x8xbf16, #tpu.memory_space<vmem>>, vector<1x16x8xbf16>
    %159 = vector.shape_cast %158 : vector<1x16x8xbf16> to vector<16x8xbf16>
    %c4_123 = arith.constant 4 : index
    %c0_124 = arith.constant 0 : index
    %c0_125 = arith.constant 0 : index
    %160 = vector.load %arg9[%c4_123, %c0_124, %c0_125] : memref<12x16x8xbf16, #tpu.memory_space<vmem>>, vector<1x16x8xbf16>
    %161 = vector.shape_cast %160 : vector<1x16x8xbf16> to vector<16x8xbf16>
    %cst_126 = arith.constant dense<0.000000e+00> : vector<16x16xf32>
    %162 = tpu.matmul %157, %159, %cst_126 {dimension_numbers = #tpu.dot_dimension_numbers<[1], [1], [0], [0], [0, 0, 1, 0], [], []>} : vector<16x8xbf16>, vector<16x8xbf16>, vector<16x16xf32> -> vector<16x16xf32>
    %cst_127 = arith.constant dense<0xFF800000> : vector<16xf32>
    %163 = vector.multi_reduction <maximumf>, %162, %cst_127 [1] : vector<16x16xf32> to vector<16xf32>
    %164 = vector.shape_cast %163 : vector<16xf32> to vector<16x1xf32>
    %165 = vector.broadcast %164 : vector<16x1xf32> to vector<16x16xf32>
    %166 = arith.subf %162, %165 : vector<16x16xf32>
    %167 = math.exp %166 : vector<16x16xf32>
    %cst_128 = arith.constant dense<0.000000e+00> : vector<16xf32>
    %168 = vector.multi_reduction <add>, %167, %cst_128 [1] : vector<16x16xf32> to vector<16xf32>
    %169 = vector.shape_cast %168 : vector<16xf32> to vector<16x1xf32>
    %170 = tpu.reciprocal %169 {approx = true} : vector<16x1xf32> -> vector<16x1xf32>
    %171 = vector.broadcast %170 : vector<16x1xf32> to vector<16x16xf32>
    %172 = arith.mulf %167, %171 : vector<16x16xf32>
    %173 = arith.truncf %172 : vector<16x16xf32> to vector<16x16xbf16>
    %cst_129 = arith.constant dense<0.000000e+00> : vector<16x8xf32>
    %174 = tpu.matmul %173, %161, %cst_129 {dimension_numbers = #tpu.dot_dimension_numbers<[1], [0], [0], [1], [0, 0, 1, 1], [], []>} : vector<16x16xbf16>, vector<16x8xbf16>, vector<16x8xf32> -> vector<16x8xf32>
    %175 = arith.truncf %174 : vector<16x8xf32> to vector<16x8xbf16>
    %c0_130 = arith.constant 0 : index
    %c0_131 = arith.constant 0 : index
    %c16 = arith.constant 16 : index
    %176 = vector.load %arg10[%c0_130, %c0_131, %c16] : memref<2x16x48xbf16, #tpu.memory_space<vmem>>, vector<1x16x8xbf16>
    %177 = vector.shape_cast %176 : vector<1x16x8xbf16> to vector<16x8xbf16>
    %178 = vector.shape_cast %175 : vector<16x8xbf16> to vector<1x16x8xbf16>
    tpu.vector_store %arg10[%c0_130, %c0_131, %c16], %178 {strides = array<i32>} : memref<2x16x48xbf16, #tpu.memory_space<vmem>>, vector<1x16x8xbf16>,
    %c5 = arith.constant 5 : index
    %c0_132 = arith.constant 0 : index
    %c0_133 = arith.constant 0 : index
    %179 = vector.load %arg7[%c5, %c0_132, %c0_133] : memref<12x16x8xbf16, #tpu.memory_space<vmem>>, vector<1x16x8xbf16>
    %180 = vector.shape_cast %179 : vector<1x16x8xbf16> to vector<16x8xbf16>
    %c5_134 = arith.constant 5 : index
    %c0_135 = arith.constant 0 : index
    %c0_136 = arith.constant 0 : index
    %181 = vector.load %arg8[%c5_134, %c0_135, %c0_136] : memref<12x16x8xbf16, #tpu.memory_space<vmem>>, vector<1x16x8xbf16>
    %182 = vector.shape_cast %181 : vector<1x16x8xbf16> to vector<16x8xbf16>
    %c5_137 = arith.constant 5 : index
    %c0_138 = arith.constant 0 : index
    %c0_139 = arith.constant 0 : index
    %183 = vector.load %arg9[%c5_137, %c0_138, %c0_139] : memref<12x16x8xbf16, #tpu.memory_space<vmem>>, vector<1x16x8xbf16>
    %184 = vector.shape_cast %183 : vector<1x16x8xbf16> to vector<16x8xbf16>
    %cst_140 = arith.constant dense<0.000000e+00> : vector<16x16xf32>
    %185 = tpu.matmul %180, %182, %cst_140 {dimension_numbers = #tpu.dot_dimension_numbers<[1], [1], [0], [0], [0, 0, 1, 0], [], []>} : vector<16x8xbf16>, vector<16x8xbf16>, vector<16x16xf32> -> vector<16x16xf32>
    %cst_141 = arith.constant dense<0xFF800000> : vector<16xf32>
    %186 = vector.multi_reduction <maximumf>, %185, %cst_141 [1] : vector<16x16xf32> to vector<16xf32>
    %187 = vector.shape_cast %186 : vector<16xf32> to vector<16x1xf32>
    %188 = vector.broadcast %187 : vector<16x1xf32> to vector<16x16xf32>
    %189 = arith.subf %185, %188 : vector<16x16xf32>
    %190 = math.exp %189 : vector<16x16xf32>
    %cst_142 = arith.constant dense<0.000000e+00> : vector<16xf32>
    %191 = vector.multi_reduction <add>, %190, %cst_142 [1] : vector<16x16xf32> to vector<16xf32>
    %192 = vector.shape_cast %191 : vector<16xf32> to vector<16x1xf32>
    %193 = tpu.reciprocal %192 {approx = true} : vector<16x1xf32> -> vector<16x1xf32>
    %194 = vector.broadcast %193 : vector<16x1xf32> to vector<16x16xf32>
    %195 = arith.mulf %190, %194 : vector<16x16xf32>
    %196 = arith.truncf %195 : vector<16x16xf32> to vector<16x16xbf16>
    %cst_143 = arith.constant dense<0.000000e+00> : vector<16x8xf32>
    %197 = tpu.matmul %196, %184, %cst_143 {dimension_numbers = #tpu.dot_dimension_numbers<[1], [0], [0], [1], [0, 0, 1, 1], [], []>} : vector<16x16xbf16>, vector<16x8xbf16>, vector<16x8xf32> -> vector<16x8xf32>
    %198 = arith.truncf %197 : vector<16x8xf32> to vector<16x8xbf16>
    %c1_144 = arith.constant 1 : index
    %c0_145 = arith.constant 0 : index
    %c16_146 = arith.constant 16 : index
    %199 = vector.load %arg10[%c1_144, %c0_145, %c16_146] : memref<2x16x48xbf16, #tpu.memory_space<vmem>>, vector<1x16x8xbf16>
    %200 = vector.shape_cast %199 : vector<1x16x8xbf16> to vector<16x8xbf16>
    %201 = vector.shape_cast %198 : vector<16x8xbf16> to vector<1x16x8xbf16>
    tpu.vector_store %arg10[%c1_144, %c0_145, %c16_146], %201 {strides = array<i32>} : memref<2x16x48xbf16, #tpu.memory_space<vmem>>, vector<1x16x8xbf16>,
    %c6_147 = arith.constant 6 : index
    %c0_148 = arith.constant 0 : index
    %c0_149 = arith.constant 0 : index
    %202 = vector.load %arg7[%c6_147, %c0_148, %c0_149] : memref<12x16x8xbf16, #tpu.memory_space<vmem>>, vector<1x16x8xbf16>
    %203 = vector.shape_cast %202 : vector<1x16x8xbf16> to vector<16x8xbf16>
    %c6_150 = arith.constant 6 : index
    %c0_151 = arith.constant 0 : index
    %c0_152 = arith.constant 0 : index
    %204 = vector.load %arg8[%c6_150, %c0_151, %c0_152] : memref<12x16x8xbf16, #tpu.memory_space<vmem>>, vector<1x16x8xbf16>
    %205 = vector.shape_cast %204 : vector<1x16x8xbf16> to vector<16x8xbf16>
    %c6_153 = arith.constant 6 : index
    %c0_154 = arith.constant 0 : index
    %c0_155 = arith.constant 0 : index
    %206 = vector.load %arg9[%c6_153, %c0_154, %c0_155] : memref<12x16x8xbf16, #tpu.memory_space<vmem>>, vector<1x16x8xbf16>
    %207 = vector.shape_cast %206 : vector<1x16x8xbf16> to vector<16x8xbf16>
    %cst_156 = arith.constant dense<0.000000e+00> : vector<16x16xf32>
    %208 = tpu.matmul %203, %205, %cst_156 {dimension_numbers = #tpu.dot_dimension_numbers<[1], [1], [0], [0], [0, 0, 1, 0], [], []>} : vector<16x8xbf16>, vector<16x8xbf16>, vector<16x16xf32> -> vector<16x16xf32>
    %cst_157 = arith.constant dense<0xFF800000> : vector<16xf32>
    %209 = vector.multi_reduction <maximumf>, %208, %cst_157 [1] : vector<16x16xf32> to vector<16xf32>
    %210 = vector.shape_cast %209 : vector<16xf32> to vector<16x1xf32>
    %211 = vector.broadcast %210 : vector<16x1xf32> to vector<16x16xf32>
    %212 = arith.subf %208, %211 : vector<16x16xf32>
    %213 = math.exp %212 : vector<16x16xf32>
    %cst_158 = arith.constant dense<0.000000e+00> : vector<16xf32>
    %214 = vector.multi_reduction <add>, %213, %cst_158 [1] : vector<16x16xf32> to vector<16xf32>
    %215 = vector.shape_cast %214 : vector<16xf32> to vector<16x1xf32>
    %216 = tpu.reciprocal %215 {approx = true} : vector<16x1xf32> -> vector<16x1xf32>
    %217 = vector.broadcast %216 : vector<16x1xf32> to vector<16x16xf32>
    %218 = arith.mulf %213, %217 : vector<16x16xf32>
    %219 = arith.truncf %218 : vector<16x16xf32> to vector<16x16xbf16>
    %cst_159 = arith.constant dense<0.000000e+00> : vector<16x8xf32>
    %220 = tpu.matmul %219, %207, %cst_159 {dimension_numbers = #tpu.dot_dimension_numbers<[1], [0], [0], [1], [0, 0, 1, 1], [], []>} : vector<16x16xbf16>, vector<16x8xbf16>, vector<16x8xf32> -> vector<16x8xf32>
    %221 = arith.truncf %220 : vector<16x8xf32> to vector<16x8xbf16>
    %c0_160 = arith.constant 0 : index
    %c0_161 = arith.constant 0 : index
    %c24 = arith.constant 24 : index
    %222 = vector.load %arg10[%c0_160, %c0_161, %c24] : memref<2x16x48xbf16, #tpu.memory_space<vmem>>, vector<1x16x8xbf16>
    %223 = vector.shape_cast %222 : vector<1x16x8xbf16> to vector<16x8xbf16>
    %224 = vector.shape_cast %221 : vector<16x8xbf16> to vector<1x16x8xbf16>
    tpu.vector_store %arg10[%c0_160, %c0_161, %c24], %224 {strides = array<i32>} : memref<2x16x48xbf16, #tpu.memory_space<vmem>>, vector<1x16x8xbf16>,
    %c7 = arith.constant 7 : index
    %c0_162 = arith.constant 0 : index
    %c0_163 = arith.constant 0 : index
    %225 = vector.load %arg7[%c7, %c0_162, %c0_163] : memref<12x16x8xbf16, #tpu.memory_space<vmem>>, vector<1x16x8xbf16>
    %226 = vector.shape_cast %225 : vector<1x16x8xbf16> to vector<16x8xbf16>
    %c7_164 = arith.constant 7 : index
    %c0_165 = arith.constant 0 : index
    %c0_166 = arith.constant 0 : index
    %227 = vector.load %arg8[%c7_164, %c0_165, %c0_166] : memref<12x16x8xbf16, #tpu.memory_space<vmem>>, vector<1x16x8xbf16>
    %228 = vector.shape_cast %227 : vector<1x16x8xbf16> to vector<16x8xbf16>
    %c7_167 = arith.constant 7 : index
    %c0_168 = arith.constant 0 : index
    %c0_169 = arith.constant 0 : index
    %229 = vector.load %arg9[%c7_167, %c0_168, %c0_169] : memref<12x16x8xbf16, #tpu.memory_space<vmem>>, vector<1x16x8xbf16>
    %230 = vector.shape_cast %229 : vector<1x16x8xbf16> to vector<16x8xbf16>
    %cst_170 = arith.constant dense<0.000000e+00> : vector<16x16xf32>
    %231 = tpu.matmul %226, %228, %cst_170 {dimension_numbers = #tpu.dot_dimension_numbers<[1], [1], [0], [0], [0, 0, 1, 0], [], []>} : vector<16x8xbf16>, vector<16x8xbf16>, vector<16x16xf32> -> vector<16x16xf32>
    %cst_171 = arith.constant dense<0xFF800000> : vector<16xf32>
    %232 = vector.multi_reduction <maximumf>, %231, %cst_171 [1] : vector<16x16xf32> to vector<16xf32>
    %233 = vector.shape_cast %232 : vector<16xf32> to vector<16x1xf32>
    %234 = vector.broadcast %233 : vector<16x1xf32> to vector<16x16xf32>
    %235 = arith.subf %231, %234 : vector<16x16xf32>
    %236 = math.exp %235 : vector<16x16xf32>
    %cst_172 = arith.constant dense<0.000000e+00> : vector<16xf32>
    %237 = vector.multi_reduction <add>, %236, %cst_172 [1] : vector<16x16xf32> to vector<16xf32>
    %238 = vector.shape_cast %237 : vector<16xf32> to vector<16x1xf32>
    %239 = tpu.reciprocal %238 {approx = true} : vector<16x1xf32> -> vector<16x1xf32>
    %240 = vector.broadcast %239 : vector<16x1xf32> to vector<16x16xf32>
    %241 = arith.mulf %236, %240 : vector<16x16xf32>
    %242 = arith.truncf %241 : vector<16x16xf32> to vector<16x16xbf16>
    %cst_173 = arith.constant dense<0.000000e+00> : vector<16x8xf32>
    %243 = tpu.matmul %242, %230, %cst_173 {dimension_numbers = #tpu.dot_dimension_numbers<[1], [0], [0], [1], [0, 0, 1, 1], [], []>} : vector<16x16xbf16>, vector<16x8xbf16>, vector<16x8xf32> -> vector<16x8xf32>
    %244 = arith.truncf %243 : vector<16x8xf32> to vector<16x8xbf16>
    %c1_174 = arith.constant 1 : index
    %c0_175 = arith.constant 0 : index
    %c24_176 = arith.constant 24 : index
    %245 = vector.load %arg10[%c1_174, %c0_175, %c24_176] : memref<2x16x48xbf16, #tpu.memory_space<vmem>>, vector<1x16x8xbf16>
    %246 = vector.shape_cast %245 : vector<1x16x8xbf16> to vector<16x8xbf16>
    %247 = vector.shape_cast %244 : vector<16x8xbf16> to vector<1x16x8xbf16>
    tpu.vector_store %arg10[%c1_174, %c0_175, %c24_176], %247 {strides = array<i32>} : memref<2x16x48xbf16, #tpu.memory_space<vmem>>, vector<1x16x8xbf16>,
    %c8_177 = arith.constant 8 : index
    %c0_178 = arith.constant 0 : index
    %c0_179 = arith.constant 0 : index
    %248 = vector.load %arg7[%c8_177, %c0_178, %c0_179] : memref<12x16x8xbf16, #tpu.memory_space<vmem>>, vector<1x16x8xbf16>
    %249 = vector.shape_cast %248 : vector<1x16x8xbf16> to vector<16x8xbf16>
    %c8_180 = arith.constant 8 : index
    %c0_181 = arith.constant 0 : index
    %c0_182 = arith.constant 0 : index
    %250 = vector.load %arg8[%c8_180, %c0_181, %c0_182] : memref<12x16x8xbf16, #tpu.memory_space<vmem>>, vector<1x16x8xbf16>
    %251 = vector.shape_cast %250 : vector<1x16x8xbf16> to vector<16x8xbf16>
    %c8_183 = arith.constant 8 : index
    %c0_184 = arith.constant 0 : index
    %c0_185 = arith.constant 0 : index
    %252 = vector.load %arg9[%c8_183, %c0_184, %c0_185] : memref<12x16x8xbf16, #tpu.memory_space<vmem>>, vector<1x16x8xbf16>
    %253 = vector.shape_cast %252 : vector<1x16x8xbf16> to vector<16x8xbf16>
    %cst_186 = arith.constant dense<0.000000e+00> : vector<16x16xf32>
    %254 = tpu.matmul %249, %251, %cst_186 {dimension_numbers = #tpu.dot_dimension_numbers<[1], [1], [0], [0], [0, 0, 1, 0], [], []>} : vector<16x8xbf16>, vector<16x8xbf16>, vector<16x16xf32> -> vector<16x16xf32>
    %cst_187 = arith.constant dense<0xFF800000> : vector<16xf32>
    %255 = vector.multi_reduction <maximumf>, %254, %cst_187 [1] : vector<16x16xf32> to vector<16xf32>
    %256 = vector.shape_cast %255 : vector<16xf32> to vector<16x1xf32>
    %257 = vector.broadcast %256 : vector<16x1xf32> to vector<16x16xf32>
    %258 = arith.subf %254, %257 : vector<16x16xf32>
    %259 = math.exp %258 : vector<16x16xf32>
    %cst_188 = arith.constant dense<0.000000e+00> : vector<16xf32>
    %260 = vector.multi_reduction <add>, %259, %cst_188 [1] : vector<16x16xf32> to vector<16xf32>
    %261 = vector.shape_cast %260 : vector<16xf32> to vector<16x1xf32>
    %262 = tpu.reciprocal %261 {approx = true} : vector<16x1xf32> -> vector<16x1xf32>
    %263 = vector.broadcast %262 : vector<16x1xf32> to vector<16x16xf32>
    %264 = arith.mulf %259, %263 : vector<16x16xf32>
    %265 = arith.truncf %264 : vector<16x16xf32> to vector<16x16xbf16>
    %cst_189 = arith.constant dense<0.000000e+00> : vector<16x8xf32>
    %266 = tpu.matmul %265, %253, %cst_189 {dimension_numbers = #tpu.dot_dimension_numbers<[1], [0], [0], [1], [0, 0, 1, 1], [], []>} : vector<16x16xbf16>, vector<16x8xbf16>, vector<16x8xf32> -> vector<16x8xf32>
    %267 = arith.truncf %266 : vector<16x8xf32> to vector<16x8xbf16>
    %c0_190 = arith.constant 0 : index
    %c0_191 = arith.constant 0 : index
    %c32 = arith.constant 32 : index
    %268 = vector.load %arg10[%c0_190, %c0_191, %c32] : memref<2x16x48xbf16, #tpu.memory_space<vmem>>, vector<1x16x8xbf16>
    %269 = vector.shape_cast %268 : vector<1x16x8xbf16> to vector<16x8xbf16>
    %270 = vector.shape_cast %267 : vector<16x8xbf16> to vector<1x16x8xbf16>
    tpu.vector_store %arg10[%c0_190, %c0_191, %c32], %270 {strides = array<i32>} : memref<2x16x48xbf16, #tpu.memory_space<vmem>>, vector<1x16x8xbf16>,
    %c9 = arith.constant 9 : index
    %c0_192 = arith.constant 0 : index
    %c0_193 = arith.constant 0 : index
    %271 = vector.load %arg7[%c9, %c0_192, %c0_193] : memref<12x16x8xbf16, #tpu.memory_space<vmem>>, vector<1x16x8xbf16>
    %272 = vector.shape_cast %271 : vector<1x16x8xbf16> to vector<16x8xbf16>
    %c9_194 = arith.constant 9 : index
    %c0_195 = arith.constant 0 : index
    %c0_196 = arith.constant 0 : index
    %273 = vector.load %arg8[%c9_194, %c0_195, %c0_196] : memref<12x16x8xbf16, #tpu.memory_space<vmem>>, vector<1x16x8xbf16>
    %274 = vector.shape_cast %273 : vector<1x16x8xbf16> to vector<16x8xbf16>
    %c9_197 = arith.constant 9 : index
    %c0_198 = arith.constant 0 : index
    %c0_199 = arith.constant 0 : index
    %275 = vector.load %arg9[%c9_197, %c0_198, %c0_199] : memref<12x16x8xbf16, #tpu.memory_space<vmem>>, vector<1x16x8xbf16>
    %276 = vector.shape_cast %275 : vector<1x16x8xbf16> to vector<16x8xbf16>
    %cst_200 = arith.constant dense<0.000000e+00> : vector<16x16xf32>
    %277 = tpu.matmul %272, %274, %cst_200 {dimension_numbers = #tpu.dot_dimension_numbers<[1], [1], [0], [0], [0, 0, 1, 0], [], []>} : vector<16x8xbf16>, vector<16x8xbf16>, vector<16x16xf32> -> vector<16x16xf32>
    %cst_201 = arith.constant dense<0xFF800000> : vector<16xf32>
    %278 = vector.multi_reduction <maximumf>, %277, %cst_201 [1] : vector<16x16xf32> to vector<16xf32>
    %279 = vector.shape_cast %278 : vector<16xf32> to vector<16x1xf32>
    %280 = vector.broadcast %279 : vector<16x1xf32> to vector<16x16xf32>
    %281 = arith.subf %277, %280 : vector<16x16xf32>
    %282 = math.exp %281 : vector<16x16xf32>
    %cst_202 = arith.constant dense<0.000000e+00> : vector<16xf32>
    %283 = vector.multi_reduction <add>, %282, %cst_202 [1] : vector<16x16xf32> to vector<16xf32>
    %284 = vector.shape_cast %283 : vector<16xf32> to vector<16x1xf32>
    %285 = tpu.reciprocal %284 {approx = true} : vector<16x1xf32> -> vector<16x1xf32>
    %286 = vector.broadcast %285 : vector<16x1xf32> to vector<16x16xf32>
    %287 = arith.mulf %282, %286 : vector<16x16xf32>
    %288 = arith.truncf %287 : vector<16x16xf32> to vector<16x16xbf16>
    %cst_203 = arith.constant dense<0.000000e+00> : vector<16x8xf32>
    %289 = tpu.matmul %288, %276, %cst_203 {dimension_numbers = #tpu.dot_dimension_numbers<[1], [0], [0], [1], [0, 0, 1, 1], [], []>} : vector<16x16xbf16>, vector<16x8xbf16>, vector<16x8xf32> -> vector<16x8xf32>
    %290 = arith.truncf %289 : vector<16x8xf32> to vector<16x8xbf16>
    %c1_204 = arith.constant 1 : index
    %c0_205 = arith.constant 0 : index
    %c32_206 = arith.constant 32 : index
    %291 = vector.load %arg10[%c1_204, %c0_205, %c32_206] : memref<2x16x48xbf16, #tpu.memory_space<vmem>>, vector<1x16x8xbf16>
    %292 = vector.shape_cast %291 : vector<1x16x8xbf16> to vector<16x8xbf16>
    %293 = vector.shape_cast %290 : vector<16x8xbf16> to vector<1x16x8xbf16>
    tpu.vector_store %arg10[%c1_204, %c0_205, %c32_206], %293 {strides = array<i32>} : memref<2x16x48xbf16, #tpu.memory_space<vmem>>, vector<1x16x8xbf16>,
    %c10_207 = arith.constant 10 : index
    %c0_208 = arith.constant 0 : index
    %c0_209 = arith.constant 0 : index
    %294 = vector.load %arg7[%c10_207, %c0_208, %c0_209] : memref<12x16x8xbf16, #tpu.memory_space<vmem>>, vector<1x16x8xbf16>
    %295 = vector.shape_cast %294 : vector<1x16x8xbf16> to vector<16x8xbf16>
    %c10_210 = arith.constant 10 : index
    %c0_211 = arith.constant 0 : index
    %c0_212 = arith.constant 0 : index
    %296 = vector.load %arg8[%c10_210, %c0_211, %c0_212] : memref<12x16x8xbf16, #tpu.memory_space<vmem>>, vector<1x16x8xbf16>
    %297 = vector.shape_cast %296 : vector<1x16x8xbf16> to vector<16x8xbf16>
    %c10_213 = arith.constant 10 : index
    %c0_214 = arith.constant 0 : index
    %c0_215 = arith.constant 0 : index
    %298 = vector.load %arg9[%c10_213, %c0_214, %c0_215] : memref<12x16x8xbf16, #tpu.memory_space<vmem>>, vector<1x16x8xbf16>
    %299 = vector.shape_cast %298 : vector<1x16x8xbf16> to vector<16x8xbf16>
    %cst_216 = arith.constant dense<0.000000e+00> : vector<16x16xf32>
    %300 = tpu.matmul %295, %297, %cst_216 {dimension_numbers = #tpu.dot_dimension_numbers<[1], [1], [0], [0], [0, 0, 1, 0], [], []>} : vector<16x8xbf16>, vector<16x8xbf16>, vector<16x16xf32> -> vector<16x16xf32>
    %cst_217 = arith.constant dense<0xFF800000> : vector<16xf32>
    %301 = vector.multi_reduction <maximumf>, %300, %cst_217 [1] : vector<16x16xf32> to vector<16xf32>
    %302 = vector.shape_cast %301 : vector<16xf32> to vector<16x1xf32>
    %303 = vector.broadcast %302 : vector<16x1xf32> to vector<16x16xf32>
    %304 = arith.subf %300, %303 : vector<16x16xf32>
    %305 = math.exp %304 : vector<16x16xf32>
    %cst_218 = arith.constant dense<0.000000e+00> : vector<16xf32>
    %306 = vector.multi_reduction <add>, %305, %cst_218 [1] : vector<16x16xf32> to vector<16xf32>
    %307 = vector.shape_cast %306 : vector<16xf32> to vector<16x1xf32>
    %308 = tpu.reciprocal %307 {approx = true} : vector<16x1xf32> -> vector<16x1xf32>
    %309 = vector.broadcast %308 : vector<16x1xf32> to vector<16x16xf32>
    %310 = arith.mulf %305, %309 : vector<16x16xf32>
    %311 = arith.truncf %310 : vector<16x16xf32> to vector<16x16xbf16>
    %cst_219 = arith.constant dense<0.000000e+00> : vector<16x8xf32>
    %312 = tpu.matmul %311, %299, %cst_219 {dimension_numbers = #tpu.dot_dimension_numbers<[1], [0], [0], [1], [0, 0, 1, 1], [], []>} : vector<16x16xbf16>, vector<16x8xbf16>, vector<16x8xf32> -> vector<16x8xf32>
    %313 = arith.truncf %312 : vector<16x8xf32> to vector<16x8xbf16>
    %c0_220 = arith.constant 0 : index
    %c0_221 = arith.constant 0 : index
    %c40 = arith.constant 40 : index
    %314 = vector.load %arg10[%c0_220, %c0_221, %c40] : memref<2x16x48xbf16, #tpu.memory_space<vmem>>, vector<1x16x8xbf16>
    %315 = vector.shape_cast %314 : vector<1x16x8xbf16> to vector<16x8xbf16>
    %316 = vector.shape_cast %313 : vector<16x8xbf16> to vector<1x16x8xbf16>
    tpu.vector_store %arg10[%c0_220, %c0_221, %c40], %316 {strides = array<i32>} : memref<2x16x48xbf16, #tpu.memory_space<vmem>>, vector<1x16x8xbf16>,
    %c11 = arith.constant 11 : index
    %c0_222 = arith.constant 0 : index
    %c0_223 = arith.constant 0 : index
    %317 = vector.load %arg7[%c11, %c0_222, %c0_223] : memref<12x16x8xbf16, #tpu.memory_space<vmem>>, vector<1x16x8xbf16>
    %318 = vector.shape_cast %317 : vector<1x16x8xbf16> to vector<16x8xbf16>
    %c11_224 = arith.constant 11 : index
    %c0_225 = arith.constant 0 : index
    %c0_226 = arith.constant 0 : index
    %319 = vector.load %arg8[%c11_224, %c0_225, %c0_226] : memref<12x16x8xbf16, #tpu.memory_space<vmem>>, vector<1x16x8xbf16>
    %320 = vector.shape_cast %319 : vector<1x16x8xbf16> to vector<16x8xbf16>
    %c11_227 = arith.constant 11 : index
    %c0_228 = arith.constant 0 : index
    %c0_229 = arith.constant 0 : index
    %321 = vector.load %arg9[%c11_227, %c0_228, %c0_229] : memref<12x16x8xbf16, #tpu.memory_space<vmem>>, vector<1x16x8xbf16>
    %322 = vector.shape_cast %321 : vector<1x16x8xbf16> to vector<16x8xbf16>
    %cst_230 = arith.constant dense<0.000000e+00> : vector<16x16xf32>
    %323 = tpu.matmul %318, %320, %cst_230 {dimension_numbers = #tpu.dot_dimension_numbers<[1], [1], [0], [0], [0, 0, 1, 0], [], []>} : vector<16x8xbf16>, vector<16x8xbf16>, vector<16x16xf32> -> vector<16x16xf32>
    %cst_231 = arith.constant dense<0xFF800000> : vector<16xf32>
    %324 = vector.multi_reduction <maximumf>, %323, %cst_231 [1] : vector<16x16xf32> to vector<16xf32>
    %325 = vector.shape_cast %324 : vector<16xf32> to vector<16x1xf32>
    %326 = vector.broadcast %325 : vector<16x1xf32> to vector<16x16xf32>
    %327 = arith.subf %323, %326 : vector<16x16xf32>
    %328 = math.exp %327 : vector<16x16xf32>
    %cst_232 = arith.constant dense<0.000000e+00> : vector<16xf32>
    %329 = vector.multi_reduction <add>, %328, %cst_232 [1] : vector<16x16xf32> to vector<16xf32>
    %330 = vector.shape_cast %329 : vector<16xf32> to vector<16x1xf32>
    %331 = tpu.reciprocal %330 {approx = true} : vector<16x1xf32> -> vector<16x1xf32>
    %332 = vector.broadcast %331 : vector<16x1xf32> to vector<16x16xf32>
    %333 = arith.mulf %328, %332 : vector<16x16xf32>
    %334 = arith.truncf %333 : vector<16x16xf32> to vector<16x16xbf16>
    %cst_233 = arith.constant dense<0.000000e+00> : vector<16x8xf32>
    %335 = tpu.matmul %334, %322, %cst_233 {dimension_numbers = #tpu.dot_dimension_numbers<[1], [0], [0], [1], [0, 0, 1, 1], [], []>} : vector<16x16xbf16>, vector<16x8xbf16>, vector<16x8xf32> -> vector<16x8xf32>
    %336 = arith.truncf %335 : vector<16x8xf32> to vector<16x8xbf16>
    %c1_234 = arith.constant 1 : index
    %c0_235 = arith.constant 0 : index
    %c40_236 = arith.constant 40 : index
    %337 = vector.load %arg10[%c1_234, %c0_235, %c40_236] : memref<2x16x48xbf16, #tpu.memory_space<vmem>>, vector<1x16x8xbf16>
    %338 = vector.shape_cast %337 : vector<1x16x8xbf16> to vector<16x8xbf16>
    %339 = vector.shape_cast %336 : vector<16x8xbf16> to vector<1x16x8xbf16>
    tpu.vector_store %arg10[%c1_234, %c0_235, %c40_236], %339 {strides = array<i32>} : memref<2x16x48xbf16, #tpu.memory_space<vmem>>, vector<1x16x8xbf16>,
    %c0_237 = arith.constant 0 : index
    %c0_238 = arith.constant 0 : index
    %c0_239 = arith.constant 0 : index
    %340 = vector.load %arg10[%c0_237, %c0_238, %c0_239] : memref<2x16x48xbf16, #tpu.memory_space<vmem>>, vector<2x16x48xbf16>
    %341 = vector.shape_cast %340 : vector<2x16x48xbf16> to vector<32x48xbf16>
    %c0_240 = arith.constant 0 : index
    %c0_241 = arith.constant 0 : index
    %342 = vector.load %arg4[%c0_240, %c0_241] : memref<48x48xf32, #tpu.memory_space<vmem>>, vector<48x48xf32>
    %343 = arith.truncf %342 : vector<48x48xf32> to vector<48x48xbf16>
    %cst_242 = arith.constant dense<0.000000e+00> : vector<32x48xf32>
    %344 = tpu.matmul %341, %343, %cst_242 {dimension_numbers = #tpu.dot_dimension_numbers<[1], [0], [0], [1], [0, 0, 1, 1], [], []>} : vector<32x48xbf16>, vector<48x48xbf16>, vector<32x48xf32> -> vector<32x48xf32>
    %c0_243 = arith.constant 0 : index
    %c0_244 = arith.constant 0 : index
    %345 = vector.load %arg5[%c0_243, %c0_244] : memref<1x48xf32, #tpu.memory_space<vmem>>, vector<1x48xf32>
    %346 = vector.broadcast %345 : vector<1x48xf32> to vector<32x48xf32>
    %347 = arith.addf %344, %346 : vector<32x48xf32>
    %348 = vector.shape_cast %347 : vector<32x48xf32> to vector<2x16x48xf32>
    %c0_245 = arith.constant 0 : index
    %c0_246 = arith.constant 0 : index
    %c0_247 = arith.constant 0 : index
    %349 = vector.load %arg6[%c0_245, %c0_246, %c0_247] : memref<2x16x48xf32, #tpu.memory_space<vmem>>, vector<2x16x48xf32>
    tpu.vector_store %arg6[%c0_245, %c0_246, %c0_247], %348 {strides = array<i32>} : memref<2x16x48xf32, #tpu.memory_space<vmem>>, vector<2x16x48xf32>,
    return
  }
  func.func @transform_0(%arg0: i32) -> (i32, i32, i32) {
    %c0_i32 = arith.constant 0 : i32
    %c0_i32_0 = arith.constant 0 : i32
    %c0_i32_1 = arith.constant 0 : i32
    return %arg0, %c0_i32, %c0_i32_0 : i32, i32, i32
  }
  func.func @transform_1(%arg0: i32) -> (i32, i32) {
    %c0_i32 = arith.constant 0 : i32
    %c0_i32_0 = arith.constant 0 : i32
    %c0_i32_1 = arith.constant 0 : i32
    return %c0_i32, %c0_i32_0 : i32, i32
  }
  func.func @transform_2(%arg0: i32) -> (i32, i32) {
    %c0_i32 = arith.constant 0 : i32
    %c0_i32_0 = arith.constant 0 : i32
    %c0_i32_1 = arith.constant 0 : i32
    return %c0_i32, %c0_i32_0 : i32, i32
  }
  func.func @transform_3(%arg0: i32) -> (i32, i32) {
    %c0_i32 = arith.constant 0 : i32
    %c0_i32_0 = arith.constant 0 : i32
    %c0_i32_1 = arith.constant 0 : i32
    return %c0_i32, %c0_i32_0 : i32, i32
  }
  func.func @transform_4(%arg0: i32) -> (i32, i32) {
    %c0_i32 = arith.constant 0 : i32
    %c0_i32_0 = arith.constant 0 : i32
    %c0_i32_1 = arith.constant 0 : i32
    return %c0_i32, %c0_i32_0 : i32, i32
  }
  func.func @transform_5(%arg0: i32) -> (i32, i32, i32) {
    %c0_i32 = arith.constant 0 : i32
    %c0_i32_0 = arith.constant 0 : i32
    %c0_i32_1 = arith.constant 0 : i32
    return %arg0, %c0_i32, %c0_i32_0 : i32, i32, i32
  }
}

</mosaic_0001>

<bundles_post_ra>
// kernel: tpu_custom_call.1
= control target key start
LH: loop header
LB: loop body
LE: loop exit
PB: predicated region body
PF: predicated region fallthrough
CT: control target
= control target key end

     0   :  { %10 = vsyncpa [#allocation7], 0  ;;  %s2921_s0 = inlined_call_operand.hbm [shape: f32[2,16,48], index: 0, kind: input, shape index: {}]   ;;  %s2922_s1 = inlined_call_operand.hbm [shape: f32[48,144], index: 1, kind: input, shape index: {}]   ;;  %s2923_s2 = inlined_call_operand.vmem [shape: f32[1,144], index: 2, kind: input, shape index: {}]   ;;  %s2924_s3 = inlined_call_operand.hbm [shape: f32[48,48], index: 3, kind: input, shape index: {}]   ;;  %s2925_s4 = inlined_call_operand.vmem [shape: f32[1,48], index: 4, kind: input, shape index: {}]   ;;  %s2926_s5 = inlined_call_operand.hbm [shape: f32[2,16,48], index: 5, kind: output, shape index: {}]  }
   0x1   :  { %11 = vsyncpa [#allocation10], 0 }
   0x2   :  { %12 = vsyncpa [#allocation8], 0  ;;  %s2353_s18 = smov [#allocation9]   ;;  %s2259_s22 = scalar_lea.hbm %s2922_s1, 1536 }
   0x3   :  { %s30_s19 = sshll.u32 %s2353_s18, 4  ;;  %p2260_p0 = scmp.ne.s32.totalorder %s2922_s1, %s2259_s22  ;;  %s31_s19 = int_to_ptr.vmem [resolvable:$true] %s30_s19 }
   0x4   :  { %p2263_p1 = scmp.lt.u32.totalorder %s2259_s22, %s2922_s1 }
   0x6   :  { %p2265_p2 = pnand %p2263_p1, %p2260_p0 }
   0x8   :  { %2268 = shalt.err (!%p2265_p2)
}
   0x9   :  { %s2269_s27 = scalar_lea.vmem %s31_s19, 1536  ;;  %p2274_p4 = scmp.lt.s32.totalorder %s31_s19, %s31_s19 }
   0xa   :  { %p2270_p3 = scmp.ne.s32.totalorder %s31_s19, %s2269_s27  ;;  %p2275_p5 = scmp.lt.s32.totalorder %s2269_s27, %s2269_s27 }
   0xc   :  { %p2276_p6 = por %p2275_p5, %p2274_p4 }
   0xe   :  { %p2277_p7 = pnand %p2276_p6, %p2270_p3 }
  0x10   :  { %2280 = shalt.err (!%p2277_p7)
}
  0x11   :  { %s2354_s28 = smov 256   ;;  %s2355_s29 = smov 16  }
  0x12   :  { %36 = dma.hbm_to_vmem [thread:$0]  %s2922_s1, 1536, %s31_s19, [#allocation10], %s2354_s28, %s2354_s28, %s2355_s29  }
  0x13   :  { %s2356_s7 = smov [#allocation6]   ;;  %s2281_s11 = scalar_lea.hbm %s2921_s0, 512 }
  0x14   :  { %s18_s8 = sshll.u32 %s2356_s7, 4  ;;  %p2282_p8 = scmp.ne.s32.totalorder %s2921_s0, %s2281_s11  ;;  %s19_s8 = int_to_ptr.vmem [resolvable:$true] %s18_s8 }
  0x15   :  { %p2285_p9 = scmp.lt.u32.totalorder %s2281_s11, %s2921_s0 }
  0x17   :  { %p2287_p10 = pnand %p2285_p9, %p2282_p8 }
  0x19   :  { %2290 = shalt.err (!%p2287_p10)
}
  0x1a   :  { %s2291_s16 = scalar_lea.vmem %s19_s8, 512  ;;  %p2296_p12 = scmp.lt.s32.totalorder %s19_s8, %s19_s8 }
  0x1b   :  { %p2292_p11 = scmp.ne.s32.totalorder %s19_s8, %s2291_s16  ;;  %p2297_p13 = scmp.lt.s32.totalorder %s2291_s16, %s2291_s16 }
  0x1d   :  { %p2298_p0 = por %p2297_p13, %p2296_p12 }
  0x1f   :  { %p2299_p1 = pnand %p2298_p0, %p2292_p11 }
  0x21   :  { %2302 = shalt.err (!%p2299_p1)
}
  0x22   :  { %s2357_s1 = smov 128   ;;  %s2358_s17 = smov 8  }
  0x23   :  { %24 = dma.hbm_to_vmem [thread:$0]  %s2921_s0, 512, %s19_s8, [#allocation7], %s2357_s1, %s2357_s1, %s2358_s17  }
  0x24   :  { %s2359_s20 = smov [#allocation11]   ;;  %s2303_s24 = scalar_lea.hbm %s2924_s3, 768 }
  0x25   :  { %s44_s21 = sshll.u32 %s2359_s20, 4  ;;  %p2304_p2 = scmp.ne.s32.totalorder %s2924_s3, %s2303_s24  ;;  %s45_s21 = int_to_ptr.vmem [resolvable:$true] %s44_s21 }
  0x26   :  { %p2307_p3 = scmp.lt.u32.totalorder %s2303_s24, %s2924_s3 }
  0x28   :  { %p2309_p4 = pnand %p2307_p3, %p2304_p2 }
  0x2a   :  { %2312 = shalt.err (!%p2309_p4)
}
  0x2b   :  { %s2313_s30 = scalar_lea.vmem %s45_s21, 768  ;;  %p2318_p6 = scmp.lt.s32.totalorder %s45_s21, %s45_s21 }
  0x2c   :  { %p2314_p5 = scmp.ne.s32.totalorder %s45_s21, %s2313_s30  ;;  %p2319_p7 = scmp.lt.s32.totalorder %s2313_s30, %s2313_s30 }
  0x2e   :  { %p2320_p8 = por %p2319_p7, %p2318_p6 }
  0x30   :  { %p2321_p9 = pnand %p2320_p8, %p2314_p5 }
  0x32   :  { %2324 = shalt.err (!%p2321_p9)
}
  0x33   :  { %50 = dma.hbm_to_vmem [thread:$0]  %s2924_s3, 768, %s45_s21, [#allocation10], %s2357_s1, %s2357_s1, %s2358_s17  }
  0x34   :  { %2347 = dma.done.wait [#allocation7], 512  }
  0x35   :  { %2348 = vsyncadd [#allocation7], 4294966784 }
  0x36   :  { %2349 = dma.done.wait [#allocation10], 2304  }
  0x37   :  { %2350 = vsyncadd [#allocation10], 4294964992  ;;  %v2360_v0 = vmov 0   ;;  %v70_v1 = vld [vmem:[#allocation9 + $0x8] sm:$0xff]  ;;  %v72_v2 = vld [vmem:[#allocation9 + $0x18] sm:$0xff]  ;;  %vm99_vm0 = vcmask 392192   ;;  %v89_v22 = vlaneseq }
  0x38   :  { %138 = vmatprep.mubr.bf16.mxu0 %v2360_v0  ;;  %v69_v3 = vld [vmem:[#allocation9] sm:$0xff]  ;;  %v82_v4 = vpack.c.bf16 %v72_v2, %v70_v1  ;;  %v71_v5 = vld [vmem:[#allocation9 + $0x10] sm:$0xff]  ;;  %v74_v6 = vld [vmem:[#allocation9 + $0x28] sm:$0xff]  ;;  %v2361_v25 = vmov 0.0   ;;  %vm161_vm1 = vcmask 64512   ;;  %vm2362_vm2 = vmmov 0  }
  0x39   :  { %v76_v7 = vld [vmem:[#allocation9 + $0x38] sm:$0xff]  ;;  %v81_v8 = vpack.c.bf16 %v71_v5, %v69_v3  ;;  %v73_v10 = vld [vmem:[#allocation9 + $0x20] sm:$0xff]  ;;  %v75_v11 = vld [vmem:[#allocation9 + $0x30] sm:$0xff]  ;;  %v90_v23 = vshrl.u32 %v89_v22, 7  ;;  %1985 = vmatprep.subr.bf16.mxu1 %v2361_v25  ;;  %1987 = vmatprep.mubr.msk.bf16.mxu1 %vm2362_vm2, %v2361_v25  ;;  %vm365_vm3 = vcmask 130048   ;;  %s2364_s8 = smov 32  }
  0x3a   :  { %v84_v9 = vpack.c.bf16 %v76_v7, %v74_v6  ;;  %v78_v12 = vld [vmem:[#allocation9 + $0x48] sm:$0xff]  ;;  %106 = vmatprep.subr.bf16.mxu0 %v82_v4  ;;  %v80_v13 = vld [vmem:[#allocation9 + $0x58] sm:$0xff]  ;;  %v83_v14 = vpack.c.bf16 %v75_v11, %v73_v10  ;;  %v77_v16 = vld [vmem:[#allocation9 + $0x40] sm:$0xff]  ;;  %s2365_s9 = smov 120   ;;  %s2366_s10 = smov 112   ;;  %vm680_vm4 = vcmask 130112  }
  0x3b   :  { %107 = vmatpush1.bf16.msra.mxu0 %v81_v8  ;;  %v86_v15 = vpack.c.bf16 %v80_v13, %v78_v12  ;;  %v79_v17 = vld [vmem:[#allocation9 + $0x50] sm:$0xff]  ;;  %v63_v19 = vld [vmem:[#allocation6] sm:$0xff]  ;;  %v64_v20 = vld [vmem:[#allocation6 + $0x8] sm:$0xff]  ;;  %v91_v24 = vsub.s32 0, %v90_v23  ;;  %v95_v27 = vsub.s32 1, %v90_v23  ;;  %s2367_s11 = smov 104  }
  0x3c   :  { %108 = vmatprep.subr.bf16.mxu0 %v84_v9  ;;  %v85_v18 = vpack.c.bf16 %v79_v17, %v77_v16  ;;  %v67_v21 = vpack.c.bf16 %v64_v20, %v63_v19  ;;  %v87_v26 = vld [vmem:[%s2923_s2] sm:$0x3]  ;;  %s2363_s2 = smov 80   ;;  %v66_v41 = vld [vmem:[#allocation6 + $0x18] sm:$0xff]  ;;  %s2368_s12 = smov 96   ;;  %vm930_vm5 = vcmask 195712  }
  0x3d   :  { %v92_v28 = vrot.slane %v87_v26, %v91_v24  ;;  %v96_v30 = vrot.slane %v87_v26, %v95_v27  ;;  %v65_v40 = vld [vmem:[#allocation6 + $0x10] sm:$0xff]  ;;  %s2369_s13 = smov 88   ;;  %s2370_s14 = smov 24   ;;  %vm1180_vm6 = vcmask 261312   ;;  %vm1430_vm7 = vcmask 326912  }
  0x3e   :  { %v68_v42 = vpack.c.bf16 %v66_v41, %v65_v40  ;;  %s2371_s15 = smov 72   ;;  %s2372_s16 = smov 64   ;;  %vm1680_vm8 = vcmask 392512  }
  0x3f   :  { %109 = vmatpush1.bf16.msra.mxu0 %v83_v14  ;;  %s2373_s18 = smov 56   ;;  %s2374_s19 = smov 48  }
  0x40   :  { %110 = vmatprep.subr.bf16.mxu0 %v86_v15  ;;  %s2375_s20 = smov 40   ;;  %s2376_s22 = smov [#allocation12]  }
  0x41   :  { %s1890_s23 = sshll.u32 %s2376_s22, 4  ;;  %s1891_s23 = int_to_ptr.vmem [resolvable:$true] %s1890_s23 }
  0x42   :  { %p2330_p11 = scmp.lt.s32.totalorder %s1891_s23, %s1891_s23 }
  0x43   :  { %111 = vmatpush1.bf16.msra.mxu0 %v85_v18 }
  0x44   :  { %2003 = vmatprep.subr.bf16.mxu0 %v2361_v25 }
  0x46   :  { %1903 = vmatmul.mubr.msk.bf16.vlgmr.msra.gmra.mrb[0].mxu0 %vm99_vm0, %v67_v21 }
  0x47   :  { %148 = vmatprep.mubr.bf16.mxu0 %v2360_v0 }
  0x4e   :  { %1904 = vmatmul.mubr.msk.bf16.gmra.mrb[4].mxu0 %vm99_vm0, %v68_v42 }
  0x4f   :  { %2005 = vmatprep.mubr.msk.bf16.mxu0 %vm2362_vm2, %v2361_v25 }
 0x119   :  { %v140_v29 = vpop.f32.mrb[0].mxu0 }
 0x11a   :  { %v142_v31 = vpop.f32.mrb[1].mxu0  ;;  %v141_v33 = vadd.f32 %v140_v29, %v92_v28 }
 0x11b   :  { %v144_v32 = vpop.f32.mrb[2].mxu0  ;;  %v143_v36 = vadd.f32 %v142_v31, %v96_v30 }
 0x11c   :  { %v145_v34 = vadd.f32 %v144_v32, %v92_v28  ;;  %v146_v35 = vpop.f32.mrb[3].mxu0 }
 0x11d   :  { %v147_v37 = vadd.f32 %v146_v35, %v96_v30 }
 0x11e   :  { %v2458_v38 = vpack.c.bf16 %v145_v34, %v141_v33 }
 0x11f   :  { %v2460_v39 = vpack.c.bf16 %v147_v37, %v143_v36 }
 0x120   :  { %162 = vst.msk [vmem:[#allocation2] sm:$0xff] %vm161_vm1, %v2458_v38  ;;  %166 = vrot.lane.b32.xlu0 %v2458_v38, %s2363_s2 }
 0x121   :  { %284 = vst.msk [vmem:[#allocation4 + $0x40] sm:$0xff] %vm161_vm1, %v2460_v39  ;;  %v150_v47 = vpop.f32.mrb[4].mxu0 }
 0x122   :  { %v151_v48 = vadd.f32 %v150_v47, %v92_v28  ;;  %v152_v49 = vpop.f32.mrb[5].mxu0 }
 0x123   :  { %v154_v50 = vpop.f32.mrb[6].mxu0  ;;  %v153_v53 = vadd.f32 %v152_v49, %v96_v30 }
 0x124   :  { %v155_v51 = vadd.f32 %v154_v50, %v92_v28  ;;  %v156_v54 = vpop.f32.mrb[7].mxu0 }
 0x125   :  { %v157_v55 = vadd.f32 %v156_v54, %v96_v30 }
 0x126   :  { %v2477_v52 = vpack.c.bf16 %v155_v51, %v151_v48 }
 0x127   :  { %v315_v46 = vld [vmem:[#allocation2] sm:$0xff]  ;;  %v2481_v56 = vpack.c.bf16 %v157_v55, %v153_v53 }
 0x128   :  { %163 = vst.msk [vmem:[#allocation2 + $0x8] sm:$0xff] %vm161_vm1, %v2477_v52 }
 0x129   :  { %285 = vst.msk [vmem:[#allocation4 + $0x48] sm:$0xff] %vm161_vm1, %v2481_v56 }
 0x12f   :  { %v436_v41 = vld [vmem:[#allocation2 + $0x8] sm:$0xff] }
 0x192   :  { %v167_v43 = vpop.permute.xlu0 %166 }
 0x193   :  { %172 = vst.msk [vmem:[#allocation3] sm:$0xff] %vm161_vm1, %v167_v43 }
 0x19a   :  { %v316_v44 = vld [vmem:[#allocation3] sm:$0xff] }
 0x19b   :  { %v322_v45 = vsel %vm161_vm1, %v316_v44, 0 }
 0x19c   :  { %1986 = vmatpush3.bf16.xpose.msra.mxu1 %v322_v45 }
 0x19d   :  { %1991 = vmatprep.subr.bf16.mxu1 %v2361_v25 }
 0x1a3   :  { %1988 = vmatmul.mubr.msk.bf16.vlgmr.msra.gmra.mrb[0].mxu1 %vm161_vm1, %v315_v46 }
 0x1a4   :  { %1993 = vmatprep.mubr.msk.bf16.mxu1 %vm2362_vm2, %v2361_v25 }
 0x276   :  { %v358_v57 = vpop.f32.mrb[0].mxu1 }
 0x277   :  { %v1989_v58 = vpop.f32.mrb[1].mxu1  ;;  %v366_v59 = vsel %vm365_vm3, %v358_v57, -inf }
 0x278   :  { %367 = vmax.xlane.f32.xlu0 %v366_v59  ;;  %v361_v60 = vpop.f32.mrb[2].mxu1 }
 0x279   :  { %v1990_v61 = vpop.f32.mrb[3].mxu1  ;;  %v369_v62 = vsel %vm365_vm3, %v361_v60, -inf }
 0x27a   :  { %370 = vmax.xlane.f32.xlu1 %v369_v62 }
 0x28b   :  { %174 = vrot.lane.b32.xlu1 %v2458_v38, %s2364_s8 }
 0x28e   :  { %182 = vrot.lane.b32.xlu0 %v2458_v38, %s2365_s9 }
 0x28f   :  { %168 = vrot.lane.b32.xlu1 %v2477_v52, %s2363_s2 }
 0x292   :  { %211 = vrot.lane.b32.xlu0 %v2477_v52, %s2366_s10 }
 0x296   :  { %236 = vrot.lane.b32.xlu0 %v2458_v38, %s2367_s11 }
 0x29a   :  { %238 = vrot.lane.b32.xlu0 %v2477_v52, %s2367_s11 }
 0x29e   :  { %263 = vrot.lane.b32.xlu0 %v2458_v38, %s2368_s12 }
 0x2a2   :  { %265 = vrot.lane.b32.xlu0 %v2477_v52, %s2368_s12 }
 0x2a6   :  { %286 = vrot.lane.b32.xlu0 %v2458_v38, %s2369_s13 }
 0x2aa   :  { %288 = vrot.lane.b32.xlu0 %v2477_v52, %s2369_s13 }
 0x2ae   :  { %176 = vrot.lane.b32.xlu0 %v2477_v52, %s2364_s8 }
 0x2b2   :  { %202 = vrot.lane.b32.xlu0 %v2477_v52, %s2370_s14 }
 0x305   :  { %v368_v63 = vpop.xlane.xlu0 %367 }
 0x306   :  { %v372_v0 = vsub.f32 %v358_v57, %v368_v63 }
 0x307   :  { %v371_v1 = vpop.xlane.xlu1 %370 }
 0x308   :  { %v374_v2 = vmul.f32 1.442695, %v372_v0  ;;  %v373_v3 = vsub.f32 %v361_v60, %v371_v1 }
 0x309   :  { %v183_v4 = vpop.permute.xlu0 %182 }
 0x30a   :  { %2163 = vpow2.f32 %v374_v2  ;;  %v376_v5 = vmul.f32 1.442695, %v373_v3  ;;  %189 = vst.msk [vmem:[#allocation2 + $0x10] sm:$0xff] %vm161_vm1, %v183_v4 }
 0x30b   :  { %v175_v6 = vpop.permute.xlu1 %174 }
 0x30c   :  { %2165 = vpow2.f32 %v376_v5  ;;  %180 = vst.msk [vmem:[#allocation4] sm:$0xff] %vm161_vm1, %v175_v6 }
 0x30d   :  { %v212_v7 = vpop.permute.xlu0 %211 }
 0x30e   :  { %217 = vst.msk [vmem:[#allocation2 + $0x28] sm:$0xff] %vm161_vm1, %v212_v7 }
 0x30f   :  { %v169_v8 = vpop.permute.xlu1 %168 }
 0x310   :  { %173 = vst.msk [vmem:[#allocation3 + $0x8] sm:$0xff] %vm161_vm1, %v169_v8 }
 0x311   :  { %v237_v9 = vpop.permute.xlu0 %236  ;;  %v558_v46 = vld [vmem:[#allocation2 + $0x10] sm:$0xff] }
 0x312   :  { %243 = vst.msk [vmem:[#allocation2 + $0x30] sm:$0xff] %vm161_vm1, %v237_v9 }
 0x313   :  { %v317_v10 = vld [vmem:[#allocation4] sm:$0xff] }
 0x314   :  { %v2164_v11 = vpop.eup %2163  ;;  %1992 = vmatpush3.bf16.msra.mxu1 %v317_v10 }
 0x315   :  { %v239_v12 = vpop.permute.xlu0 %238  ;;  %v378_v13 = vsel %vm365_vm3, %v2164_v11, 0.0  ;;  %1997 = vmatprep.subr.bf16.mxu1 %v2361_v25  ;;  %v933_v63 = vld [vmem:[#allocation2 + $0x28] sm:$0xff] }
 0x316   :  { %v2166_v14 = vpop.eup %2165  ;;  %244 = vst.msk [vmem:[#allocation2 + $0x38] sm:$0xff] %vm161_vm1, %v239_v12  ;;  %379 = vadd.xlane.f32.xlu1 %v378_v13 }
 0x317   :  { %v381_v16 = vsel %vm365_vm3, %v2166_v14, 0.0  ;;  %v438_v33 = vld [vmem:[#allocation3 + $0x8] sm:$0xff] }
 0x318   :  { %v445_v35 = vsel %vm161_vm1, %v438_v33, 0 }
 0x319   :  { %v264_v15 = vpop.permute.xlu0 %263  ;;  %v1058_v2 = vld [vmem:[#allocation2 + $0x30] sm:$0xff] }
 0x31a   :  { %270 = vst.msk [vmem:[#allocation2 + $0x40] sm:$0xff] %vm161_vm1, %v264_v15  ;;  %382 = vadd.xlane.f32.xlu1 %v381_v16 }
 0x31d   :  { %v266_v17 = vpop.permute.xlu0 %265  ;;  %v1183_v5 = vld [vmem:[#allocation2 + $0x38] sm:$0xff] }
 0x31e   :  { %271 = vst.msk [vmem:[#allocation2 + $0x48] sm:$0xff] %vm161_vm1, %v266_v17 }
 0x321   :  { %v287_v18 = vpop.permute.xlu0 %286  ;;  %v1308_v8 = vld [vmem:[#allocation2 + $0x40] sm:$0xff] }
 0x322   :  { %293 = vst.msk [vmem:[#allocation2 + $0x50] sm:$0xff] %vm161_vm1, %v287_v18 }
 0x325   :  { %v289_v19 = vpop.permute.xlu0 %288 }
 0x326   :  { %294 = vst.msk [vmem:[#allocation2 + $0x58] sm:$0xff] %vm161_vm1, %v289_v19 }
 0x329   :  { %v177_v20 = vpop.permute.xlu0 %176 }
 0x32a   :  { %181 = vst.msk [vmem:[#allocation4 + $0x8] sm:$0xff] %vm161_vm1, %v177_v20 }
 0x32b   :  { %191 = vrot.lane.b32.xlu1 %v2458_v38, %s2371_s15 }
 0x32d   :  { %v203_v21 = vpop.permute.xlu0 %202  ;;  %v1683_v16 = vld [vmem:[#allocation2 + $0x58] sm:$0xff] }
 0x32e   :  { %208 = vst.msk [vmem:[#allocation4 + $0x18] sm:$0xff] %vm161_vm1, %v203_v21 }
 0x32f   :  { %193 = vrot.lane.b32.xlu1 %v2477_v52, %s2371_s15 }
 0x331   :  { %v440_v22 = vld [vmem:[#allocation4 + $0x8] sm:$0xff] }
 0x332   :  { %2004 = vmatpush3.bf16.msra.mxu0 %v440_v22 }
 0x333   :  { %184 = vrot.lane.b32.xlu1 %v2477_v52, %s2365_s9  ;;  %2015 = vmatprep.subr.bf16.mxu0 %v2361_v25 }
 0x337   :  { %218 = vrot.lane.b32.xlu1 %v2458_v38, %s2372_s16 }
 0x33b   :  { %209 = vrot.lane.b32.xlu1 %v2458_v38, %s2366_s10 }
 0x33f   :  { %220 = vrot.lane.b32.xlu1 %v2477_v52, %s2372_s16 }
 0x343   :  { %245 = vrot.lane.b32.xlu1 %v2458_v38, %s2373_s18 }
 0x347   :  { %247 = vrot.lane.b32.xlu1 %v2477_v52, %s2373_s18 }
 0x34b   :  { %272 = vrot.lane.b32.xlu1 %v2458_v38, %s2374_s19 }
 0x34f   :  { %274 = vrot.lane.b32.xlu1 %v2477_v52, %s2374_s19 }
 0x353   :  { %295 = vrot.lane.b32.xlu1 %v2458_v38, %s2375_s20 }
 0x357   :  { %297 = vrot.lane.b32.xlu1 %v2477_v52, %s2375_s20 }
 0x35b   :  { %200 = vrot.lane.b32.xlu1 %v2458_v38, %s2370_s14 }
 0x3a3   :  { %v380_v23 = vpop.xlane.xlu1 %379 }
 0x3a4   :  { %2167 = vrcp.f32 %v380_v23 }
 0x3a7   :  { %v383_v24 = vpop.xlane.xlu1 %382 }
 0x3a8   :  { %2169 = vrcp.f32 %v383_v24 }
 0x3ab   :  { %v192_v26 = vpop.permute.xlu1 %191 }
 0x3ac   :  { %198 = vst.msk [vmem:[#allocation3 + $0x10] sm:$0xff] %vm161_vm1, %v192_v26 }
 0x3ae   :  { %v2168_v28 = vpop.eup %2167 }
 0x3af   :  { %v194_v27 = vpop.permute.xlu1 %193  ;;  %v386_v30 = vmul.f32 %v2168_v28, %v2164_v11  ;;  %v1433_v11 = vld [vmem:[#allocation2 + $0x48] sm:$0xff] }
 0x3b0   :  { %199 = vst.msk [vmem:[#allocation3 + $0x18] sm:$0xff] %vm161_vm1, %v194_v27 }
 0x3b2   :  { %v2170_v29 = vpop.eup %2169 }
 0x3b3   :  { %v387_v31 = vmul.f32 %v2170_v29, %v2166_v14  ;;  %v185_v32 = vpop.permute.xlu1 %184  ;;  %v559_v40 = vld [vmem:[#allocation3 + $0x10] sm:$0xff] }
 0x3b4   :  { %190 = vst.msk [vmem:[#allocation2 + $0x18] sm:$0xff] %vm161_vm1, %v185_v32  ;;  %v565_v42 = vsel %vm161_vm1, %v559_v40, 0  ;;  %v1558_v14 = vld [vmem:[#allocation2 + $0x50] sm:$0xff] }
 0x3b5   :  { %v388_v34 = vpack.c.bf16 %v387_v31, %v386_v30 }
 0x3b7   :  { %1994 = vmatmul.mubr.msk.bf16.vlgmr.msra.gmra.mrb[4].mxu1 %vm365_vm3, %v388_v34  ;;  %v219_v36 = vpop.permute.xlu1 %218  ;;  %v685_v45 = vld [vmem:[#allocation3 + $0x18] sm:$0xff] }
 0x3b8   :  { %1998 = vmatpush3.bf16.xpose.msra.mxu1 %v445_v35  ;;  %225 = vst.msk [vmem:[#allocation3 + $0x20] sm:$0xff] %vm161_vm1, %v219_v36  ;;  %1999 = vmatprep.mubr.msk.bf16.mxu1 %vm2362_vm2, %v2361_v25  ;;  %v692_v47 = vsel %vm161_vm1, %v685_v45, 0 }
 0x3b9   :  { %2009 = vmatprep.subr.bf16.mxu1 %v2361_v25 }
 0x3bb   :  { %v210_v37 = vpop.permute.xlu1 %209  ;;  %v683_v51 = vld [vmem:[#allocation2 + $0x18] sm:$0xff] }
 0x3bc   :  { %216 = vst.msk [vmem:[#allocation2 + $0x20] sm:$0xff] %vm161_vm1, %v210_v37 }
 0x3bf   :  { %2000 = vmatmul.mubr.msk.bf16.vlgmr.msra.gmra.mrb[8].mxu1 %vm161_vm1, %v436_v41  ;;  %v221_v43 = vpop.permute.xlu1 %220  ;;  %v809_v50 = vld [vmem:[#allocation3 + $0x20] sm:$0xff] }
 0x3c0   :  { %2010 = vmatpush3.bf16.xpose.msra.mxu1 %v565_v42  ;;  %226 = vst.msk [vmem:[#allocation3 + $0x28] sm:$0xff] %vm161_vm1, %v221_v43  ;;  %2011 = vmatprep.mubr.msk.bf16.mxu1 %vm2362_vm2, %v2361_v25  ;;  %v815_v53 = vsel %vm161_vm1, %v809_v50, 0 }
 0x3c1   :  { %2021 = vmatprep.subr.bf16.mxu1 %v2361_v25 }
 0x3c3   :  { %v246_v44 = vpop.permute.xlu1 %245  ;;  %v808_v58 = vld [vmem:[#allocation2 + $0x20] sm:$0xff] }
 0x3c4   :  { %252 = vst.msk [vmem:[#allocation3 + $0x30] sm:$0xff] %vm161_vm1, %v246_v44 }
 0x3c7   :  { %2012 = vmatmul.mubr.msk.bf16.vlgmr.msra.gmra.mrb[12].mxu1 %vm161_vm1, %v558_v46  ;;  %v248_v48 = vpop.permute.xlu1 %247  ;;  %v935_v57 = vld [vmem:[#allocation3 + $0x28] sm:$0xff] }
 0x3c8   :  { %2022 = vmatpush3.bf16.xpose.msra.mxu1 %v692_v47  ;;  %253 = vst.msk [vmem:[#allocation3 + $0x38] sm:$0xff] %vm161_vm1, %v248_v48  ;;  %2023 = vmatprep.mubr.msk.bf16.mxu1 %vm2362_vm2, %v2361_v25  ;;  %v942_v59 = vsel %vm161_vm1, %v935_v57, 0 }
 0x3c9   :  { %2033 = vmatprep.subr.bf16.mxu1 %v2361_v25 }
 0x3cb   :  { %v273_v49 = vpop.permute.xlu1 %272  ;;  %v1059_v62 = vld [vmem:[#allocation3 + $0x30] sm:$0xff] }
 0x3cc   :  { %279 = vst.msk [vmem:[#allocation3 + $0x40] sm:$0xff] %vm161_vm1, %v273_v49  ;;  %v1065_v0 = vsel %vm161_vm1, %v1059_v62, 0 }
 0x3cf   :  { %2024 = vmatmul.mubr.msk.bf16.vlgmr.msra.gmra.mrb[16].mxu1 %vm161_vm1, %v683_v51  ;;  %v275_v54 = vpop.permute.xlu1 %274  ;;  %v1185_v1 = vld [vmem:[#allocation3 + $0x38] sm:$0xff] }
 0x3d0   :  { %2034 = vmatpush3.bf16.xpose.msra.mxu1 %v815_v53  ;;  %280 = vst.msk [vmem:[#allocation3 + $0x48] sm:$0xff] %vm161_vm1, %v275_v54  ;;  %2035 = vmatprep.mubr.msk.bf16.mxu1 %vm2362_vm2, %v2361_v25  ;;  %v1192_v3 = vsel %vm161_vm1, %v1185_v1, 0 }
 0x3d1   :  { %2045 = vmatprep.subr.bf16.mxu1 %v2361_v25 }
 0x3d3   :  { %v296_v55 = vpop.permute.xlu1 %295  ;;  %v1309_v4 = vld [vmem:[#allocation3 + $0x40] sm:$0xff] }
 0x3d4   :  { %302 = vst.msk [vmem:[#allocation3 + $0x50] sm:$0xff] %vm161_vm1, %v296_v55  ;;  %v1315_v6 = vsel %vm161_vm1, %v1309_v4, 0 }
 0x3d7   :  { %2036 = vmatmul.mubr.msk.bf16.vlgmr.msra.gmra.mrb[20].mxu1 %vm161_vm1, %v808_v58  ;;  %v298_v60 = vpop.permute.xlu1 %297  ;;  %v1435_v7 = vld [vmem:[#allocation3 + $0x48] sm:$0xff] }
 0x3d8   :  { %2046 = vmatpush3.bf16.xpose.msra.mxu1 %v942_v59  ;;  %303 = vst.msk [vmem:[#allocation3 + $0x58] sm:$0xff] %vm161_vm1, %v298_v60  ;;  %2047 = vmatprep.mubr.msk.bf16.mxu1 %vm2362_vm2, %v2361_v25  ;;  %v1442_v9 = vsel %vm161_vm1, %v1435_v7, 0 }
 0x3d9   :  { %2057 = vmatprep.subr.bf16.mxu1 %v2361_v25 }
 0x3db   :  { %v201_v61 = vpop.permute.xlu1 %200  ;;  %v1559_v10 = vld [vmem:[#allocation3 + $0x50] sm:$0xff] }
 0x3dc   :  { %207 = vst.msk [vmem:[#allocation4 + $0x10] sm:$0xff] %vm161_vm1, %v201_v61  ;;  %v1565_v12 = vsel %vm161_vm1, %v1559_v10, 0 }
 0x3df   :  { %2048 = vmatmul.mubr.msk.bf16.vlgmr.msra.gmra.mrb[24].mxu1 %vm161_vm1, %v933_v63  ;;  %v1685_v13 = vld [vmem:[#allocation3 + $0x58] sm:$0xff] }
 0x3e0   :  { %2058 = vmatpush3.bf16.xpose.msra.mxu1 %v1065_v0  ;;  %2059 = vmatprep.mubr.msk.bf16.mxu1 %vm2362_vm2, %v2361_v25  ;;  %v1692_v15 = vsel %vm161_vm1, %v1685_v13, 0 }
 0x3e1   :  { %2069 = vmatprep.subr.bf16.mxu1 %v2361_v25 }
 0x3e7   :  { %2060 = vmatmul.mubr.msk.bf16.vlgmr.msra.gmra.mrb[28].mxu1 %vm161_vm1, %v1058_v2 }
 0x3e8   :  { %2070 = vmatpush3.bf16.xpose.msra.mxu1 %v1192_v3  ;;  %2071 = vmatprep.mubr.msk.bf16.mxu1 %vm2362_vm2, %v2361_v25 }
 0x3e9   :  { %2081 = vmatprep.subr.bf16.mxu1 %v2361_v25 }
 0x3ef   :  { %2072 = vmatmul.mubr.msk.bf16.vlgmr.msra.gmra.mrb[32].mxu1 %vm161_vm1, %v1183_v5 }
 0x3f0   :  { %2082 = vmatpush3.bf16.xpose.msra.mxu1 %v1315_v6  ;;  %2083 = vmatprep.mubr.msk.bf16.mxu1 %vm2362_vm2, %v2361_v25 }
 0x3f1   :  { %2093 = vmatprep.subr.bf16.mxu1 %v2361_v25 }
 0x3f7   :  { %2084 = vmatmul.mubr.msk.bf16.vlgmr.msra.gmra.mrb[36].mxu1 %vm161_vm1, %v1308_v8 }
 0x3f8   :  { %2094 = vmatpush3.bf16.xpose.msra.mxu1 %v1442_v9  ;;  %2095 = vmatprep.mubr.msk.bf16.mxu1 %vm2362_vm2, %v2361_v25 }
 0x3f9   :  { %2105 = vmatprep.subr.bf16.mxu1 %v2361_v25 }
 0x3ff   :  { %2096 = vmatmul.mubr.msk.bf16.vlgmr.msra.gmra.mrb[40].mxu1 %vm161_vm1, %v1433_v11 }
 0x400   :  { %2106 = vmatpush3.bf16.xpose.msra.mxu1 %v1565_v12  ;;  %2107 = vmatprep.mubr.msk.bf16.mxu1 %vm2362_vm2, %v2361_v25 }
 0x401   :  { %2117 = vmatprep.subr.bf16.mxu1 %v2361_v25 }
 0x407   :  { %2108 = vmatmul.mubr.msk.bf16.vlgmr.msra.gmra.mrb[44].mxu1 %vm161_vm1, %v1558_v14 }
 0x408   :  { %2118 = vmatpush3.bf16.xpose.msra.mxu1 %v1692_v15  ;;  %2119 = vmatprep.mubr.msk.bf16.mxu1 %vm2362_vm2, %v2361_v25 }
 0x40f   :  { %2120 = vmatmul.mubr.msk.bf16.vlgmr.msra.gmra.mrb[48].mxu1 %vm161_vm1, %v1683_v16 }
 0x48a   :  { %v426_v17 = vpop.f32.mrb[4].mxu1 }
 0x48b   :  { %v1995_v18 = vpop.f32.mrb[5].mxu1 }
 0x48c   :  { %v429_v19 = vpop.f32.mrb[6].mxu1 }
 0x48d   :  { %v433_v20 = vpack.c.bf16 %v429_v19, %v426_v17  ;;  %v1996_v21 = vpop.f32.mrb[7].mxu1 }
 0x48f   :  { %434 = vst.msk [vmem:[#allocation5] sm:$0xff] %vm161_vm1, %v433_v20 }
 0x492   :  { %v2608_v22 = vpop.f32.mrb[8].mxu1 }
 0x493   :  { %v2001_v23 = vpop.f32.mrb[9].mxu1  ;;  %v488_v24 = vsel %vm365_vm3, %v2608_v22, -inf }
 0x494   :  { %489 = vmax.xlane.f32.xlu1 %v488_v24  ;;  %v2612_v26 = vpop.f32.mrb[10].mxu1 }
 0x495   :  { %v2002_v27 = vpop.f32.mrb[11].mxu1  ;;  %v491_v28 = vsel %vm365_vm3, %v2612_v26, -inf }
 0x496   :  { %492 = vmax.xlane.f32.xlu0 %v491_v28 }
 0x49a   :  { %v2616_v29 = vpop.f32.mrb[12].mxu1 }
 0x49b   :  { %v2013_v30 = vpop.f32.mrb[13].mxu1  ;;  %v608_v31 = vsel %vm365_vm3, %v2616_v29, -inf }
 0x49c   :  { %609 = vmax.xlane.f32.xlu0 %v608_v31  ;;  %v2620_v32 = vpop.f32.mrb[14].mxu1 }
 0x49d   :  { %v2014_v33 = vpop.f32.mrb[15].mxu1  ;;  %v611_v34 = vsel %vm365_vm3, %v2620_v32, -inf }
 0x49e   :  { %612 = vmax.xlane.f32.xlu1 %v611_v34 }
 0x4a2   :  { %v2624_v35 = vpop.f32.mrb[16].mxu1 }
 0x4a3   :  { %v2025_v36 = vpop.f32.mrb[17].mxu1  ;;  %v735_v37 = vsel %vm365_vm3, %v2624_v35, -inf }
 0x4a4   :  { %736 = vmax.xlane.f32.xlu0 %v735_v37  ;;  %v2628_v40 = vpop.f32.mrb[18].mxu1 }
 0x4a5   :  { %v2026_v41 = vpop.f32.mrb[19].mxu1  ;;  %v738_v42 = vsel %vm365_vm3, %v2628_v40, -inf }
 0x4a6   :  { %739 = vmax.xlane.f32.xlu1 %v738_v42 }
 0x4aa   :  { %v2632_v43 = vpop.f32.mrb[20].mxu1 }
 0x4ab   :  { %v2037_v44 = vpop.f32.mrb[21].mxu1  ;;  %v858_v45 = vsel %vm365_vm3, %v2632_v43, -inf }
 0x4ac   :  { %859 = vmax.xlane.f32.xlu0 %v858_v45  ;;  %v2636_v46 = vpop.f32.mrb[22].mxu1 }
 0x4ad   :  { %v2038_v47 = vpop.f32.mrb[23].mxu1  ;;  %v861_v9 = vsel %vm365_vm3, %v2636_v46, -inf }
 0x4b2   :  { %v2638_v48 = vpop.f32.mrb[24].mxu1 }
 0x4b3   :  { %v2049_v49 = vpop.f32.mrb[25].mxu1  ;;  %v985_v50 = vsel %vm365_vm3, %v2638_v48, -inf }
 0x4b4   :  { %986 = vmax.xlane.f32.xlu0 %v985_v50  ;;  %v2642_v51 = vpop.f32.mrb[26].mxu1 }
 0x4b5   :  { %v2050_v53 = vpop.f32.mrb[27].mxu1  ;;  %v988_v13 = vsel %vm365_vm3, %v2642_v51, -inf }
 0x4b7   :  { %227 = vrot.lane.b32.xlu1 %v2458_v38, %s2355_s29 }
 0x4ba   :  { %v2646_v54 = vpop.f32.mrb[28].mxu1 }
 0x4bb   :  { %v2061_v55 = vpop.f32.mrb[29].mxu1  ;;  %v1108_v57 = vsel %vm365_vm3, %v2646_v54, -inf }
 0x4bc   :  { %1109 = vmax.xlane.f32.xlu0 %v1108_v57  ;;  %v2650_v58 = vpop.f32.mrb[30].mxu1 }
 0x4bd   :  { %v2062_v59 = vpop.f32.mrb[31].mxu1  ;;  %v1111_v15 = vsel %vm365_vm3, %v2650_v58, -inf }
 0x4c2   :  { %v2652_v60 = vpop.f32.mrb[32].mxu1 }
 0x4c3   :  { %v2073_v61 = vpop.f32.mrb[33].mxu1  ;;  %v1235_v23 = vsel %vm365_vm3, %v2652_v60, -inf }
 0x4c4   :  { %v2654_v62 = vpop.f32.mrb[34].mxu1 }
 0x4c5   :  { %v2074_v63 = vpop.f32.mrb[35].mxu1  ;;  %v1238_v19 = vsel %vm365_vm3, %v2654_v62, -inf }
 0x4ca   :  { %v2656_v0 = vpop.f32.mrb[36].mxu1 }
 0x4cb   :  { %v2085_v1 = vpop.f32.mrb[37].mxu1  ;;  %v1358_v27 = vsel %vm365_vm3, %v2656_v0, -inf }
 0x4cc   :  { %v2658_v2 = vpop.f32.mrb[38].mxu1 }
 0x4cd   :  { %v2086_v3 = vpop.f32.mrb[39].mxu1  ;;  %v1361_v20 = vsel %vm365_vm3, %v2658_v2, -inf }
 0x4d2   :  { %229 = vrot.lane.b32.xlu0 %v2477_v52, %s2355_s29  ;;  %v2662_v4 = vpop.f32.mrb[40].mxu1 }
 0x4d3   :  { %v2097_v5 = vpop.f32.mrb[41].mxu1  ;;  %v1485_v30 = vsel %vm365_vm3, %v2662_v4, -inf }
 0x4d4   :  { %v2664_v6 = vpop.f32.mrb[42].mxu1 }
 0x4d5   :  { %v2098_v7 = vpop.f32.mrb[43].mxu1  ;;  %v1488_v21 = vsel %vm365_vm3, %v2664_v6, -inf }
 0x4da   :  { %v2666_v8 = vpop.f32.mrb[44].mxu1 }
 0x4db   :  { %862 = vmax.xlane.f32.xlu1 %v861_v9  ;;  %v2109_v10 = vpop.f32.mrb[45].mxu1  ;;  %v1608_v31 = vsel %vm365_vm3, %v2666_v8, -inf }
 0x4dc   :  { %v2670_v11 = vpop.f32.mrb[46].mxu1 }
 0x4dd   :  { %v2110_v12 = vpop.f32.mrb[47].mxu1  ;;  %v1611_v24 = vsel %vm365_vm3, %v2670_v11, -inf }
 0x4df   :  { %989 = vmax.xlane.f32.xlu1 %v988_v13 }
 0x4e2   :  { %v2674_v14 = vpop.f32.mrb[48].mxu1 }
 0x4e3   :  { %1112 = vmax.xlane.f32.xlu1 %v1111_v15  ;;  %v2121_v16 = vpop.f32.mrb[49].mxu1  ;;  %v1735_v33 = vsel %vm365_vm3, %v2674_v14, -inf }
 0x4e4   :  { %v2678_v17 = vpop.f32.mrb[50].mxu1 }
 0x4e5   :  { %v2122_v18 = vpop.f32.mrb[51].mxu1  ;;  %v1738_v28 = vsel %vm365_vm3, %v2678_v17, -inf }
 0x4e7   :  { %1239 = vmax.xlane.f32.xlu1 %v1238_v19 }
 0x4eb   :  { %1362 = vmax.xlane.f32.xlu1 %v1361_v20 }
 0x4ef   :  { %1489 = vmax.xlane.f32.xlu1 %v1488_v21 }
 0x4f1   :  { %1236 = vmax.xlane.f32.xlu0 %v1235_v23 }
 0x4f3   :  { %1612 = vmax.xlane.f32.xlu1 %v1611_v24 }
 0x4f5   :  { %1359 = vmax.xlane.f32.xlu0 %v1358_v27 }
 0x4f7   :  { %1739 = vmax.xlane.f32.xlu1 %v1738_v28 }
 0x4f9   :  { %1486 = vmax.xlane.f32.xlu0 %v1485_v30 }
 0x4fd   :  { %1609 = vmax.xlane.f32.xlu0 %v1608_v31 }
 0x501   :  { %1736 = vmax.xlane.f32.xlu0 %v1735_v33 }
 0x521   :  { %v490_v34 = vpop.xlane.xlu1 %489 }
 0x522   :  { %v494_v36 = vsub.f32 %v2608_v22, %v490_v34 }
 0x523   :  { %v493_v37 = vpop.xlane.xlu0 %492 }
 0x524   :  { %v496_v41 = vmul.f32 1.442695, %v494_v36  ;;  %v495_v42 = vsub.f32 %v2612_v26, %v493_v37 }
 0x526   :  { %2171 = vpow2.f32 %v496_v41  ;;  %v498_v44 = vmul.f32 1.442695, %v495_v42 }
 0x528   :  { %2173 = vpow2.f32 %v498_v44 }
 0x529   :  { %v610_v45 = vpop.xlane.xlu0 %609 }
 0x52a   :  { %v614_v47 = vsub.f32 %v2616_v29, %v610_v45 }
 0x52b   :  { %v613_v49 = vpop.xlane.xlu1 %612 }
 0x52c   :  { %v616_v50 = vmul.f32 1.442695, %v614_v47  ;;  %v615_v53 = vsub.f32 %v2620_v32, %v613_v49 }
 0x52e   :  { %2175 = vpow2.f32 %v616_v50  ;;  %v618_v55 = vmul.f32 1.442695, %v615_v53 }
 0x530   :  { %v2704_v57 = vpop.eup %2171  ;;  %2177 = vpow2.f32 %v618_v55 }
 0x531   :  { %v737_v22 = vpop.xlane.xlu0 %736  ;;  %v500_v59 = vsel %vm365_vm3, %v2704_v57, 0.0 }
 0x532   :  { %v2708_v26 = vpop.eup %2173  ;;  %v741_v61 = vsub.f32 %v2624_v35, %v737_v22  ;;  %501 = vadd.xlane.f32.xlu0 %v500_v59 }
 0x533   :  { %v740_v63 = vpop.xlane.xlu1 %739  ;;  %v503_v29 = vsel %vm365_vm3, %v2708_v26, 0.0 }
 0x534   :  { %v743_v1 = vmul.f32 1.442695, %v741_v61  ;;  %v742_v32 = vsub.f32 %v2628_v40, %v740_v63  ;;  %504 = vadd.xlane.f32.xlu1 %v503_v29 }
 0x536   :  { %2179 = vpow2.f32 %v743_v1  ;;  %v745_v3 = vmul.f32 1.442695, %v742_v32 }
 0x537   :  { %v228_v5 = vpop.permute.xlu1 %227 }
 0x538   :  { %v2714_v7 = vpop.eup %2175  ;;  %2181 = vpow2.f32 %v745_v3  ;;  %234 = vst.msk [vmem:[#allocation4 + $0x20] sm:$0xff] %vm161_vm1, %v228_v5 }
 0x539   :  { %v860_v9 = vpop.xlane.xlu0 %859  ;;  %v620_v35 = vsel %vm365_vm3, %v2714_v7, 0.0 }
 0x53a   :  { %v2719_v10 = vpop.eup %2177  ;;  %v864_v12 = vsub.f32 %v2632_v43, %v860_v9  ;;  %621 = vadd.xlane.f32.xlu0 %v620_v35 }
 0x53b   :  { %v623_v40 = vsel %vm365_vm3, %v2719_v10, 0.0 }
 0x53c   :  { %v866_v13 = vmul.f32 1.442695, %v864_v12  ;;  %624 = vadd.xlane.f32.xlu1 %v623_v40 }
 0x53e   :  { %2183 = vpow2.f32 %v866_v13 }
 0x540   :  { %v2724_v15 = vpop.eup %2179 }
 0x541   :  { %v987_v16 = vpop.xlane.xlu0 %986  ;;  %v747_v18 = vsel %vm365_vm3, %v2724_v15, 0.0 }
 0x542   :  { %v2728_v19 = vpop.eup %2181  ;;  %v991_v20 = vsub.f32 %v2638_v48, %v987_v16  ;;  %748 = vadd.xlane.f32.xlu0 %v747_v18 }
 0x543   :  { %v750_v43 = vsel %vm365_vm3, %v2728_v19, 0.0 }
 0x544   :  { %v993_v21 = vmul.f32 1.442695, %v991_v20  ;;  %751 = vadd.xlane.f32.xlu1 %v750_v43 }
 0x546   :  { %2185 = vpow2.f32 %v993_v21 }
 0x548   :  { %v2733_v23 = vpop.eup %2183 }
 0x549   :  { %v1110_v24 = vpop.xlane.xlu0 %1109  ;;  %v870_v27 = vsel %vm365_vm3, %v2733_v23, 0.0 }
 0x54a   :  { %871 = vadd.xlane.f32.xlu1 %v870_v27  ;;  %v1114_v34 = vsub.f32 %v2646_v54, %v1110_v24 }
 0x54c   :  { %v1116_v42 = vmul.f32 1.442695, %v1114_v34 }
 0x54d   :  { %v230_v28 = vpop.permute.xlu0 %229 }
 0x54e   :  { %235 = vst.msk [vmem:[#allocation4 + $0x28] sm:$0xff] %vm161_vm1, %v230_v28 }
 0x550   :  { %v2738_v30 = vpop.eup %2185 }
 0x551   :  { %v997_v48 = vsel %vm365_vm3, %v2738_v30, 0.0 }
 0x552   :  { %998 = vadd.xlane.f32.xlu0 %v997_v48 }
 0x568   :  { %v863_v31 = vpop.xlane.xlu1 %862  ;;  %254 = vrot.lane.b32.xlu0 %v2458_v38, %s2358_s17 }
 0x569   :  { %v865_v33 = vsub.f32 %v2636_v46, %v863_v31 }
 0x56b   :  { %v868_v36 = vmul.f32 1.442695, %v865_v33 }
 0x56c   :  { %v990_v37 = vpop.xlane.xlu1 %989 }
 0x56d   :  { %2187 = vpow2.f32 %v868_v36  ;;  %v992_v41 = vsub.f32 %v2642_v51, %v990_v37 }
 0x56f   :  { %v995_v44 = vmul.f32 1.442695, %v992_v41 }
 0x570   :  { %v1113_v45 = vpop.xlane.xlu1 %1112 }
 0x571   :  { %2189 = vpow2.f32 %v995_v44  ;;  %v1115_v47 = vsub.f32 %v2650_v58, %v1113_v45 }
 0x572   :  { %2191 = vpow2.f32 %v1116_v42 }
 0x573   :  { %v1118_v49 = vmul.f32 1.442695, %v1115_v47 }
 0x574   :  { %v1240_v50 = vpop.xlane.xlu1 %1239 }
 0x575   :  { %2193 = vpow2.f32 %v1118_v49  ;;  %v1242_v34 = vsub.f32 %v2654_v62, %v1240_v50 }
 0x577   :  { %v2748_v53 = vpop.eup %2187  ;;  %v1245_v36 = vmul.f32 1.442695, %v1242_v34 }
 0x578   :  { %v1363_v38 = vpop.xlane.xlu1 %1362  ;;  %v873_v46 = vsel %vm365_vm3, %v2748_v53, 0.0 }
 0x579   :  { %874 = vadd.xlane.f32.xlu1 %v873_v46  ;;  %v1365_v37 = vsub.f32 %v2658_v2, %v1363_v38 }
 0x57b   :  { %v2752_v54 = vpop.eup %2189  ;;  %v1368_v42 = vmul.f32 1.442695, %v1365_v37 }
 0x57c   :  { %v1490_v51 = vpop.xlane.xlu1 %1489  ;;  %v1000_v55 = vsel %vm365_vm3, %v2752_v54, 0.0  ;;  %v2756_v22 = vpop.eup %2191 }
 0x57d   :  { %v1492_v58 = vsub.f32 %v2664_v6, %v1490_v51  ;;  %1001 = vadd.xlane.f32.xlu1 %v1000_v55  ;;  %v1120_v29 = vsel %vm365_vm3, %v2756_v22, 0.0 }
 0x57e   :  { %v1237_v59 = vpop.xlane.xlu0 %1236 }
 0x57f   :  { %v1241_v61 = vsub.f32 %v2652_v60, %v1237_v59  ;;  %v2762_v1 = vpop.eup %2193  ;;  %v1495_v32 = vmul.f32 1.442695, %v1492_v58 }
 0x580   :  { %v1613_v63 = vpop.xlane.xlu1 %1612  ;;  %v1123_v6 = vsel %vm365_vm3, %v2762_v1, 0.0 }
 0x581   :  { %v1243_v3 = vmul.f32 1.442695, %v1241_v61  ;;  %v1615_v5 = vsub.f32 %v2670_v11, %v1613_v63  ;;  %1121 = vadd.xlane.f32.xlu1 %v1120_v29 }
 0x582   :  { %v1360_v9 = vpop.xlane.xlu0 %1359 }
 0x583   :  { %2195 = vpow2.f32 %v1243_v3  ;;  %v1618_v35 = vmul.f32 1.442695, %v1615_v5 }
 0x584   :  { %2197 = vpow2.f32 %v1495_v32  ;;  %v1740_v12 = vpop.xlane.xlu1 %1739 }
 0x585   :  { %1124 = vadd.xlane.f32.xlu1 %v1123_v6  ;;  %2199 = vpow2.f32 %v1618_v35  ;;  %v1742_v16 = vsub.f32 %v2678_v17, %v1740_v12  ;;  %v560_v6 = vld [vmem:[#allocation4 + $0x10] sm:$0xff] }
 0x586   :  { %v1487_v60 = vpop.xlane.xlu0 %1486 }
 0x587   :  { %v1745_v21 = vmul.f32 1.442695, %v1742_v16  ;;  %v1491_v44 = vsub.f32 %v2662_v4, %v1487_v60  ;;  %v687_v16 = vld [vmem:[#allocation4 + $0x18] sm:$0xff] }
 0x589   :  { %v1493_v45 = vmul.f32 1.442695, %v1491_v44 }
 0x58a   :  { %v1610_v40 = vpop.xlane.xlu0 %1609 }
 0x58b   :  { %v1614_v47 = vsub.f32 %v2666_v8, %v1610_v40 }
 0x58d   :  { %v2767_v13 = vpop.eup %2195  ;;  %v1616_v46 = vmul.f32 1.442695, %v1614_v47 }
 0x58e   :  { %v1737_v18 = vpop.xlane.xlu0 %1736  ;;  %v1247_v11 = vsel %vm365_vm3, %v2767_v13, 0.0  ;;  %v2772_v20 = vpop.eup %2197 }
 0x58f   :  { %v1741_v43 = vsub.f32 %v2674_v14, %v1737_v18  ;;  %1248 = vadd.xlane.f32.xlu0 %v1247_v11  ;;  %v1500_v27 = vsel %vm365_vm3, %v2772_v20, 0.0  ;;  %v2777_v28 = vpop.eup %2199 }
 0x590   :  { %v1623_v17 = vsel %vm365_vm3, %v2777_v28, 0.0 }
 0x591   :  { %v1743_v24 = vmul.f32 1.442695, %v1741_v43 }
 0x593   :  { %2201 = vpow2.f32 %v1743_v24  ;;  %1501 = vadd.xlane.f32.xlu0 %v1500_v27  ;;  %v810_v24 = vld [vmem:[#allocation4 + $0x20] sm:$0xff] }
 0x594   :  { %2203 = vpow2.f32 %v1745_v21 }
 0x595   :  { %2205 = vpow2.f32 %v1245_v36 }
 0x596   :  { %256 = vrot.lane.b32.xlu1 %v2477_v52, %s2358_s17  ;;  %v1364_v52 = vsub.f32 %v2656_v0, %v1360_v9 }
 0x597   :  { %1624 = vadd.xlane.f32.xlu0 %v1623_v17 }
 0x598   :  { %v1366_v41 = vmul.f32 1.442695, %v1364_v52 }
 0x59a   :  { %2207 = vpow2.f32 %v1366_v41 }
 0x59b   :  { %2209 = vpow2.f32 %v1368_v42  ;;  %v937_v42 = vld [vmem:[#allocation4 + $0x28] sm:$0xff] }
 0x59c   :  { %2211 = vpow2.f32 %v1493_v45 }
 0x59d   :  { %v2783_v48 = vpop.eup %2201  ;;  %2213 = vpow2.f32 %v1616_v46 }
 0x59e   :  { %v1747_v14 = vsel %vm365_vm3, %v2783_v48, 0.0  ;;  %v2787_v31 = vpop.eup %2203 }
 0x59f   :  { %1748 = vadd.xlane.f32.xlu0 %v1747_v14  ;;  %v1750_v33 = vsel %vm365_vm3, %v2787_v31, 0.0  ;;  %v2796_v49 = vpop.eup %2205 }
 0x5a0   :  { %v1250_v62 = vsel %vm365_vm3, %v2796_v49, 0.0 }
 0x5a3   :  { %1751 = vadd.xlane.f32.xlu0 %v1750_v33 }
 0x5a4   :  { %v2802_v0 = vpop.eup %2207 }
 0x5a5   :  { %v1370_v2 = vsel %vm365_vm3, %v2802_v0, 0.0  ;;  %v2806_v4 = vpop.eup %2209 }
 0x5a6   :  { %v1373_v38 = vsel %vm365_vm3, %v2806_v4, 0.0 }
 0x5b9   :  { %306 = vrot.lane.b32.xlu0 %v2460_v39, %s2365_s9  ;;  %v2810_v39 = vpop.eup %2211 }
 0x5ba   :  { %1251 = vadd.xlane.f32.xlu1 %v1250_v62  ;;  %v1497_v51 = vsel %vm365_vm3, %v2810_v39, 0.0  ;;  %v2814_v55 = vpop.eup %2213 }
 0x5bb   :  { %v1620_v61 = vsel %vm365_vm3, %v2814_v55, 0.0 }
 0x5be   :  { %1371 = vadd.xlane.f32.xlu1 %v1370_v2 }
 0x5bf   :  { %v502_v8 = vpop.xlane.xlu0 %501 }
 0x5c0   :  { %2215 = vrcp.f32 %v502_v8 }
 0x5c1   :  { %v505_v50 = vpop.xlane.xlu1 %504 }
 0x5c2   :  { %2217 = vrcp.f32 %v505_v50  ;;  %1374 = vadd.xlane.f32.xlu1 %v1373_v38 }
 0x5c6   :  { %1498 = vadd.xlane.f32.xlu1 %v1497_v51 }
 0x5c7   :  { %v622_v58 = vpop.xlane.xlu0 %621 }
 0x5c8   :  { %2219 = vrcp.f32 %v622_v58 }
 0x5c9   :  { %v625_v59 = vpop.xlane.xlu1 %624 }
 0x5ca   :  { %v2216_v63 = vpop.eup %2215  ;;  %2221 = vrcp.f32 %v625_v59  ;;  %1621 = vadd.xlane.f32.xlu1 %v1620_v61 }
 0x5cb   :  { %v508_v32 = vmul.f32 %v2216_v63, %v2704_v57 }
 0x5cc   :  { %v2218_v29 = vpop.eup %2217 }
 0x5cd   :  { %v509_v3 = vmul.f32 %v2218_v29, %v2708_v26 }
 0x5cf   :  { %v510_v5 = vpack.c.bf16 %v509_v3, %v508_v32  ;;  %v749_v9 = vpop.xlane.xlu0 %748 }
 0x5d0   :  { %2223 = vrcp.f32 %v749_v9 }
 0x5d1   :  { %2006 = vmatmul.mubr.msk.bf16.vlgmr.msra.gmra.mrb[8].mxu0 %vm365_vm3, %v510_v5  ;;  %v752_v35 = vpop.xlane.xlu1 %751 }
 0x5d2   :  { %v2220_v60 = vpop.eup %2219  ;;  %2016 = vmatpush3.bf16.msra.mxu0 %v560_v6  ;;  %2225 = vrcp.f32 %v752_v35  ;;  %2017 = vmatprep.mubr.msk.bf16.mxu0 %vm2362_vm2, %v2361_v25 }
 0x5d3   :  { %2027 = vmatprep.subr.bf16.mxu0 %v2361_v25  ;;  %v628_v57 = vmul.f32 %v2220_v60, %v2714_v7  ;;  %v1310_v60 = vld [vmem:[#allocation4 + $0x40] sm:$0xff] }
 0x5d4   :  { %v2222_v12 = vpop.eup %2221 }
 0x5d5   :  { %v629_v26 = vmul.f32 %v2222_v12, %v2719_v10 }
 0x5d7   :  { %v630_v40 = vpack.c.bf16 %v629_v26, %v628_v57 }
 0x5d9   :  { %2018 = vmatmul.mubr.msk.bf16.vlgmr.msra.gmra.mrb[12].mxu0 %vm365_vm3, %v630_v40 }
 0x5da   :  { %v2224_v18 = vpop.eup %2223  ;;  %2028 = vmatpush3.bf16.msra.mxu0 %v687_v16  ;;  %2029 = vmatprep.mubr.msk.bf16.mxu0 %vm2362_vm2, %v2361_v25 }
 0x5db   :  { %308 = vrot.lane.b32.xlu1 %v2481_v56, %s2365_s9  ;;  %2039 = vmatprep.subr.bf16.mxu0 %v2361_v25  ;;  %v755_v43 = vmul.f32 %v2224_v18, %v2724_v15  ;;  %v872_v56 = vpop.xlane.xlu1 %871 }
 0x5dc   :  { %v2226_v11 = vpop.eup %2225  ;;  %2227 = vrcp.f32 %v872_v56 }
 0x5dd   :  { %v756_v7 = vmul.f32 %v2226_v11, %v2728_v19  ;;  %v1437_v11 = vld [vmem:[#allocation4 + $0x48] sm:$0xff] }
 0x5df   :  { %v999_v10 = vpop.xlane.xlu0 %998  ;;  %v757_v21 = vpack.c.bf16 %v756_v7, %v755_v43 }
 0x5e1   :  { %2030 = vmatmul.mubr.msk.bf16.vlgmr.msra.gmra.mrb[16].mxu0 %vm365_vm3, %v757_v21 }
 0x5e2   :  { %2040 = vmatpush3.bf16.msra.mxu0 %v810_v24  ;;  %2041 = vmatprep.mubr.msk.bf16.mxu0 %vm2362_vm2, %v2361_v25 }
 0x5e3   :  { %v255_v27 = vpop.permute.xlu0 %254  ;;  %2051 = vmatprep.subr.bf16.mxu0 %v2361_v25 }
 0x5e4   :  { %261 = vst.msk [vmem:[#allocation4 + $0x30] sm:$0xff] %vm161_vm1, %v255_v27 }
 0x5e6   :  { %v2228_v14 = vpop.eup %2227 }
 0x5e7   :  { %v878_v34 = vmul.f32 %v2228_v14, %v2733_v23 }
 0x5eb   :  { %v1060_v2 = vld [vmem:[#allocation4 + $0x30] sm:$0xff] }
 0x606   :  { %v875_v17 = vpop.xlane.xlu1 %874 }
 0x607   :  { %2229 = vrcp.f32 %v875_v17 }
 0x60a   :  { %v1002_v15 = vpop.xlane.xlu1 %1001 }
 0x60b   :  { %2231 = vrcp.f32 %v1002_v15 }
 0x60c   :  { %2233 = vrcp.f32 %v999_v10 }
 0x60e   :  { %v1122_v19 = vpop.xlane.xlu1 %1121 }
 0x611   :  { %v2230_v33 = vpop.eup %2229 }
 0x612   :  { %v879_v36 = vmul.f32 %v2230_v33, %v2748_v53  ;;  %v1125_v52 = vpop.xlane.xlu1 %1124 }
 0x613   :  { %2235 = vrcp.f32 %v1125_v52 }
 0x614   :  { %v880_v37 = vpack.c.bf16 %v879_v36, %v878_v34  ;;  %2237 = vrcp.f32 %v1122_v19 }
 0x615   :  { %v2232_v41 = vpop.eup %2231 }
 0x616   :  { %2042 = vmatmul.mubr.msk.bf16.vlgmr.msra.gmra.mrb[20].mxu0 %vm365_vm3, %v880_v37  ;;  %v257_v44 = vpop.permute.xlu1 %256  ;;  %v2234_v45 = vpop.eup %2233  ;;  %v1006_v23 = vmul.f32 %v2232_v41, %v2752_v54 }
 0x617   :  { %2052 = vmatpush3.bf16.msra.mxu0 %v937_v42  ;;  %262 = vst.msk [vmem:[#allocation4 + $0x38] sm:$0xff] %vm161_vm1, %v257_v44  ;;  %2053 = vmatprep.mubr.msk.bf16.mxu0 %vm2362_vm2, %v2361_v25  ;;  %v1005_v53 = vmul.f32 %v2234_v45, %v2738_v30 }
 0x618   :  { %2063 = vmatprep.subr.bf16.mxu0 %v2361_v25 }
 0x619   :  { %v1007_v46 = vpack.c.bf16 %v1006_v23, %v1005_v53 }
 0x61c   :  { %v1249_v47 = vpop.xlane.xlu0 %1248 }
 0x61d   :  { %v2236_v62 = vpop.eup %2235  ;;  %2239 = vrcp.f32 %v1249_v47 }
 0x61e   :  { %2054 = vmatmul.mubr.msk.bf16.vlgmr.msra.gmra.mrb[24].mxu0 %vm365_vm3, %v1007_v46  ;;  %v2238_v8 = vpop.eup %2237  ;;  %v1129_v50 = vmul.f32 %v2236_v62, %v2762_v1  ;;  %v1187_v30 = vld [vmem:[#allocation4 + $0x38] sm:$0xff] }
 0x61f   :  { %2064 = vmatpush3.bf16.msra.mxu0 %v1060_v2  ;;  %2065 = vmatprep.mubr.msk.bf16.mxu0 %vm2362_vm2, %v2361_v25  ;;  %v1128_v54 = vmul.f32 %v2238_v8, %v2756_v22 }
 0x620   :  { %2075 = vmatprep.subr.bf16.mxu0 %v2361_v25  ;;  %v1502_v38 = vpop.xlane.xlu0 %1501 }
 0x621   :  { %v1130_v51 = vpack.c.bf16 %v1129_v50, %v1128_v54 }
 0x624   :  { %v1625_v58 = vpop.xlane.xlu0 %1624 }
 0x626   :  { %2066 = vmatmul.mubr.msk.bf16.vlgmr.msra.gmra.mrb[28].mxu0 %vm365_vm3, %v1130_v51 }
 0x627   :  { %2076 = vmatpush3.bf16.msra.mxu0 %v1187_v30  ;;  %2077 = vmatprep.mubr.msk.bf16.mxu0 %vm2362_vm2, %v2361_v25  ;;  %v2240_v32 = vpop.eup %2239 }
 0x628   :  { %2087 = vmatprep.subr.bf16.mxu0 %v2361_v25  ;;  %v1255_v5 = vmul.f32 %v2240_v32, %v2767_v13 }
 0x62c   :  { %v1749_v59 = vpop.xlane.xlu0 %1748 }
 0x630   :  { %v1752_v61 = vpop.xlane.xlu0 %1751 }
 0x634   :  { %v307_v63 = vpop.permute.xlu0 %306 }
 0x635   :  { %313 = vst.msk [vmem:[#allocation4 + $0x50] sm:$0xff] %vm161_vm1, %v307_v63 }
 0x63c   :  { %v1560_v21 = vld [vmem:[#allocation4 + $0x50] sm:$0xff] }
 0x647   :  { %v1252_v1 = vpop.xlane.xlu1 %1251 }
 0x648   :  { %2241 = vrcp.f32 %v1252_v1 }
 0x64b   :  { %v1372_v22 = vpop.xlane.xlu1 %1371 }
 0x64c   :  { %2243 = vrcp.f32 %v1372_v22 }
 0x64f   :  { %v1375_v29 = vpop.xlane.xlu1 %1374 }
 0x650   :  { %2245 = vrcp.f32 %v1375_v29 }
 0x652   :  { %v2242_v3 = vpop.eup %2241 }
 0x653   :  { %v1256_v9 = vmul.f32 %v2242_v3, %v2796_v49  ;;  %v1499_v6 = vpop.xlane.xlu1 %1498 }
 0x654   :  { %2247 = vrcp.f32 %v1499_v6 }
 0x655   :  { %v1257_v35 = vpack.c.bf16 %v1256_v9, %v1255_v5  ;;  %2249 = vrcp.f32 %v1502_v38 }
 0x656   :  { %v2244_v57 = vpop.eup %2243 }
 0x657   :  { %2078 = vmatmul.mubr.msk.bf16.vlgmr.msra.gmra.mrb[32].mxu0 %vm365_vm3, %v1257_v35  ;;  %v1622_v12 = vpop.xlane.xlu1 %1621  ;;  %v1378_v13 = vmul.f32 %v2244_v57, %v2802_v0 }
 0x658   :  { %2088 = vmatpush3.bf16.msra.mxu0 %v1310_v60  ;;  %2089 = vmatprep.mubr.msk.bf16.mxu0 %vm2362_vm2, %v2361_v25  ;;  %2251 = vrcp.f32 %v1622_v12 }
 0x659   :  { %2099 = vmatprep.subr.bf16.mxu0 %v2361_v25  ;;  %2253 = vrcp.f32 %v1625_v58 }
 0x65a   :  { %v2246_v26 = vpop.eup %2245  ;;  %2255 = vrcp.f32 %v1752_v61 }
 0x65b   :  { %v1379_v49 = vmul.f32 %v2246_v26, %v2806_v4  ;;  %v309_v40 = vpop.permute.xlu1 %308  ;;  %2257 = vrcp.f32 %v1749_v59 }
 0x65c   :  { %314 = vst.msk [vmem:[#allocation4 + $0x58] sm:$0xff] %vm161_vm1, %v309_v40  ;;  %v1811_v40 = vld [vmem:[#allocation11 + $0x8] sm:$0xff] }
 0x65d   :  { %v1380_v16 = vpack.c.bf16 %v1379_v49, %v1378_v13  ;;  %v1810_v49 = vld [vmem:[#allocation11] sm:$0xff] }
 0x65e   :  { %v2248_v18 = vpop.eup %2247 }
 0x65f   :  { %2090 = vmatmul.mubr.msk.bf16.vlgmr.msra.gmra.mrb[36].mxu0 %vm365_vm3, %v1380_v16  ;;  %v2250_v43 = vpop.eup %2249  ;;  %v1505_v7 = vmul.f32 %v2248_v18, %v2810_v39  ;;  %v1816_v18 = vpack.c.bf16 %v1811_v40, %v1810_v49 }
 0x660   :  { %2100 = vmatpush3.bf16.msra.mxu0 %v1437_v11  ;;  %2101 = vmatprep.mubr.msk.bf16.mxu0 %vm2362_vm2, %v2361_v25  ;;  %v1506_v0 = vmul.f32 %v2250_v43, %v2772_v20 }
 0x661   :  { %2111 = vmatprep.subr.bf16.mxu0 %v2361_v25  ;;  %2129 = vmatprep.subr.bf16.mxu1 %v1816_v18 }
 0x662   :  { %v1507_v4 = vpack.c.bf16 %v1506_v0, %v1505_v7  ;;  %v2252_v10 = vpop.eup %2251  ;;  %2130 = vmatpush3.bf16.msra.mxu1 %v1816_v18  ;;  %v1812_v0 = vld [vmem:[#allocation11 + $0x10] sm:$0xff] }
 0x663   :  { %v2254_v24 = vpop.eup %2253  ;;  %v1628_v27 = vmul.f32 %v2252_v10, %v2814_v55  ;;  %v1687_v17 = vld [vmem:[#allocation4 + $0x58] sm:$0xff] }
 0x664   :  { %v1629_v39 = vmul.f32 %v2254_v24, %v2777_v28  ;;  %v2256_v20 = vpop.eup %2255  ;;  %v1814_v24 = vld [vmem:[#allocation11 + $0x20] sm:$0xff] }
 0x665   :  { %v2258_v15 = vpop.eup %2257  ;;  %v1756_v19 = vmul.f32 %v2256_v20, %v2787_v31 }
 0x666   :  { %v1630_v56 = vpack.c.bf16 %v1629_v39, %v1628_v27  ;;  %v1755_v14 = vmul.f32 %v2258_v15, %v2783_v48  ;;  %v1815_v27 = vld [vmem:[#allocation11 + $0x28] sm:$0xff] }
 0x667   :  { %2102 = vmatmul.mubr.msk.bf16.vlgmr.msra.gmra.mrb[40].mxu0 %vm365_vm3, %v1507_v4  ;;  %v1813_v4 = vld [vmem:[#allocation11 + $0x18] sm:$0xff] }
 0x668   :  { %2112 = vmatpush3.bf16.msra.mxu0 %v1560_v21  ;;  %2113 = vmatprep.mubr.msk.bf16.mxu0 %vm2362_vm2, %v2361_v25  ;;  %v1757_v33 = vpack.c.bf16 %v1756_v19, %v1755_v14  ;;  %v1817_v10 = vpack.c.bf16 %v1813_v4, %v1812_v0 }
 0x669   :  { %2123 = vmatprep.subr.bf16.mxu0 %v2361_v25 }
 0x66a   :  { %2131 = vmatprep.subr.bf16.mxu1 %v1817_v10 }
 0x66b   :  { %2132 = vmatpush3.bf16.msra.mxu1 %v1817_v10 }
 0x66f   :  { %2114 = vmatmul.mubr.msk.bf16.vlgmr.msra.gmra.mrb[44].mxu0 %vm365_vm3, %v1630_v56  ;;  %v1818_v56 = vpack.c.bf16 %v1815_v27, %v1814_v24 }
 0x670   :  { %2124 = vmatpush3.bf16.msra.mxu0 %v1687_v17  ;;  %2125 = vmatprep.mubr.msk.bf16.mxu0 %vm2362_vm2, %v2361_v25 }
 0x671   :  { %2133 = vmatprep.subr.bf16.mxu1 %v1818_v56 }
 0x672   :  { %2134 = vmatpush3.bf16.msra.mxu1 %v1818_v56 }
 0x677   :  { %2126 = vmatmul.mubr.msk.bf16.vlgmr.msra.gmra.mrb[48].mxu0 %vm365_vm3, %v1757_v33 }
 0x6a4   :  { %v548_v55 = vpop.f32.mrb[8].mxu0 }
 0x6a5   :  { %v2007_v34 = vpop.f32.mrb[9].mxu0 }
 0x6a6   :  { %v551_v28 = vpop.f32.mrb[10].mxu0 }
 0x6a7   :  { %v555_v36 = vpack.c.bf16 %v551_v28, %v548_v55  ;;  %v2008_v52 = vpop.f32.mrb[11].mxu0 }
 0x6a9   :  { %557 = vst.msk [vmem:[#allocation5 + $0x8] sm:$0xff] %vm161_vm1, %v555_v36 }
 0x6ac   :  { %v668_v37 = vpop.f32.mrb[12].mxu0 }
 0x6ad   :  { %v2019_v41 = vpop.f32.mrb[13].mxu0 }
 0x6ae   :  { %v671_v42 = vpop.f32.mrb[14].mxu0 }
 0x6af   :  { %v675_v44 = vpack.c.bf16 %v671_v42, %v668_v37  ;;  %v2020_v45 = vpop.f32.mrb[15].mxu0 }
 0x6b1   :  { %677 = vrot.lane.b32.xlu0 %v675_v44, %s2358_s17 }
 0x6b4   :  { %v795_v25 = vpop.f32.mrb[16].mxu0 }
 0x6b5   :  { %v2031_v31 = vpop.f32.mrb[17].mxu0 }
 0x6b6   :  { %v798_v48 = vpop.f32.mrb[18].mxu0 }
 0x6b7   :  { %v802_v23 = vpack.c.bf16 %v798_v48, %v795_v25  ;;  %v2032_v53 = vpop.f32.mrb[19].mxu0  ;;  %v1929_v48 = vld [vmem:[%s2925_s4] ss:$0 sm:$0xff]  ;;  %s2325_s4 = scalar_lea.vmem %s1891_s23, 512 }
 0x6b8   :  { %p2326_p10 = scmp.ne.s32.totalorder %s1891_s23, %s2325_s4  ;;  %p2331_p12 = scmp.lt.s32.totalorder %s2325_s4, %s2325_s4 }
 0x6b9   :  { %804 = vrot.lane.b32.xlu0 %v802_v23, %s2358_s17 }
 0x6ba   :  { %p2332_p13 = por %p2331_p12, %p2330_p11 }
 0x6bc   :  { %p2333_p0 = pnand %p2332_p13, %p2326_p10 }
 0x6e9   :  { %v918_v47 = vpop.f32.mrb[20].mxu0 }
 0x6ea   :  { %v2043_v46 = vpop.f32.mrb[21].mxu0 }
 0x6eb   :  { %v921_v62 = vpop.f32.mrb[22].mxu0 }
 0x6ec   :  { %v925_v2 = vpack.c.bf16 %v921_v62, %v918_v47  ;;  %v2044_v8 = vpop.f32.mrb[23].mxu0 }
 0x6ee   :  { %927 = vrot.lane.b32.xlu0 %v925_v2, %s2355_s29 }
 0x6f1   :  { %v1045_v50 = vpop.f32.mrb[24].mxu0 }
 0x6f2   :  { %v2055_v54 = vpop.f32.mrb[25].mxu0 }
 0x6f3   :  { %v1048_v38 = vpop.f32.mrb[26].mxu0 }
 0x6f4   :  { %v1052_v51 = vpack.c.bf16 %v1048_v38, %v1045_v50  ;;  %v2056_v30 = vpop.f32.mrb[27].mxu0 }
 0x6f6   :  { %1054 = vrot.lane.b32.xlu1 %v1052_v51, %s2355_s29 }
 0x6f9   :  { %v1168_v58 = vpop.f32.mrb[28].mxu0 }
 0x6fa   :  { %v2067_v59 = vpop.f32.mrb[29].mxu0 }
 0x6fb   :  { %v1171_v61 = vpop.f32.mrb[30].mxu0 }
 0x6fc   :  { %v1175_v63 = vpack.c.bf16 %v1171_v61, %v1168_v58  ;;  %v2068_v1 = vpop.f32.mrb[31].mxu0 }
 0x6fe   :  { %1177 = vrot.lane.b32.xlu0 %v1175_v63, %s2370_s14 }
 0x723   :  { %v678_v22 = vpop.permute.xlu0 %677 }
 0x724   :  { %681 = vst.msk [vmem:[#allocation5] sm:$0xff] %vm680_vm4, %v678_v22 }
 0x72a   :  { %v1295_v29 = vpop.f32.mrb[32].mxu0 }
 0x72b   :  { %v805_v32 = vpop.permute.xlu0 %804  ;;  %v2079_v3 = vpop.f32.mrb[33].mxu0 }
 0x72c   :  { %807 = vst.msk [vmem:[#allocation5 + $0x8] sm:$0xff] %vm680_vm4, %v805_v32  ;;  %v1298_v5 = vpop.f32.mrb[34].mxu0 }
 0x72d   :  { %v1302_v9 = vpack.c.bf16 %v1298_v5, %v1295_v29  ;;  %v2080_v6 = vpop.f32.mrb[35].mxu0 }
 0x72f   :  { %1304 = vrot.lane.b32.xlu1 %v1302_v9, %s2370_s14 }
 0x732   :  { %v1418_v35 = vpop.f32.mrb[36].mxu0 }
 0x733   :  { %v2091_v60 = vpop.f32.mrb[37].mxu0 }
 0x734   :  { %v1421_v12 = vpop.f32.mrb[38].mxu0 }
 0x735   :  { %v1425_v57 = vpack.c.bf16 %v1421_v12, %v1418_v35  ;;  %v2092_v26 = vpop.f32.mrb[39].mxu0 }
 0x737   :  { %1427 = vrot.lane.b32.xlu0 %v1425_v57, %s2364_s8 }
 0x73a   :  { %v1545_v13 = vpop.f32.mrb[40].mxu0 }
 0x73b   :  { %v2103_v16 = vpop.f32.mrb[41].mxu0 }
 0x73c   :  { %v1548_v11 = vpop.f32.mrb[42].mxu0 }
 0x73d   :  { %v1552_v43 = vpack.c.bf16 %v1548_v11, %v1545_v13  ;;  %v2104_v7 = vpop.f32.mrb[43].mxu0 }
 0x73f   :  { %1554 = vrot.lane.b32.xlu1 %v1552_v43, %s2364_s8 }
 0x742   :  { %v1668_v21 = vpop.f32.mrb[44].mxu0 }
 0x743   :  { %v2115_v39 = vpop.f32.mrb[45].mxu0 }
 0x744   :  { %v1671_v20 = vpop.f32.mrb[46].mxu0 }
 0x745   :  { %v1675_v17 = vpack.c.bf16 %v1671_v20, %v1668_v21  ;;  %v2116_v15 = vpop.f32.mrb[47].mxu0 }
 0x747   :  { %1677 = vrot.lane.b32.xlu0 %v1675_v17, %s2375_s20 }
 0x74a   :  { %v1795_v19 = vpop.f32.mrb[48].mxu0 }
 0x74b   :  { %v2127_v14 = vpop.f32.mrb[49].mxu0 }
 0x74c   :  { %v1798_v33 = vpop.f32.mrb[50].mxu0 }
 0x74d   :  { %v1802_v55 = vpack.c.bf16 %v1798_v33, %v1795_v19  ;;  %v2128_v34 = vpop.f32.mrb[51].mxu0 }
 0x74f   :  { %1804 = vrot.lane.b32.xlu1 %v1802_v55, %s2375_s20 }
 0x760   :  { %v928_v28 = vpop.permute.xlu0 %927 }
 0x761   :  { %931 = vst.msk [vmem:[#allocation5] sm:$0xff] %vm930_vm5, %v928_v28 }
 0x768   :  { %v1055_v36 = vpop.permute.xlu1 %1054 }
 0x769   :  { %1057 = vst.msk [vmem:[#allocation5 + $0x8] sm:$0xff] %vm930_vm5, %v1055_v36 }
 0x770   :  { %v1178_v52 = vpop.permute.xlu0 %1177 }
 0x771   :  { %1181 = vst.msk [vmem:[#allocation5] sm:$0xff] %vm1180_vm6, %v1178_v52 }
 0x7a1   :  { %v1305_v37 = vpop.permute.xlu1 %1304 }
 0x7a2   :  { %1307 = vst.msk [vmem:[#allocation5 + $0x8] sm:$0xff] %vm1180_vm6, %v1305_v37 }
 0x7a9   :  { %v1428_v41 = vpop.permute.xlu0 %1427 }
 0x7aa   :  { %1431 = vst.msk [vmem:[#allocation5] sm:$0xff] %vm1430_vm7, %v1428_v41 }
 0x7b1   :  { %v1555_v42 = vpop.permute.xlu1 %1554 }
 0x7b2   :  { %1557 = vst.msk [vmem:[#allocation5 + $0x8] sm:$0xff] %vm1430_vm7, %v1555_v42 }
 0x7b9   :  { %v1678_v44 = vpop.permute.xlu0 %1677 }
 0x7ba   :  { %1681 = vst.msk [vmem:[#allocation5] sm:$0xff] %vm1680_vm8, %v1678_v44 }
 0x7c1   :  { %v1805_v45 = vpop.permute.xlu1 %1804  ;;  %v1808_v25 = vld [vmem:[#allocation5] sm:$0xff] }
 0x7c2   :  { %1807 = vst.msk [vmem:[#allocation5 + $0x8] sm:$0xff] %vm1680_vm8, %v1805_v45  ;;  %2135 = vmatprep.mubr.msk.bf16.mxu1 %vm99_vm0, %v1808_v25 }
 0x7c9   :  { %v1809_v31 = vld [vmem:[#allocation5 + $0x8] sm:$0xff] }
 0x7ca   :  { %2136 = vmatmul.mubr.msk.bf16.vlgmr.msra.gmra.mrb[52].mxu1 %vm99_vm0, %v1809_v31 }
 0x89d   :  { %v2137_v23 = vpop.f32.mrb[52].mxu1 }
 0x89e   :  { %v1875_v53 = vadd.f32 %v2137_v23, %v1929_v48  ;;  %v1866_v47 = vpop.f32.mrb[53].mxu1 }
 0x89f   :  { %v1867_v46 = vadd.f32 %v1929_v48, %v1866_v47  ;;  %v2138_v62 = vpop.f32.mrb[54].mxu1 }
 0x8a0   :  { %1883 = vst.msk [vmem:[#allocation12 + $0x10] sm:$0xff] %vm99_vm0, %v1875_v53  ;;  %v1878_v2 = vadd.f32 %v2138_v62, %v1929_v48  ;;  %v1869_v8 = vpop.f32.mrb[55].mxu1 }
 0x8a1   :  { %1881 = vst.msk [vmem:[#allocation12] sm:$0xff] %vm99_vm0, %v1867_v46  ;;  %v1870_v50 = vadd.f32 %v1929_v48, %v1869_v8 }
 0x8a2   :  { %1884 = vst.msk [vmem:[#allocation12 + $0x18] sm:$0xff] %vm99_vm0, %v1878_v2 }
 0x8a3   :  { %1882 = vst.msk [vmem:[#allocation12 + $0x8] sm:$0xff] %vm99_vm0, %v1870_v50 }
 0x8a4   :  { %2336 = shalt.err (!%p2333_p0)
}
 0x8a5   :  { %s2337_s26 = scalar_lea.hbm %s2926_s5, 512 }
 0x8a6   :  { %p2338_p1 = scmp.ne.s32.totalorder %s2926_s5, %s2337_s26  ;;  %p2341_p2 = scmp.lt.u32.totalorder %s2337_s26, %s2926_s5 }
 0x8a8   :  { %p2343_p3 = pnand %p2341_p2, %p2338_p1 }
 0x8aa   :  { %2346 = shalt.err (!%p2343_p3)
}
 0x8ab   :  { %1896 = dma.vmem_to_hbm [thread:$0]  %s1891_s23, 512, %s2926_s5, [#allocation8], %s2357_s1, %s2357_s1, %s2358_s17  }
 0x8ac   :  { %2351 = dma.done.wait [#allocation8], 512  }
 0x8ad   :  { %2352 = vsyncadd [#allocation8], 4294966784 }
 0x8ae   :  { %1900 = vsyncpa [#allocation7], 1 }
 0x8af   :  { %1901 = vsyncpa [#allocation10], 1 }
 0x8b0   :  { %1902 = vsyncpa [#allocation8], 1 }

// kernel: tpu_custom_call.1
= control target key start
LH: loop header
LB: loop body
LE: loop exit
PB: predicated region body
PF: predicated region fallthrough
CT: control target
= control target key end

     0   :  { %10 = vsyncpa [#allocation7], 0  ;;  %s2921_s0 = inlined_call_operand.hbm [shape: f32[2,16,48], index: 0, kind: input, shape index: {}]   ;;  %s2922_s1 = inlined_call_operand.hbm [shape: f32[48,144], index: 1, kind: input, shape index: {}]   ;;  %s2923_s2 = inlined_call_operand.vmem [shape: f32[1,144], index: 2, kind: input, shape index: {}]   ;;  %s2924_s3 = inlined_call_operand.hbm [shape: f32[48,48], index: 3, kind: input, shape index: {}]   ;;  %s2925_s4 = inlined_call_operand.vmem [shape: f32[1,48], index: 4, kind: input, shape index: {}]   ;;  %s2926_s5 = inlined_call_operand.hbm [shape: f32[2,16,48], index: 5, kind: output, shape index: {}]  }
   0x1   :  { %11 = vsyncpa [#allocation10], 0 }
   0x2   :  { %12 = vsyncpa [#allocation8], 0  ;;  %s2353_s18 = smov [#allocation9]   ;;  %s2259_s22 = scalar_lea.hbm %s2922_s1, 1536 }
   0x3   :  { %s30_s19 = sshll.u32 %s2353_s18, 4  ;;  %p2260_p0 = scmp.ne.s32.totalorder %s2922_s1, %s2259_s22  ;;  %s31_s19 = int_to_ptr.vmem [resolvable:$true] %s30_s19 }
   0x4   :  { %p2263_p1 = scmp.lt.u32.totalorder %s2259_s22, %s2922_s1 }
   0x6   :  { %p2265_p2 = pnand %p2263_p1, %p2260_p0 }
   0x8   :  { %2268 = shalt.err (!%p2265_p2)
}
   0x9   :  { %s2269_s27 = scalar_lea.vmem %s31_s19, 1536  ;;  %p2274_p4 = scmp.lt.s32.totalorder %s31_s19, %s31_s19 }
   0xa   :  { %p2270_p3 = scmp.ne.s32.totalorder %s31_s19, %s2269_s27  ;;  %p2275_p5 = scmp.lt.s32.totalorder %s2269_s27, %s2269_s27 }
   0xc   :  { %p2276_p6 = por %p2275_p5, %p2274_p4 }
   0xe   :  { %p2277_p7 = pnand %p2276_p6, %p2270_p3 }
  0x10   :  { %2280 = shalt.err (!%p2277_p7)
}
  0x11   :  { %s2354_s28 = smov 256   ;;  %s2355_s29 = smov 16  }
  0x12   :  { %36 = dma.hbm_to_vmem [thread:$0]  %s2922_s1, 1536, %s31_s19, [#allocation10], %s2354_s28, %s2354_s28, %s2355_s29  }
  0x13   :  { %s2356_s7 = smov [#allocation6]   ;;  %s2281_s11 = scalar_lea.hbm %s2921_s0, 512 }
  0x14   :  { %s18_s8 = sshll.u32 %s2356_s7, 4  ;;  %p2282_p8 = scmp.ne.s32.totalorder %s2921_s0, %s2281_s11  ;;  %s19_s8 = int_to_ptr.vmem [resolvable:$true] %s18_s8 }
  0x15   :  { %p2285_p9 = scmp.lt.u32.totalorder %s2281_s11, %s2921_s0 }
  0x17   :  { %p2287_p10 = pnand %p2285_p9, %p2282_p8 }
  0x19   :  { %2290 = shalt.err (!%p2287_p10)
}
  0x1a   :  { %s2291_s16 = scalar_lea.vmem %s19_s8, 512  ;;  %p2296_p12 = scmp.lt.s32.totalorder %s19_s8, %s19_s8 }
  0x1b   :  { %p2292_p11 = scmp.ne.s32.totalorder %s19_s8, %s2291_s16  ;;  %p2297_p13 = scmp.lt.s32.totalorder %s2291_s16, %s2291_s16 }
  0x1d   :  { %p2298_p0 = por %p2297_p13, %p2296_p12 }
  0x1f   :  { %p2299_p1 = pnand %p2298_p0, %p2292_p11 }
  0x21   :  { %2302 = shalt.err (!%p2299_p1)
}
  0x22   :  { %s2357_s1 = smov 128   ;;  %s2358_s17 = smov 8  }
  0x23   :  { %24 = dma.hbm_to_vmem [thread:$0]  %s2921_s0, 512, %s19_s8, [#allocation7], %s2357_s1, %s2357_s1, %s2358_s17  }
  0x24   :  { %s2359_s20 = smov [#allocation11]   ;;  %s2303_s24 = scalar_lea.hbm %s2924_s3, 768 }
  0x25   :  { %s44_s21 = sshll.u32 %s2359_s20, 4  ;;  %p2304_p2 = scmp.ne.s32.totalorder %s2924_s3, %s2303_s24  ;;  %s45_s21 = int_to_ptr.vmem [resolvable:$true] %s44_s21 }
  0x26   :  { %p2307_p3 = scmp.lt.u32.totalorder %s2303_s24, %s2924_s3 }
  0x28   :  { %p2309_p4 = pnand %p2307_p3, %p2304_p2 }
  0x2a   :  { %2312 = shalt.err (!%p2309_p4)
}
  0x2b   :  { %s2313_s30 = scalar_lea.vmem %s45_s21, 768  ;;  %p2318_p6 = scmp.lt.s32.totalorder %s45_s21, %s45_s21 }
  0x2c   :  { %p2314_p5 = scmp.ne.s32.totalorder %s45_s21, %s2313_s30  ;;  %p2319_p7 = scmp.lt.s32.totalorder %s2313_s30, %s2313_s30 }
  0x2e   :  { %p2320_p8 = por %p2319_p7, %p2318_p6 }
  0x30   :  { %p2321_p9 = pnand %p2320_p8, %p2314_p5 }
  0x32   :  { %2324 = shalt.err (!%p2321_p9)
}
  0x33   :  { %50 = dma.hbm_to_vmem [thread:$0]  %s2924_s3, 768, %s45_s21, [#allocation10], %s2357_s1, %s2357_s1, %s2358_s17  }
  0x34   :  { %2347 = dma.done.wait [#allocation7], 512  }
  0x35   :  { %2348 = vsyncadd [#allocation7], 4294966784 }
  0x36   :  { %2349 = dma.done.wait [#allocation10], 2304  }
  0x37   :  { %2350 = vsyncadd [#allocation10], 4294964992  ;;  %v2360_v0 = vmov 0   ;;  %v70_v1 = vld [vmem:[#allocation9 + $0x8] sm:$0xff]  ;;  %v72_v2 = vld [vmem:[#allocation9 + $0x18] sm:$0xff]  ;;  %vm99_vm0 = vcmask 392192   ;;  %v89_v22 = vlaneseq }
  0x38   :  { %138 = vmatprep.mubr.bf16.mxu0 %v2360_v0  ;;  %v69_v3 = vld [vmem:[#allocation9] sm:$0xff]  ;;  %v82_v4 = vpack.c.bf16 %v72_v2, %v70_v1  ;;  %v71_v5 = vld [vmem:[#allocation9 + $0x10] sm:$0xff]  ;;  %v74_v6 = vld [vmem:[#allocation9 + $0x28] sm:$0xff]  ;;  %v2361_v25 = vmov 0.0   ;;  %vm161_vm1 = vcmask 64512   ;;  %vm2362_vm2 = vmmov 0  }
  0x39   :  { %v76_v7 = vld [vmem:[#allocation9 + $0x38] sm:$0xff]  ;;  %v81_v8 = vpack.c.bf16 %v71_v5, %v69_v3  ;;  %v73_v10 = vld [vmem:[#allocation9 + $0x20] sm:$0xff]  ;;  %v75_v11 = vld [vmem:[#allocation9 + $0x30] sm:$0xff]  ;;  %v90_v23 = vshrl.u32 %v89_v22, 7  ;;  %1985 = vmatprep.subr.bf16.mxu1 %v2361_v25  ;;  %1987 = vmatprep.mubr.msk.bf16.mxu1 %vm2362_vm2, %v2361_v25  ;;  %vm365_vm3 = vcmask 130048   ;;  %s2364_s8 = smov 32  }
  0x3a   :  { %v84_v9 = vpack.c.bf16 %v76_v7, %v74_v6  ;;  %v78_v12 = vld [vmem:[#allocation9 + $0x48] sm:$0xff]  ;;  %106 = vmatprep.subr.bf16.mxu0 %v82_v4  ;;  %v80_v13 = vld [vmem:[#allocation9 + $0x58] sm:$0xff]  ;;  %v83_v14 = vpack.c.bf16 %v75_v11, %v73_v10  ;;  %v77_v16 = vld [vmem:[#allocation9 + $0x40] sm:$0xff]  ;;  %s2365_s9 = smov 120   ;;  %s2366_s10 = smov 112   ;;  %vm680_vm4 = vcmask 130112  }
  0x3b   :  { %107 = vmatpush1.bf16.msra.mxu0 %v81_v8  ;;  %v86_v15 = vpack.c.bf16 %v80_v13, %v78_v12  ;;  %v79_v17 = vld [vmem:[#allocation9 + $0x50] sm:$0xff]  ;;  %v63_v19 = vld [vmem:[#allocation6] sm:$0xff]  ;;  %v64_v20 = vld [vmem:[#allocation6 + $0x8] sm:$0xff]  ;;  %v91_v24 = vsub.s32 0, %v90_v23  ;;  %v95_v27 = vsub.s32 1, %v90_v23  ;;  %s2367_s11 = smov 104  }
  0x3c   :  { %108 = vmatprep.subr.bf16.mxu0 %v84_v9  ;;  %v85_v18 = vpack.c.bf16 %v79_v17, %v77_v16  ;;  %v67_v21 = vpack.c.bf16 %v64_v20, %v63_v19  ;;  %v87_v26 = vld [vmem:[%s2923_s2] sm:$0x3]  ;;  %s2363_s2 = smov 80   ;;  %v66_v41 = vld [vmem:[#allocation6 + $0x18] sm:$0xff]  ;;  %s2368_s12 = smov 96   ;;  %vm930_vm5 = vcmask 195712  }
  0x3d   :  { %v92_v28 = vrot.slane %v87_v26, %v91_v24  ;;  %v96_v30 = vrot.slane %v87_v26, %v95_v27  ;;  %v65_v40 = vld [vmem:[#allocation6 + $0x10] sm:$0xff]  ;;  %s2369_s13 = smov 88   ;;  %s2370_s14 = smov 24   ;;  %vm1180_vm6 = vcmask 261312   ;;  %vm1430_vm7 = vcmask 326912  }
  0x3e   :  { %v68_v42 = vpack.c.bf16 %v66_v41, %v65_v40  ;;  %s2371_s15 = smov 72   ;;  %s2372_s16 = smov 64   ;;  %vm1680_vm8 = vcmask 392512  }
  0x3f   :  { %109 = vmatpush1.bf16.msra.mxu0 %v83_v14  ;;  %s2373_s18 = smov 56   ;;  %s2374_s19 = smov 48  }
  0x40   :  { %110 = vmatprep.subr.bf16.mxu0 %v86_v15  ;;  %s2375_s20 = smov 40   ;;  %s2376_s22 = smov [#allocation12]  }
  0x41   :  { %s1890_s23 = sshll.u32 %s2376_s22, 4  ;;  %s1891_s23 = int_to_ptr.vmem [resolvable:$true] %s1890_s23 }
  0x42   :  { %p2330_p11 = scmp.lt.s32.totalorder %s1891_s23, %s1891_s23 }
  0x43   :  { %111 = vmatpush1.bf16.msra.mxu0 %v85_v18 }
  0x44   :  { %2003 = vmatprep.subr.bf16.mxu0 %v2361_v25 }
  0x46   :  { %1903 = vmatmul.mubr.msk.bf16.vlgmr.msra.gmra.mrb[0].mxu0 %vm99_vm0, %v67_v21 }
  0x47   :  { %148 = vmatprep.mubr.bf16.mxu0 %v2360_v0 }
  0x4e   :  { %1904 = vmatmul.mubr.msk.bf16.gmra.mrb[4].mxu0 %vm99_vm0, %v68_v42 }
  0x4f   :  { %2005 = vmatprep.mubr.msk.bf16.mxu0 %vm2362_vm2, %v2361_v25 }
 0x119   :  { %v140_v29 = vpop.f32.mrb[0].mxu0 }
 0x11a   :  { %v142_v31 = vpop.f32.mrb[1].mxu0  ;;  %v141_v33 = vadd.f32 %v140_v29, %v92_v28 }
 0x11b   :  { %v144_v32 = vpop.f32.mrb[2].mxu0  ;;  %v143_v36 = vadd.f32 %v142_v31, %v96_v30 }
 0x11c   :  { %v145_v34 = vadd.f32 %v144_v32, %v92_v28  ;;  %v146_v35 = vpop.f32.mrb[3].mxu0 }
 0x11d   :  { %v147_v37 = vadd.f32 %v146_v35, %v96_v30 }
 0x11e   :  { %v2458_v38 = vpack.c.bf16 %v145_v34, %v141_v33 }
 0x11f   :  { %v2460_v39 = vpack.c.bf16 %v147_v37, %v143_v36 }
 0x120   :  { %162 = vst.msk [vmem:[#allocation2] sm:$0xff] %vm161_vm1, %v2458_v38  ;;  %166 = vrot.lane.b32.xlu0 %v2458_v38, %s2363_s2 }
 0x121   :  { %284 = vst.msk [vmem:[#allocation4 + $0x40] sm:$0xff] %vm161_vm1, %v2460_v39  ;;  %v150_v47 = vpop.f32.mrb[4].mxu0 }
 0x122   :  { %v151_v48 = vadd.f32 %v150_v47, %v92_v28  ;;  %v152_v49 = vpop.f32.mrb[5].mxu0 }
 0x123   :  { %v154_v50 = vpop.f32.mrb[6].mxu0  ;;  %v153_v53 = vadd.f32 %v152_v49, %v96_v30 }
 0x124   :  { %v155_v51 = vadd.f32 %v154_v50, %v92_v28  ;;  %v156_v54 = vpop.f32.mrb[7].mxu0 }
 0x125   :  { %v157_v55 = vadd.f32 %v156_v54, %v96_v30 }
 0x126   :  { %v2477_v52 = vpack.c.bf16 %v155_v51, %v151_v48 }
 0x127   :  { %v315_v46 = vld [vmem:[#allocation2] sm:$0xff]  ;;  %v2481_v56 = vpack.c.bf16 %v157_v55, %v153_v53 }
 0x128   :  { %163 = vst.msk [vmem:[#allocation2 + $0x8] sm:$0xff] %vm161_vm1, %v2477_v52 }
 0x129   :  { %285 = vst.msk [vmem:[#allocation4 + $0x48] sm:$0xff] %vm161_vm1, %v2481_v56 }
 0x12f   :  { %v436_v41 = vld [vmem:[#allocation2 + $0x8] sm:$0xff] }
 0x192   :  { %v167_v43 = vpop.permute.xlu0 %166 }
 0x193   :  { %172 = vst.msk [vmem:[#allocation3] sm:$0xff] %vm161_vm1, %v167_v43 }
 0x19a   :  { %v316_v44 = vld [vmem:[#allocation3] sm:$0xff] }
 0x19b   :  { %v322_v45 = vsel %vm161_vm1, %v316_v44, 0 }
 0x19c   :  { %1986 = vmatpush3.bf16.xpose.msra.mxu1 %v322_v45 }
 0x19d   :  { %1991 = vmatprep.subr.bf16.mxu1 %v2361_v25 }
 0x1a3   :  { %1988 = vmatmul.mubr.msk.bf16.vlgmr.msra.gmra.mrb[0].mxu1 %vm161_vm1, %v315_v46 }
 0x1a4   :  { %1993 = vmatprep.mubr.msk.bf16.mxu1 %vm2362_vm2, %v2361_v25 }
 0x276   :  { %v358_v57 = vpop.f32.mrb[0].mxu1 }
 0x277   :  { %v1989_v58 = vpop.f32.mrb[1].mxu1  ;;  %v366_v59 = vsel %vm365_vm3, %v358_v57, -inf }
 0x278   :  { %367 = vmax.xlane.f32.xlu0 %v366_v59  ;;  %v361_v60 = vpop.f32.mrb[2].mxu1 }
 0x279   :  { %v1990_v61 = vpop.f32.mrb[3].mxu1  ;;  %v369_v62 = vsel %vm365_vm3, %v361_v60, -inf }
 0x27a   :  { %370 = vmax.xlane.f32.xlu1 %v369_v62 }
 0x28b   :  { %174 = vrot.lane.b32.xlu1 %v2458_v38, %s2364_s8 }
 0x28e   :  { %182 = vrot.lane.b32.xlu0 %v2458_v38, %s2365_s9 }
 0x28f   :  { %168 = vrot.lane.b32.xlu1 %v2477_v52, %s2363_s2 }
 0x292   :  { %211 = vrot.lane.b32.xlu0 %v2477_v52, %s2366_s10 }
 0x296   :  { %236 = vrot.lane.b32.xlu0 %v2458_v38, %s2367_s11 }
 0x29a   :  { %238 = vrot.lane.b32.xlu0 %v2477_v52, %s2367_s11 }
 0x29e   :  { %263 = vrot.lane.b32.xlu0 %v2458_v38, %s2368_s12 }
 0x2a2   :  { %265 = vrot.lane.b32.xlu0 %v2477_v52, %s2368_s12 }
 0x2a6   :  { %286 = vrot.lane.b32.xlu0 %v2458_v38, %s2369_s13 }
 0x2aa   :  { %288 = vrot.lane.b32.xlu0 %v2477_v52, %s2369_s13 }
 0x2ae   :  { %176 = vrot.lane.b32.xlu0 %v2477_v52, %s2364_s8 }
 0x2b2   :  { %202 = vrot.lane.b32.xlu0 %v2477_v52, %s2370_s14 }
 0x305   :  { %v368_v63 = vpop.xlane.xlu0 %367 }
 0x306   :  { %v372_v0 = vsub.f32 %v358_v57, %v368_v63 }
 0x307   :  { %v371_v1 = vpop.xlane.xlu1 %370 }
 0x308   :  { %v374_v2 = vmul.f32 1.442695, %v372_v0  ;;  %v373_v3 = vsub.f32 %v361_v60, %v371_v1 }
 0x309   :  { %v183_v4 = vpop.permute.xlu0 %182 }
 0x30a   :  { %2163 = vpow2.f32 %v374_v2  ;;  %v376_v5 = vmul.f32 1.442695, %v373_v3  ;;  %189 = vst.msk [vmem:[#allocation2 + $0x10] sm:$0xff] %vm161_vm1, %v183_v4 }
 0x30b   :  { %v175_v6 = vpop.permute.xlu1 %174 }
 0x30c   :  { %2165 = vpow2.f32 %v376_v5  ;;  %180 = vst.msk [vmem:[#allocation4] sm:$0xff] %vm161_vm1, %v175_v6 }
 0x30d   :  { %v212_v7 = vpop.permute.xlu0 %211 }
 0x30e   :  { %217 = vst.msk [vmem:[#allocation2 + $0x28] sm:$0xff] %vm161_vm1, %v212_v7 }
 0x30f   :  { %v169_v8 = vpop.permute.xlu1 %168 }
 0x310   :  { %173 = vst.msk [vmem:[#allocation3 + $0x8] sm:$0xff] %vm161_vm1, %v169_v8 }
 0x311   :  { %v237_v9 = vpop.permute.xlu0 %236  ;;  %v558_v46 = vld [vmem:[#allocation2 + $0x10] sm:$0xff] }
 0x312   :  { %243 = vst.msk [vmem:[#allocation2 + $0x30] sm:$0xff] %vm161_vm1, %v237_v9 }
 0x313   :  { %v317_v10 = vld [vmem:[#allocation4] sm:$0xff] }
 0x314   :  { %v2164_v11 = vpop.eup %2163  ;;  %1992 = vmatpush3.bf16.msra.mxu1 %v317_v10 }
 0x315   :  { %v239_v12 = vpop.permute.xlu0 %238  ;;  %v378_v13 = vsel %vm365_vm3, %v2164_v11, 0.0  ;;  %1997 = vmatprep.subr.bf16.mxu1 %v2361_v25  ;;  %v933_v63 = vld [vmem:[#allocation2 + $0x28] sm:$0xff] }
 0x316   :  { %v2166_v14 = vpop.eup %2165  ;;  %244 = vst.msk [vmem:[#allocation2 + $0x38] sm:$0xff] %vm161_vm1, %v239_v12  ;;  %379 = vadd.xlane.f32.xlu1 %v378_v13 }
 0x317   :  { %v381_v16 = vsel %vm365_vm3, %v2166_v14, 0.0  ;;  %v438_v33 = vld [vmem:[#allocation3 + $0x8] sm:$0xff] }
 0x318   :  { %v445_v35 = vsel %vm161_vm1, %v438_v33, 0 }
 0x319   :  { %v264_v15 = vpop.permute.xlu0 %263  ;;  %v1058_v2 = vld [vmem:[#allocation2 + $0x30] sm:$0xff] }
 0x31a   :  { %270 = vst.msk [vmem:[#allocation2 + $0x40] sm:$0xff] %vm161_vm1, %v264_v15  ;;  %382 = vadd.xlane.f32.xlu1 %v381_v16 }
 0x31d   :  { %v266_v17 = vpop.permute.xlu0 %265  ;;  %v1183_v5 = vld [vmem:[#allocation2 + $0x38] sm:$0xff] }
 0x31e   :  { %271 = vst.msk [vmem:[#allocation2 + $0x48] sm:$0xff] %vm161_vm1, %v266_v17 }
 0x321   :  { %v287_v18 = vpop.permute.xlu0 %286  ;;  %v1308_v8 = vld [vmem:[#allocation2 + $0x40] sm:$0xff] }
 0x322   :  { %293 = vst.msk [vmem:[#allocation2 + $0x50] sm:$0xff] %vm161_vm1, %v287_v18 }
 0x325   :  { %v289_v19 = vpop.permute.xlu0 %288 }
 0x326   :  { %294 = vst.msk [vmem:[#allocation2 + $0x58] sm:$0xff] %vm161_vm1, %v289_v19 }
 0x329   :  { %v177_v20 = vpop.permute.xlu0 %176 }
 0x32a   :  { %181 = vst.msk [vmem:[#allocation4 + $0x8] sm:$0xff] %vm161_vm1, %v177_v20 }
 0x32b   :  { %191 = vrot.lane.b32.xlu1 %v2458_v38, %s2371_s15 }
 0x32d   :  { %v203_v21 = vpop.permute.xlu0 %202  ;;  %v1683_v16 = vld [vmem:[#allocation2 + $0x58] sm:$0xff] }
 0x32e   :  { %208 = vst.msk [vmem:[#allocation4 + $0x18] sm:$0xff] %vm161_vm1, %v203_v21 }
 0x32f   :  { %193 = vrot.lane.b32.xlu1 %v2477_v52, %s2371_s15 }
 0x331   :  { %v440_v22 = vld [vmem:[#allocation4 + $0x8] sm:$0xff] }
 0x332   :  { %2004 = vmatpush3.bf16.msra.mxu0 %v440_v22 }
 0x333   :  { %184 = vrot.lane.b32.xlu1 %v2477_v52, %s2365_s9  ;;  %2015 = vmatprep.subr.bf16.mxu0 %v2361_v25 }
 0x337   :  { %218 = vrot.lane.b32.xlu1 %v2458_v38, %s2372_s16 }
 0x33b   :  { %209 = vrot.lane.b32.xlu1 %v2458_v38, %s2366_s10 }
 0x33f   :  { %220 = vrot.lane.b32.xlu1 %v2477_v52, %s2372_s16 }
 0x343   :  { %245 = vrot.lane.b32.xlu1 %v2458_v38, %s2373_s18 }
 0x347   :  { %247 = vrot.lane.b32.xlu1 %v2477_v52, %s2373_s18 }
 0x34b   :  { %272 = vrot.lane.b32.xlu1 %v2458_v38, %s2374_s19 }
 0x34f   :  { %274 = vrot.lane.b32.xlu1 %v2477_v52, %s2374_s19 }
 0x353   :  { %295 = vrot.lane.b32.xlu1 %v2458_v38, %s2375_s20 }
 0x357   :  { %297 = vrot.lane.b32.xlu1 %v2477_v52, %s2375_s20 }
 0x35b   :  { %200 = vrot.lane.b32.xlu1 %v2458_v38, %s2370_s14 }
 0x3a3   :  { %v380_v23 = vpop.xlane.xlu1 %379 }
 0x3a4   :  { %2167 = vrcp.f32 %v380_v23 }
 0x3a7   :  { %v383_v24 = vpop.xlane.xlu1 %382 }
 0x3a8   :  { %2169 = vrcp.f32 %v383_v24 }
 0x3ab   :  { %v192_v26 = vpop.permute.xlu1 %191 }
 0x3ac   :  { %198 = vst.msk [vmem:[#allocation3 + $0x10] sm:$0xff] %vm161_vm1, %v192_v26 }
 0x3ae   :  { %v2168_v28 = vpop.eup %2167 }
 0x3af   :  { %v194_v27 = vpop.permute.xlu1 %193  ;;  %v386_v30 = vmul.f32 %v2168_v28, %v2164_v11  ;;  %v1433_v11 = vld [vmem:[#allocation2 + $0x48] sm:$0xff] }
 0x3b0   :  { %199 = vst.msk [vmem:[#allocation3 + $0x18] sm:$0xff] %vm161_vm1, %v194_v27 }
 0x3b2   :  { %v2170_v29 = vpop.eup %2169 }
 0x3b3   :  { %v387_v31 = vmul.f32 %v2170_v29, %v2166_v14  ;;  %v185_v32 = vpop.permute.xlu1 %184  ;;  %v559_v40 = vld [vmem:[#allocation3 + $0x10] sm:$0xff] }
 0x3b4   :  { %190 = vst.msk [vmem:[#allocation2 + $0x18] sm:$0xff] %vm161_vm1, %v185_v32  ;;  %v565_v42 = vsel %vm161_vm1, %v559_v40, 0  ;;  %v1558_v14 = vld [vmem:[#allocation2 + $0x50] sm:$0xff] }
 0x3b5   :  { %v388_v34 = vpack.c.bf16 %v387_v31, %v386_v30 }
 0x3b7   :  { %1994 = vmatmul.mubr.msk.bf16.vlgmr.msra.gmra.mrb[4].mxu1 %vm365_vm3, %v388_v34  ;;  %v219_v36 = vpop.permute.xlu1 %218  ;;  %v685_v45 = vld [vmem:[#allocation3 + $0x18] sm:$0xff] }
 0x3b8   :  { %1998 = vmatpush3.bf16.xpose.msra.mxu1 %v445_v35  ;;  %225 = vst.msk [vmem:[#allocation3 + $0x20] sm:$0xff] %vm161_vm1, %v219_v36  ;;  %1999 = vmatprep.mubr.msk.bf16.mxu1 %vm2362_vm2, %v2361_v25  ;;  %v692_v47 = vsel %vm161_vm1, %v685_v45, 0 }
 0x3b9   :  { %2009 = vmatprep.subr.bf16.mxu1 %v2361_v25 }
 0x3bb   :  { %v210_v37 = vpop.permute.xlu1 %209  ;;  %v683_v51 = vld [vmem:[#allocation2 + $0x18] sm:$0xff] }
 0x3bc   :  { %216 = vst.msk [vmem:[#allocation2 + $0x20] sm:$0xff] %vm161_vm1, %v210_v37 }
 0x3bf   :  { %2000 = vmatmul.mubr.msk.bf16.vlgmr.msra.gmra.mrb[8].mxu1 %vm161_vm1, %v436_v41  ;;  %v221_v43 = vpop.permute.xlu1 %220  ;;  %v809_v50 = vld [vmem:[#allocation3 + $0x20] sm:$0xff] }
 0x3c0   :  { %2010 = vmatpush3.bf16.xpose.msra.mxu1 %v565_v42  ;;  %226 = vst.msk [vmem:[#allocation3 + $0x28] sm:$0xff] %vm161_vm1, %v221_v43  ;;  %2011 = vmatprep.mubr.msk.bf16.mxu1 %vm2362_vm2, %v2361_v25  ;;  %v815_v53 = vsel %vm161_vm1, %v809_v50, 0 }
 0x3c1   :  { %2021 = vmatprep.subr.bf16.mxu1 %v2361_v25 }
 0x3c3   :  { %v246_v44 = vpop.permute.xlu1 %245  ;;  %v808_v58 = vld [vmem:[#allocation2 + $0x20] sm:$0xff] }
 0x3c4   :  { %252 = vst.msk [vmem:[#allocation3 + $0x30] sm:$0xff] %vm161_vm1, %v246_v44 }
 0x3c7   :  { %2012 = vmatmul.mubr.msk.bf16.vlgmr.msra.gmra.mrb[12].mxu1 %vm161_vm1, %v558_v46  ;;  %v248_v48 = vpop.permute.xlu1 %247  ;;  %v935_v57 = vld [vmem:[#allocation3 + $0x28] sm:$0xff] }
 0x3c8   :  { %2022 = vmatpush3.bf16.xpose.msra.mxu1 %v692_v47  ;;  %253 = vst.msk [vmem:[#allocation3 + $0x38] sm:$0xff] %vm161_vm1, %v248_v48  ;;  %2023 = vmatprep.mubr.msk.bf16.mxu1 %vm2362_vm2, %v2361_v25  ;;  %v942_v59 = vsel %vm161_vm1, %v935_v57, 0 }
 0x3c9   :  { %2033 = vmatprep.subr.bf16.mxu1 %v2361_v25 }
 0x3cb   :  { %v273_v49 = vpop.permute.xlu1 %272  ;;  %v1059_v62 = vld [vmem:[#allocation3 + $0x30] sm:$0xff] }
 0x3cc   :  { %279 = vst.msk [vmem:[#allocation3 + $0x40] sm:$0xff] %vm161_vm1, %v273_v49  ;;  %v1065_v0 = vsel %vm161_vm1, %v1059_v62, 0 }
 0x3cf   :  { %2024 = vmatmul.mubr.msk.bf16.vlgmr.msra.gmra.mrb[16].mxu1 %vm161_vm1, %v683_v51  ;;  %v275_v54 = vpop.permute.xlu1 %274  ;;  %v1185_v1 = vld [vmem:[#allocation3 + $0x38] sm:$0xff] }
 0x3d0   :  { %2034 = vmatpush3.bf16.xpose.msra.mxu1 %v815_v53  ;;  %280 = vst.msk [vmem:[#allocation3 + $0x48] sm:$0xff] %vm161_vm1, %v275_v54  ;;  %2035 = vmatprep.mubr.msk.bf16.mxu1 %vm2362_vm2, %v2361_v25  ;;  %v1192_v3 = vsel %vm161_vm1, %v1185_v1, 0 }
 0x3d1   :  { %2045 = vmatprep.subr.bf16.mxu1 %v2361_v25 }
 0x3d3   :  { %v296_v55 = vpop.permute.xlu1 %295  ;;  %v1309_v4 = vld [vmem:[#allocation3 + $0x40] sm:$0xff] }
 0x3d4   :  { %302 = vst.msk [vmem:[#allocation3 + $0x50] sm:$0xff] %vm161_vm1, %v296_v55  ;;  %v1315_v6 = vsel %vm161_vm1, %v1309_v4, 0 }
 0x3d7   :  { %2036 = vmatmul.mubr.msk.bf16.vlgmr.msra.gmra.mrb[20].mxu1 %vm161_vm1, %v808_v58  ;;  %v298_v60 = vpop.permute.xlu1 %297  ;;  %v1435_v7 = vld [vmem:[#allocation3 + $0x48] sm:$0xff] }
 0x3d8   :  { %2046 = vmatpush3.bf16.xpose.msra.mxu1 %v942_v59  ;;  %303 = vst.msk [vmem:[#allocation3 + $0x58] sm:$0xff] %vm161_vm1, %v298_v60  ;;  %2047 = vmatprep.mubr.msk.bf16.mxu1 %vm2362_vm2, %v2361_v25  ;;  %v1442_v9 = vsel %vm161_vm1, %v1435_v7, 0 }
 0x3d9   :  { %2057 = vmatprep.subr.bf16.mxu1 %v2361_v25 }
 0x3db   :  { %v201_v61 = vpop.permute.xlu1 %200  ;;  %v1559_v10 = vld [vmem:[#allocation3 + $0x50] sm:$0xff] }
 0x3dc   :  { %207 = vst.msk [vmem:[#allocation4 + $0x10] sm:$0xff] %vm161_vm1, %v201_v61  ;;  %v1565_v12 = vsel %vm161_vm1, %v1559_v10, 0 }
 0x3df   :  { %2048 = vmatmul.mubr.msk.bf16.vlgmr.msra.gmra.mrb[24].mxu1 %vm161_vm1, %v933_v63  ;;  %v1685_v13 = vld [vmem:[#allocation3 + $0x58] sm:$0xff] }
 0x3e0   :  { %2058 = vmatpush3.bf16.xpose.msra.mxu1 %v1065_v0  ;;  %2059 = vmatprep.mubr.msk.bf16.mxu1 %vm2362_vm2, %v2361_v25  ;;  %v1692_v15 = vsel %vm161_vm1, %v1685_v13, 0 }
 0x3e1   :  { %2069 = vmatprep.subr.bf16.mxu1 %v2361_v25 }
 0x3e7   :  { %2060 = vmatmul.mubr.msk.bf16.vlgmr.msra.gmra.mrb[28].mxu1 %vm161_vm1, %v1058_v2 }
 0x3e8   :  { %2070 = vmatpush3.bf16.xpose.msra.mxu1 %v1192_v3  ;;  %2071 = vmatprep.mubr.msk.bf16.mxu1 %vm2362_vm2, %v2361_v25 }
 0x3e9   :  { %2081 = vmatprep.subr.bf16.mxu1 %v2361_v25 }
 0x3ef   :  { %2072 = vmatmul.mubr.msk.bf16.vlgmr.msra.gmra.mrb[32].mxu1 %vm161_vm1, %v1183_v5 }
 0x3f0   :  { %2082 = vmatpush3.bf16.xpose.msra.mxu1 %v1315_v6  ;;  %2083 = vmatprep.mubr.msk.bf16.mxu1 %vm2362_vm2, %v2361_v25 }
 0x3f1   :  { %2093 = vmatprep.subr.bf16.mxu1 %v2361_v25 }
 0x3f7   :  { %2084 = vmatmul.mubr.msk.bf16.vlgmr.msra.gmra.mrb[36].mxu1 %vm161_vm1, %v1308_v8 }
 0x3f8   :  { %2094 = vmatpush3.bf16.xpose.msra.mxu1 %v1442_v9  ;;  %2095 = vmatprep.mubr.msk.bf16.mxu1 %vm2362_vm2, %v2361_v25 }
 0x3f9   :  { %2105 = vmatprep.subr.bf16.mxu1 %v2361_v25 }
 0x3ff   :  { %2096 = vmatmul.mubr.msk.bf16.vlgmr.msra.gmra.mrb[40].mxu1 %vm161_vm1, %v1433_v11 }
 0x400   :  { %2106 = vmatpush3.bf16.xpose.msra.mxu1 %v1565_v12  ;;  %2107 = vmatprep.mubr.msk.bf16.mxu1 %vm2362_vm2, %v2361_v25 }
 0x401   :  { %2117 = vmatprep.subr.bf16.mxu1 %v2361_v25 }
 0x407   :  { %2108 = vmatmul.mubr.msk.bf16.vlgmr.msra.gmra.mrb[44].mxu1 %vm161_vm1, %v1558_v14 }
 0x408   :  { %2118 = vmatpush3.bf16.xpose.msra.mxu1 %v1692_v15  ;;  %2119 = vmatprep.mubr.msk.bf16.mxu1 %vm2362_vm2, %v2361_v25 }
 0x40f   :  { %2120 = vmatmul.mubr.msk.bf16.vlgmr.msra.gmra.mrb[48].mxu1 %vm161_vm1, %v1683_v16 }
 0x48a   :  { %v426_v17 = vpop.f32.mrb[4].mxu1 }
 0x48b   :  { %v1995_v18 = vpop.f32.mrb[5].mxu1 }
 0x48c   :  { %v429_v19 = vpop.f32.mrb[6].mxu1 }
 0x48d   :  { %v433_v20 = vpack.c.bf16 %v429_v19, %v426_v17  ;;  %v1996_v21 = vpop.f32.mrb[7].mxu1 }
 0x48f   :  { %434 = vst.msk [vmem:[#allocation5] sm:$0xff] %vm161_vm1, %v433_v20 }
 0x492   :  { %v2608_v22 = vpop.f32.mrb[8].mxu1 }
 0x493   :  { %v2001_v23 = vpop.f32.mrb[9].mxu1  ;;  %v488_v24 = vsel %vm365_vm3, %v2608_v22, -inf }
 0x494   :  { %489 = vmax.xlane.f32.xlu1 %v488_v24  ;;  %v2612_v26 = vpop.f32.mrb[10].mxu1 }
 0x495   :  { %v2002_v27 = vpop.f32.mrb[11].mxu1  ;;  %v491_v28 = vsel %vm365_vm3, %v2612_v26, -inf }
 0x496   :  { %492 = vmax.xlane.f32.xlu0 %v491_v28 }
 0x49a   :  { %v2616_v29 = vpop.f32.mrb[12].mxu1 }
 0x49b   :  { %v2013_v30 = vpop.f32.mrb[13].mxu1  ;;  %v608_v31 = vsel %vm365_vm3, %v2616_v29, -inf }
 0x49c   :  { %609 = vmax.xlane.f32.xlu0 %v608_v31  ;;  %v2620_v32 = vpop.f32.mrb[14].mxu1 }
 0x49d   :  { %v2014_v33 = vpop.f32.mrb[15].mxu1  ;;  %v611_v34 = vsel %vm365_vm3, %v2620_v32, -inf }
 0x49e   :  { %612 = vmax.xlane.f32.xlu1 %v611_v34 }
 0x4a2   :  { %v2624_v35 = vpop.f32.mrb[16].mxu1 }
 0x4a3   :  { %v2025_v36 = vpop.f32.mrb[17].mxu1  ;;  %v735_v37 = vsel %vm365_vm3, %v2624_v35, -inf }
 0x4a4   :  { %736 = vmax.xlane.f32.xlu0 %v735_v37  ;;  %v2628_v40 = vpop.f32.mrb[18].mxu1 }
 0x4a5   :  { %v2026_v41 = vpop.f32.mrb[19].mxu1  ;;  %v738_v42 = vsel %vm365_vm3, %v2628_v40, -inf }
 0x4a6   :  { %739 = vmax.xlane.f32.xlu1 %v738_v42 }
 0x4aa   :  { %v2632_v43 = vpop.f32.mrb[20].mxu1 }
 0x4ab   :  { %v2037_v44 = vpop.f32.mrb[21].mxu1  ;;  %v858_v45 = vsel %vm365_vm3, %v2632_v43, -inf }
 0x4ac   :  { %859 = vmax.xlane.f32.xlu0 %v858_v45  ;;  %v2636_v46 = vpop.f32.mrb[22].mxu1 }
 0x4ad   :  { %v2038_v47 = vpop.f32.mrb[23].mxu1  ;;  %v861_v9 = vsel %vm365_vm3, %v2636_v46, -inf }
 0x4b2   :  { %v2638_v48 = vpop.f32.mrb[24].mxu1 }
 0x4b3   :  { %v2049_v49 = vpop.f32.mrb[25].mxu1  ;;  %v985_v50 = vsel %vm365_vm3, %v2638_v48, -inf }
 0x4b4   :  { %986 = vmax.xlane.f32.xlu0 %v985_v50  ;;  %v2642_v51 = vpop.f32.mrb[26].mxu1 }
 0x4b5   :  { %v2050_v53 = vpop.f32.mrb[27].mxu1  ;;  %v988_v13 = vsel %vm365_vm3, %v2642_v51, -inf }
 0x4b7   :  { %227 = vrot.lane.b32.xlu1 %v2458_v38, %s2355_s29 }
 0x4ba   :  { %v2646_v54 = vpop.f32.mrb[28].mxu1 }
 0x4bb   :  { %v2061_v55 = vpop.f32.mrb[29].mxu1  ;;  %v1108_v57 = vsel %vm365_vm3, %v2646_v54, -inf }
 0x4bc   :  { %1109 = vmax.xlane.f32.xlu0 %v1108_v57  ;;  %v2650_v58 = vpop.f32.mrb[30].mxu1 }
 0x4bd   :  { %v2062_v59 = vpop.f32.mrb[31].mxu1  ;;  %v1111_v15 = vsel %vm365_vm3, %v2650_v58, -inf }
 0x4c2   :  { %v2652_v60 = vpop.f32.mrb[32].mxu1 }
 0x4c3   :  { %v2073_v61 = vpop.f32.mrb[33].mxu1  ;;  %v1235_v23 = vsel %vm365_vm3, %v2652_v60, -inf }
 0x4c4   :  { %v2654_v62 = vpop.f32.mrb[34].mxu1 }
 0x4c5   :  { %v2074_v63 = vpop.f32.mrb[35].mxu1  ;;  %v1238_v19 = vsel %vm365_vm3, %v2654_v62, -inf }
 0x4ca   :  { %v2656_v0 = vpop.f32.mrb[36].mxu1 }
 0x4cb   :  { %v2085_v1 = vpop.f32.mrb[37].mxu1  ;;  %v1358_v27 = vsel %vm365_vm3, %v2656_v0, -inf }
 0x4cc   :  { %v2658_v2 = vpop.f32.mrb[38].mxu1 }
 0x4cd   :  { %v2086_v3 = vpop.f32.mrb[39].mxu1  ;;  %v1361_v20 = vsel %vm365_vm3, %v2658_v2, -inf }
 0x4d2   :  { %229 = vrot.lane.b32.xlu0 %v2477_v52, %s2355_s29  ;;  %v2662_v4 = vpop.f32.mrb[40].mxu1 }
 0x4d3   :  { %v2097_v5 = vpop.f32.mrb[41].mxu1  ;;  %v1485_v30 = vsel %vm365_vm3, %v2662_v4, -inf }
 0x4d4   :  { %v2664_v6 = vpop.f32.mrb[42].mxu1 }
 0x4d5   :  { %v2098_v7 = vpop.f32.mrb[43].mxu1  ;;  %v1488_v21 = vsel %vm365_vm3, %v2664_v6, -inf }
 0x4da   :  { %v2666_v8 = vpop.f32.mrb[44].mxu1 }
 0x4db   :  { %862 = vmax.xlane.f32.xlu1 %v861_v9  ;;  %v2109_v10 = vpop.f32.mrb[45].mxu1  ;;  %v1608_v31 = vsel %vm365_vm3, %v2666_v8, -inf }
 0x4dc   :  { %v2670_v11 = vpop.f32.mrb[46].mxu1 }
 0x4dd   :  { %v2110_v12 = vpop.f32.mrb[47].mxu1  ;;  %v1611_v24 = vsel %vm365_vm3, %v2670_v11, -inf }
 0x4df   :  { %989 = vmax.xlane.f32.xlu1 %v988_v13 }
 0x4e2   :  { %v2674_v14 = vpop.f32.mrb[48].mxu1 }
 0x4e3   :  { %1112 = vmax.xlane.f32.xlu1 %v1111_v15  ;;  %v2121_v16 = vpop.f32.mrb[49].mxu1  ;;  %v1735_v33 = vsel %vm365_vm3, %v2674_v14, -inf }
 0x4e4   :  { %v2678_v17 = vpop.f32.mrb[50].mxu1 }
 0x4e5   :  { %v2122_v18 = vpop.f32.mrb[51].mxu1  ;;  %v1738_v28 = vsel %vm365_vm3, %v2678_v17, -inf }
 0x4e7   :  { %1239 = vmax.xlane.f32.xlu1 %v1238_v19 }
 0x4eb   :  { %1362 = vmax.xlane.f32.xlu1 %v1361_v20 }
 0x4ef   :  { %1489 = vmax.xlane.f32.xlu1 %v1488_v21 }
 0x4f1   :  { %1236 = vmax.xlane.f32.xlu0 %v1235_v23 }
 0x4f3   :  { %1612 = vmax.xlane.f32.xlu1 %v1611_v24 }
 0x4f5   :  { %1359 = vmax.xlane.f32.xlu0 %v1358_v27 }
 0x4f7   :  { %1739 = vmax.xlane.f32.xlu1 %v1738_v28 }
 0x4f9   :  { %1486 = vmax.xlane.f32.xlu0 %v1485_v30 }
 0x4fd   :  { %1609 = vmax.xlane.f32.xlu0 %v1608_v31 }
 0x501   :  { %1736 = vmax.xlane.f32.xlu0 %v1735_v33 }
 0x521   :  { %v490_v34 = vpop.xlane.xlu1 %489 }
 0x522   :  { %v494_v36 = vsub.f32 %v2608_v22, %v490_v34 }
 0x523   :  { %v493_v37 = vpop.xlane.xlu0 %492 }
 0x524   :  { %v496_v41 = vmul.f32 1.442695, %v494_v36  ;;  %v495_v42 = vsub.f32 %v2612_v26, %v493_v37 }
 0x526   :  { %2171 = vpow2.f32 %v496_v41  ;;  %v498_v44 = vmul.f32 1.442695, %v495_v42 }
 0x528   :  { %2173 = vpow2.f32 %v498_v44 }
 0x529   :  { %v610_v45 = vpop.xlane.xlu0 %609 }
 0x52a   :  { %v614_v47 = vsub.f32 %v2616_v29, %v610_v45 }
 0x52b   :  { %v613_v49 = vpop.xlane.xlu1 %612 }
 0x52c   :  { %v616_v50 = vmul.f32 1.442695, %v614_v47  ;;  %v615_v53 = vsub.f32 %v2620_v32, %v613_v49 }
 0x52e   :  { %2175 = vpow2.f32 %v616_v50  ;;  %v618_v55 = vmul.f32 1.442695, %v615_v53 }
 0x530   :  { %v2704_v57 = vpop.eup %2171  ;;  %2177 = vpow2.f32 %v618_v55 }
 0x531   :  { %v737_v22 = vpop.xlane.xlu0 %736  ;;  %v500_v59 = vsel %vm365_vm3, %v2704_v57, 0.0 }
 0x532   :  { %v2708_v26 = vpop.eup %2173  ;;  %v741_v61 = vsub.f32 %v2624_v35, %v737_v22  ;;  %501 = vadd.xlane.f32.xlu0 %v500_v59 }
 0x533   :  { %v740_v63 = vpop.xlane.xlu1 %739  ;;  %v503_v29 = vsel %vm365_vm3, %v2708_v26, 0.0 }
 0x534   :  { %v743_v1 = vmul.f32 1.442695, %v741_v61  ;;  %v742_v32 = vsub.f32 %v2628_v40, %v740_v63  ;;  %504 = vadd.xlane.f32.xlu1 %v503_v29 }
 0x536   :  { %2179 = vpow2.f32 %v743_v1  ;;  %v745_v3 = vmul.f32 1.442695, %v742_v32 }
 0x537   :  { %v228_v5 = vpop.permute.xlu1 %227 }
 0x538   :  { %v2714_v7 = vpop.eup %2175  ;;  %2181 = vpow2.f32 %v745_v3  ;;  %234 = vst.msk [vmem:[#allocation4 + $0x20] sm:$0xff] %vm161_vm1, %v228_v5 }
 0x539   :  { %v860_v9 = vpop.xlane.xlu0 %859  ;;  %v620_v35 = vsel %vm365_vm3, %v2714_v7, 0.0 }
 0x53a   :  { %v2719_v10 = vpop.eup %2177  ;;  %v864_v12 = vsub.f32 %v2632_v43, %v860_v9  ;;  %621 = vadd.xlane.f32.xlu0 %v620_v35 }
 0x53b   :  { %v623_v40 = vsel %vm365_vm3, %v2719_v10, 0.0 }
 0x53c   :  { %v866_v13 = vmul.f32 1.442695, %v864_v12  ;;  %624 = vadd.xlane.f32.xlu1 %v623_v40 }
 0x53e   :  { %2183 = vpow2.f32 %v866_v13 }
 0x540   :  { %v2724_v15 = vpop.eup %2179 }
 0x541   :  { %v987_v16 = vpop.xlane.xlu0 %986  ;;  %v747_v18 = vsel %vm365_vm3, %v2724_v15, 0.0 }
 0x542   :  { %v2728_v19 = vpop.eup %2181  ;;  %v991_v20 = vsub.f32 %v2638_v48, %v987_v16  ;;  %748 = vadd.xlane.f32.xlu0 %v747_v18 }
 0x543   :  { %v750_v43 = vsel %vm365_vm3, %v2728_v19, 0.0 }
 0x544   :  { %v993_v21 = vmul.f32 1.442695, %v991_v20  ;;  %751 = vadd.xlane.f32.xlu1 %v750_v43 }
 0x546   :  { %2185 = vpow2.f32 %v993_v21 }
 0x548   :  { %v2733_v23 = vpop.eup %2183 }
 0x549   :  { %v1110_v24 = vpop.xlane.xlu0 %1109  ;;  %v870_v27 = vsel %vm365_vm3, %v2733_v23, 0.0 }
 0x54a   :  { %871 = vadd.xlane.f32.xlu1 %v870_v27  ;;  %v1114_v34 = vsub.f32 %v2646_v54, %v1110_v24 }
 0x54c   :  { %v1116_v42 = vmul.f32 1.442695, %v1114_v34 }
 0x54d   :  { %v230_v28 = vpop.permute.xlu0 %229 }
 0x54e   :  { %235 = vst.msk [vmem:[#allocation4 + $0x28] sm:$0xff] %vm161_vm1, %v230_v28 }
 0x550   :  { %v2738_v30 = vpop.eup %2185 }
 0x551   :  { %v997_v48 = vsel %vm365_vm3, %v2738_v30, 0.0 }
 0x552   :  { %998 = vadd.xlane.f32.xlu0 %v997_v48 }
 0x568   :  { %v863_v31 = vpop.xlane.xlu1 %862  ;;  %254 = vrot.lane.b32.xlu0 %v2458_v38, %s2358_s17 }
 0x569   :  { %v865_v33 = vsub.f32 %v2636_v46, %v863_v31 }
 0x56b   :  { %v868_v36 = vmul.f32 1.442695, %v865_v33 }
 0x56c   :  { %v990_v37 = vpop.xlane.xlu1 %989 }
 0x56d   :  { %2187 = vpow2.f32 %v868_v36  ;;  %v992_v41 = vsub.f32 %v2642_v51, %v990_v37 }
 0x56f   :  { %v995_v44 = vmul.f32 1.442695, %v992_v41 }
 0x570   :  { %v1113_v45 = vpop.xlane.xlu1 %1112 }
 0x571   :  { %2189 = vpow2.f32 %v995_v44  ;;  %v1115_v47 = vsub.f32 %v2650_v58, %v1113_v45 }
 0x572   :  { %2191 = vpow2.f32 %v1116_v42 }
 0x573   :  { %v1118_v49 = vmul.f32 1.442695, %v1115_v47 }
 0x574   :  { %v1240_v50 = vpop.xlane.xlu1 %1239 }
 0x575   :  { %2193 = vpow2.f32 %v1118_v49  ;;  %v1242_v34 = vsub.f32 %v2654_v62, %v1240_v50 }
 0x577   :  { %v2748_v53 = vpop.eup %2187  ;;  %v1245_v36 = vmul.f32 1.442695, %v1242_v34 }
 0x578   :  { %v1363_v38 = vpop.xlane.xlu1 %1362  ;;  %v873_v46 = vsel %vm365_vm3, %v2748_v53, 0.0 }
 0x579   :  { %874 = vadd.xlane.f32.xlu1 %v873_v46  ;;  %v1365_v37 = vsub.f32 %v2658_v2, %v1363_v38 }
 0x57b   :  { %v2752_v54 = vpop.eup %2189  ;;  %v1368_v42 = vmul.f32 1.442695, %v1365_v37 }
 0x57c   :  { %v1490_v51 = vpop.xlane.xlu1 %1489  ;;  %v1000_v55 = vsel %vm365_vm3, %v2752_v54, 0.0  ;;  %v2756_v22 = vpop.eup %2191 }
 0x57d   :  { %v1492_v58 = vsub.f32 %v2664_v6, %v1490_v51  ;;  %1001 = vadd.xlane.f32.xlu1 %v1000_v55  ;;  %v1120_v29 = vsel %vm365_vm3, %v2756_v22, 0.0 }
 0x57e   :  { %v1237_v59 = vpop.xlane.xlu0 %1236 }
 0x57f   :  { %v1241_v61 = vsub.f32 %v2652_v60, %v1237_v59  ;;  %v2762_v1 = vpop.eup %2193  ;;  %v1495_v32 = vmul.f32 1.442695, %v1492_v58 }
 0x580   :  { %v1613_v63 = vpop.xlane.xlu1 %1612  ;;  %v1123_v6 = vsel %vm365_vm3, %v2762_v1, 0.0 }
 0x581   :  { %v1243_v3 = vmul.f32 1.442695, %v1241_v61  ;;  %v1615_v5 = vsub.f32 %v2670_v11, %v1613_v63  ;;  %1121 = vadd.xlane.f32.xlu1 %v1120_v29 }
 0x582   :  { %v1360_v9 = vpop.xlane.xlu0 %1359 }
 0x583   :  { %2195 = vpow2.f32 %v1243_v3  ;;  %v1618_v35 = vmul.f32 1.442695, %v1615_v5 }
 0x584   :  { %2197 = vpow2.f32 %v1495_v32  ;;  %v1740_v12 = vpop.xlane.xlu1 %1739 }
 0x585   :  { %1124 = vadd.xlane.f32.xlu1 %v1123_v6  ;;  %2199 = vpow2.f32 %v1618_v35  ;;  %v1742_v16 = vsub.f32 %v2678_v17, %v1740_v12  ;;  %v560_v6 = vld [vmem:[#allocation4 + $0x10] sm:$0xff] }
 0x586   :  { %v1487_v60 = vpop.xlane.xlu0 %1486 }
 0x587   :  { %v1745_v21 = vmul.f32 1.442695, %v1742_v16  ;;  %v1491_v44 = vsub.f32 %v2662_v4, %v1487_v60  ;;  %v687_v16 = vld [vmem:[#allocation4 + $0x18] sm:$0xff] }
 0x589   :  { %v1493_v45 = vmul.f32 1.442695, %v1491_v44 }
 0x58a   :  { %v1610_v40 = vpop.xlane.xlu0 %1609 }
 0x58b   :  { %v1614_v47 = vsub.f32 %v2666_v8, %v1610_v40 }
 0x58d   :  { %v2767_v13 = vpop.eup %2195  ;;  %v1616_v46 = vmul.f32 1.442695, %v1614_v47 }
 0x58e   :  { %v1737_v18 = vpop.xlane.xlu0 %1736  ;;  %v1247_v11 = vsel %vm365_vm3, %v2767_v13, 0.0  ;;  %v2772_v20 = vpop.eup %2197 }
 0x58f   :  { %v1741_v43 = vsub.f32 %v2674_v14, %v1737_v18  ;;  %1248 = vadd.xlane.f32.xlu0 %v1247_v11  ;;  %v1500_v27 = vsel %vm365_vm3, %v2772_v20, 0.0  ;;  %v2777_v28 = vpop.eup %2199 }
 0x590   :  { %v1623_v17 = vsel %vm365_vm3, %v2777_v28, 0.0 }
 0x591   :  { %v1743_v24 = vmul.f32 1.442695, %v1741_v43 }
 0x593   :  { %2201 = vpow2.f32 %v1743_v24  ;;  %1501 = vadd.xlane.f32.xlu0 %v1500_v27  ;;  %v810_v24 = vld [vmem:[#allocation4 + $0x20] sm:$0xff] }
 0x594   :  { %2203 = vpow2.f32 %v1745_v21 }
 0x595   :  { %2205 = vpow2.f32 %v1245_v36 }
 0x596   :  { %256 = vrot.lane.b32.xlu1 %v2477_v52, %s2358_s17  ;;  %v1364_v52 = vsub.f32 %v2656_v0, %v1360_v9 }
 0x597   :  { %1624 = vadd.xlane.f32.xlu0 %v1623_v17 }
 0x598   :  { %v1366_v41 = vmul.f32 1.442695, %v1364_v52 }
 0x59a   :  { %2207 = vpow2.f32 %v1366_v41 }
 0x59b   :  { %2209 = vpow2.f32 %v1368_v42  ;;  %v937_v42 = vld [vmem:[#allocation4 + $0x28] sm:$0xff] }
 0x59c   :  { %2211 = vpow2.f32 %v1493_v45 }
 0x59d   :  { %v2783_v48 = vpop.eup %2201  ;;  %2213 = vpow2.f32 %v1616_v46 }
 0x59e   :  { %v1747_v14 = vsel %vm365_vm3, %v2783_v48, 0.0  ;;  %v2787_v31 = vpop.eup %2203 }
 0x59f   :  { %1748 = vadd.xlane.f32.xlu0 %v1747_v14  ;;  %v1750_v33 = vsel %vm365_vm3, %v2787_v31, 0.0  ;;  %v2796_v49 = vpop.eup %2205 }
 0x5a0   :  { %v1250_v62 = vsel %vm365_vm3, %v2796_v49, 0.0 }
 0x5a3   :  { %1751 = vadd.xlane.f32.xlu0 %v1750_v33 }
 0x5a4   :  { %v2802_v0 = vpop.eup %2207 }
 0x5a5   :  { %v1370_v2 = vsel %vm365_vm3, %v2802_v0, 0.0  ;;  %v2806_v4 = vpop.eup %2209 }
 0x5a6   :  { %v1373_v38 = vsel %vm365_vm3, %v2806_v4, 0.0 }
 0x5b9   :  { %306 = vrot.lane.b32.xlu0 %v2460_v39, %s2365_s9  ;;  %v2810_v39 = vpop.eup %2211 }
 0x5ba   :  { %1251 = vadd.xlane.f32.xlu1 %v1250_v62  ;;  %v1497_v51 = vsel %vm365_vm3, %v2810_v39, 0.0  ;;  %v2814_v55 = vpop.eup %2213 }
 0x5bb   :  { %v1620_v61 = vsel %vm365_vm3, %v2814_v55, 0.0 }
 0x5be   :  { %1371 = vadd.xlane.f32.xlu1 %v1370_v2 }
 0x5bf   :  { %v502_v8 = vpop.xlane.xlu0 %501 }
 0x5c0   :  { %2215 = vrcp.f32 %v502_v8 }
 0x5c1   :  { %v505_v50 = vpop.xlane.xlu1 %504 }
 0x5c2   :  { %2217 = vrcp.f32 %v505_v50  ;;  %1374 = vadd.xlane.f32.xlu1 %v1373_v38 }
 0x5c6   :  { %1498 = vadd.xlane.f32.xlu1 %v1497_v51 }
 0x5c7   :  { %v622_v58 = vpop.xlane.xlu0 %621 }
 0x5c8   :  { %2219 = vrcp.f32 %v622_v58 }
 0x5c9   :  { %v625_v59 = vpop.xlane.xlu1 %624 }
 0x5ca   :  { %v2216_v63 = vpop.eup %2215  ;;  %2221 = vrcp.f32 %v625_v59  ;;  %1621 = vadd.xlane.f32.xlu1 %v1620_v61 }
 0x5cb   :  { %v508_v32 = vmul.f32 %v2216_v63, %v2704_v57 }
 0x5cc   :  { %v2218_v29 = vpop.eup %2217 }
 0x5cd   :  { %v509_v3 = vmul.f32 %v2218_v29, %v2708_v26 }
 0x5cf   :  { %v510_v5 = vpack.c.bf16 %v509_v3, %v508_v32  ;;  %v749_v9 = vpop.xlane.xlu0 %748 }
 0x5d0   :  { %2223 = vrcp.f32 %v749_v9 }
 0x5d1   :  { %2006 = vmatmul.mubr.msk.bf16.vlgmr.msra.gmra.mrb[8].mxu0 %vm365_vm3, %v510_v5  ;;  %v752_v35 = vpop.xlane.xlu1 %751 }
 0x5d2   :  { %v2220_v60 = vpop.eup %2219  ;;  %2016 = vmatpush3.bf16.msra.mxu0 %v560_v6  ;;  %2225 = vrcp.f32 %v752_v35  ;;  %2017 = vmatprep.mubr.msk.bf16.mxu0 %vm2362_vm2, %v2361_v25 }
 0x5d3   :  { %2027 = vmatprep.subr.bf16.mxu0 %v2361_v25  ;;  %v628_v57 = vmul.f32 %v2220_v60, %v2714_v7  ;;  %v1310_v60 = vld [vmem:[#allocation4 + $0x40] sm:$0xff] }
 0x5d4   :  { %v2222_v12 = vpop.eup %2221 }
 0x5d5   :  { %v629_v26 = vmul.f32 %v2222_v12, %v2719_v10 }
 0x5d7   :  { %v630_v40 = vpack.c.bf16 %v629_v26, %v628_v57 }
 0x5d9   :  { %2018 = vmatmul.mubr.msk.bf16.vlgmr.msra.gmra.mrb[12].mxu0 %vm365_vm3, %v630_v40 }
 0x5da   :  { %v2224_v18 = vpop.eup %2223  ;;  %2028 = vmatpush3.bf16.msra.mxu0 %v687_v16  ;;  %2029 = vmatprep.mubr.msk.bf16.mxu0 %vm2362_vm2, %v2361_v25 }
 0x5db   :  { %308 = vrot.lane.b32.xlu1 %v2481_v56, %s2365_s9  ;;  %2039 = vmatprep.subr.bf16.mxu0 %v2361_v25  ;;  %v755_v43 = vmul.f32 %v2224_v18, %v2724_v15  ;;  %v872_v56 = vpop.xlane.xlu1 %871 }
 0x5dc   :  { %v2226_v11 = vpop.eup %2225  ;;  %2227 = vrcp.f32 %v872_v56 }
 0x5dd   :  { %v756_v7 = vmul.f32 %v2226_v11, %v2728_v19  ;;  %v1437_v11 = vld [vmem:[#allocation4 + $0x48] sm:$0xff] }
 0x5df   :  { %v999_v10 = vpop.xlane.xlu0 %998  ;;  %v757_v21 = vpack.c.bf16 %v756_v7, %v755_v43 }
 0x5e1   :  { %2030 = vmatmul.mubr.msk.bf16.vlgmr.msra.gmra.mrb[16].mxu0 %vm365_vm3, %v757_v21 }
 0x5e2   :  { %2040 = vmatpush3.bf16.msra.mxu0 %v810_v24  ;;  %2041 = vmatprep.mubr.msk.bf16.mxu0 %vm2362_vm2, %v2361_v25 }
 0x5e3   :  { %v255_v27 = vpop.permute.xlu0 %254  ;;  %2051 = vmatprep.subr.bf16.mxu0 %v2361_v25 }
 0x5e4   :  { %261 = vst.msk [vmem:[#allocation4 + $0x30] sm:$0xff] %vm161_vm1, %v255_v27 }
 0x5e6   :  { %v2228_v14 = vpop.eup %2227 }
 0x5e7   :  { %v878_v34 = vmul.f32 %v2228_v14, %v2733_v23 }
 0x5eb   :  { %v1060_v2 = vld [vmem:[#allocation4 + $0x30] sm:$0xff] }
 0x606   :  { %v875_v17 = vpop.xlane.xlu1 %874 }
 0x607   :  { %2229 = vrcp.f32 %v875_v17 }
 0x60a   :  { %v1002_v15 = vpop.xlane.xlu1 %1001 }
 0x60b   :  { %2231 = vrcp.f32 %v1002_v15 }
 0x60c   :  { %2233 = vrcp.f32 %v999_v10 }
 0x60e   :  { %v1122_v19 = vpop.xlane.xlu1 %1121 }
 0x611   :  { %v2230_v33 = vpop.eup %2229 }
 0x612   :  { %v879_v36 = vmul.f32 %v2230_v33, %v2748_v53  ;;  %v1125_v52 = vpop.xlane.xlu1 %1124 }
 0x613   :  { %2235 = vrcp.f32 %v1125_v52 }
 0x614   :  { %v880_v37 = vpack.c.bf16 %v879_v36, %v878_v34  ;;  %2237 = vrcp.f32 %v1122_v19 }
 0x615   :  { %v2232_v41 = vpop.eup %2231 }
 0x616   :  { %2042 = vmatmul.mubr.msk.bf16.vlgmr.msra.gmra.mrb[20].mxu0 %vm365_vm3, %v880_v37  ;;  %v257_v44 = vpop.permute.xlu1 %256  ;;  %v2234_v45 = vpop.eup %2233  ;;  %v1006_v23 = vmul.f32 %v2232_v41, %v2752_v54 }
 0x617   :  { %2052 = vmatpush3.bf16.msra.mxu0 %v937_v42  ;;  %262 = vst.msk [vmem:[#allocation4 + $0x38] sm:$0xff] %vm161_vm1, %v257_v44  ;;  %2053 = vmatprep.mubr.msk.bf16.mxu0 %vm2362_vm2, %v2361_v25  ;;  %v1005_v53 = vmul.f32 %v2234_v45, %v2738_v30 }
 0x618   :  { %2063 = vmatprep.subr.bf16.mxu0 %v2361_v25 }
 0x619   :  { %v1007_v46 = vpack.c.bf16 %v1006_v23, %v1005_v53 }
 0x61c   :  { %v1249_v47 = vpop.xlane.xlu0 %1248 }
 0x61d   :  { %v2236_v62 = vpop.eup %2235  ;;  %2239 = vrcp.f32 %v1249_v47 }
 0x61e   :  { %2054 = vmatmul.mubr.msk.bf16.vlgmr.msra.gmra.mrb[24].mxu0 %vm365_vm3, %v1007_v46  ;;  %v2238_v8 = vpop.eup %2237  ;;  %v1129_v50 = vmul.f32 %v2236_v62, %v2762_v1  ;;  %v1187_v30 = vld [vmem:[#allocation4 + $0x38] sm:$0xff] }
 0x61f   :  { %2064 = vmatpush3.bf16.msra.mxu0 %v1060_v2  ;;  %2065 = vmatprep.mubr.msk.bf16.mxu0 %vm2362_vm2, %v2361_v25  ;;  %v1128_v54 = vmul.f32 %v2238_v8, %v2756_v22 }
 0x620   :  { %2075 = vmatprep.subr.bf16.mxu0 %v2361_v25  ;;  %v1502_v38 = vpop.xlane.xlu0 %1501 }
 0x621   :  { %v1130_v51 = vpack.c.bf16 %v1129_v50, %v1128_v54 }
 0x624   :  { %v1625_v58 = vpop.xlane.xlu0 %1624 }
 0x626   :  { %2066 = vmatmul.mubr.msk.bf16.vlgmr.msra.gmra.mrb[28].mxu0 %vm365_vm3, %v1130_v51 }
 0x627   :  { %2076 = vmatpush3.bf16.msra.mxu0 %v1187_v30  ;;  %2077 = vmatprep.mubr.msk.bf16.mxu0 %vm2362_vm2, %v2361_v25  ;;  %v2240_v32 = vpop.eup %2239 }
 0x628   :  { %2087 = vmatprep.subr.bf16.mxu0 %v2361_v25  ;;  %v1255_v5 = vmul.f32 %v2240_v32, %v2767_v13 }
 0x62c   :  { %v1749_v59 = vpop.xlane.xlu0 %1748 }
 0x630   :  { %v1752_v61 = vpop.xlane.xlu0 %1751 }
 0x634   :  { %v307_v63 = vpop.permute.xlu0 %306 }
 0x635   :  { %313 = vst.msk [vmem:[#allocation4 + $0x50] sm:$0xff] %vm161_vm1, %v307_v63 }
 0x63c   :  { %v1560_v21 = vld [vmem:[#allocation4 + $0x50] sm:$0xff] }
 0x647   :  { %v1252_v1 = vpop.xlane.xlu1 %1251 }
 0x648   :  { %2241 = vrcp.f32 %v1252_v1 }
 0x64b   :  { %v1372_v22 = vpop.xlane.xlu1 %1371 }
 0x64c   :  { %2243 = vrcp.f32 %v1372_v22 }
 0x64f   :  { %v1375_v29 = vpop.xlane.xlu1 %1374 }
 0x650   :  { %2245 = vrcp.f32 %v1375_v29 }
 0x652   :  { %v2242_v3 = vpop.eup %2241 }
 0x653   :  { %v1256_v9 = vmul.f32 %v2242_v3, %v2796_v49  ;;  %v1499_v6 = vpop.xlane.xlu1 %1498 }
 0x654   :  { %2247 = vrcp.f32 %v1499_v6 }
 0x655   :  { %v1257_v35 = vpack.c.bf16 %v1256_v9, %v1255_v5  ;;  %2249 = vrcp.f32 %v1502_v38 }
 0x656   :  { %v2244_v57 = vpop.eup %2243 }
 0x657   :  { %2078 = vmatmul.mubr.msk.bf16.vlgmr.msra.gmra.mrb[32].mxu0 %vm365_vm3, %v1257_v35  ;;  %v1622_v12 = vpop.xlane.xlu1 %1621  ;;  %v1378_v13 = vmul.f32 %v2244_v57, %v2802_v0 }
 0x658   :  { %2088 = vmatpush3.bf16.msra.mxu0 %v1310_v60  ;;  %2089 = vmatprep.mubr.msk.bf16.mxu0 %vm2362_vm2, %v2361_v25  ;;  %2251 = vrcp.f32 %v1622_v12 }
 0x659   :  { %2099 = vmatprep.subr.bf16.mxu0 %v2361_v25  ;;  %2253 = vrcp.f32 %v1625_v58 }
 0x65a   :  { %v2246_v26 = vpop.eup %2245  ;;  %2255 = vrcp.f32 %v1752_v61 }
 0x65b   :  { %v1379_v49 = vmul.f32 %v2246_v26, %v2806_v4  ;;  %v309_v40 = vpop.permute.xlu1 %308  ;;  %2257 = vrcp.f32 %v1749_v59 }
 0x65c   :  { %314 = vst.msk [vmem:[#allocation4 + $0x58] sm:$0xff] %vm161_vm1, %v309_v40  ;;  %v1811_v40 = vld [vmem:[#allocation11 + $0x8] sm:$0xff] }
 0x65d   :  { %v1380_v16 = vpack.c.bf16 %v1379_v49, %v1378_v13  ;;  %v1810_v49 = vld [vmem:[#allocation11] sm:$0xff] }
 0x65e   :  { %v2248_v18 = vpop.eup %2247 }
 0x65f   :  { %2090 = vmatmul.mubr.msk.bf16.vlgmr.msra.gmra.mrb[36].mxu0 %vm365_vm3, %v1380_v16  ;;  %v2250_v43 = vpop.eup %2249  ;;  %v1505_v7 = vmul.f32 %v2248_v18, %v2810_v39  ;;  %v1816_v18 = vpack.c.bf16 %v1811_v40, %v1810_v49 }
 0x660   :  { %2100 = vmatpush3.bf16.msra.mxu0 %v1437_v11  ;;  %2101 = vmatprep.mubr.msk.bf16.mxu0 %vm2362_vm2, %v2361_v25  ;;  %v1506_v0 = vmul.f32 %v2250_v43, %v2772_v20 }
 0x661   :  { %2111 = vmatprep.subr.bf16.mxu0 %v2361_v25  ;;  %2129 = vmatprep.subr.bf16.mxu1 %v1816_v18 }
 0x662   :  { %v1507_v4 = vpack.c.bf16 %v1506_v0, %v1505_v7  ;;  %v2252_v10 = vpop.eup %2251  ;;  %2130 = vmatpush3.bf16.msra.mxu1 %v1816_v18  ;;  %v1812_v0 = vld [vmem:[#allocation11 + $0x10] sm:$0xff] }
 0x663   :  { %v2254_v24 = vpop.eup %2253  ;;  %v1628_v27 = vmul.f32 %v2252_v10, %v2814_v55  ;;  %v1687_v17 = vld [vmem:[#allocation4 + $0x58] sm:$0xff] }
 0x664   :  { %v1629_v39 = vmul.f32 %v2254_v24, %v2777_v28  ;;  %v2256_v20 = vpop.eup %2255  ;;  %v1814_v24 = vld [vmem:[#allocation11 + $0x20] sm:$0xff] }
 0x665   :  { %v2258_v15 = vpop.eup %2257  ;;  %v1756_v19 = vmul.f32 %v2256_v20, %v2787_v31 }
 0x666   :  { %v1630_v56 = vpack.c.bf16 %v1629_v39, %v1628_v27  ;;  %v1755_v14 = vmul.f32 %v2258_v15, %v2783_v48  ;;  %v1815_v27 = vld [vmem:[#allocation11 + $0x28] sm:$0xff] }
 0x667   :  { %2102 = vmatmul.mubr.msk.bf16.vlgmr.msra.gmra.mrb[40].mxu0 %vm365_vm3, %v1507_v4  ;;  %v1813_v4 = vld [vmem:[#allocation11 + $0x18] sm:$0xff] }
 0x668   :  { %2112 = vmatpush3.bf16.msra.mxu0 %v1560_v21  ;;  %2113 = vmatprep.mubr.msk.bf16.mxu0 %vm2362_vm2, %v2361_v25  ;;  %v1757_v33 = vpack.c.bf16 %v1756_v19, %v1755_v14  ;;  %v1817_v10 = vpack.c.bf16 %v1813_v4, %v1812_v0 }
 0x669   :  { %2123 = vmatprep.subr.bf16.mxu0 %v2361_v25 }
 0x66a   :  { %2131 = vmatprep.subr.bf16.mxu1 %v1817_v10 }
 0x66b   :  { %2132 = vmatpush3.bf16.msra.mxu1 %v1817_v10 }
 0x66f   :  { %2114 = vmatmul.mubr.msk.bf16.vlgmr.msra.gmra.mrb[44].mxu0 %vm365_vm3, %v1630_v56  ;;  %v1818_v56 = vpack.c.bf16 %v1815_v27, %v1814_v24 }
 0x670   :  { %2124 = vmatpush3.bf16.msra.mxu0 %v1687_v17  ;;  %2125 = vmatprep.mubr.msk.bf16.mxu0 %vm2362_vm2, %v2361_v25 }
 0x671   :  { %2133 = vmatprep.subr.bf16.mxu1 %v1818_v56 }
 0x672   :  { %2134 = vmatpush3.bf16.msra.mxu1 %v1818_v56 }
 0x677   :  { %2126 = vmatmul.mubr.msk.bf16.vlgmr.msra.gmra.mrb[48].mxu0 %vm365_vm3, %v1757_v33 }
 0x6a4   :  { %v548_v55 = vpop.f32.mrb[8].mxu0 }
 0x6a5   :  { %v2007_v34 = vpop.f32.mrb[9].mxu0 }
 0x6a6   :  { %v551_v28 = vpop.f32.mrb[10].mxu0 }
 0x6a7   :  { %v555_v36 = vpack.c.bf16 %v551_v28, %v548_v55  ;;  %v2008_v52 = vpop.f32.mrb[11].mxu0 }
 0x6a9   :  { %557 = vst.msk [vmem:[#allocation5 + $0x8] sm:$0xff] %vm161_vm1, %v555_v36 }
 0x6ac   :  { %v668_v37 = vpop.f32.mrb[12].mxu0 }
 0x6ad   :  { %v2019_v41 = vpop.f32.mrb[13].mxu0 }
 0x6ae   :  { %v671_v42 = vpop.f32.mrb[14].mxu0 }
 0x6af   :  { %v675_v44 = vpack.c.bf16 %v671_v42, %v668_v37  ;;  %v2020_v45 = vpop.f32.mrb[15].mxu0 }
 0x6b1   :  { %677 = vrot.lane.b32.xlu0 %v675_v44, %s2358_s17 }
 0x6b4   :  { %v795_v25 = vpop.f32.mrb[16].mxu0 }
 0x6b5   :  { %v2031_v31 = vpop.f32.mrb[17].mxu0 }
 0x6b6   :  { %v798_v48 = vpop.f32.mrb[18].mxu0 }
 0x6b7   :  { %v802_v23 = vpack.c.bf16 %v798_v48, %v795_v25  ;;  %v2032_v53 = vpop.f32.mrb[19].mxu0  ;;  %v1929_v48 = vld [vmem:[%s2925_s4] ss:$0 sm:$0xff]  ;;  %s2325_s4 = scalar_lea.vmem %s1891_s23, 512 }
 0x6b8   :  { %p2326_p10 = scmp.ne.s32.totalorder %s1891_s23, %s2325_s4  ;;  %p2331_p12 = scmp.lt.s32.totalorder %s2325_s4, %s2325_s4 }
 0x6b9   :  { %804 = vrot.lane.b32.xlu0 %v802_v23, %s2358_s17 }
 0x6ba   :  { %p2332_p13 = por %p2331_p12, %p2330_p11 }
 0x6bc   :  { %p2333_p0 = pnand %p2332_p13, %p2326_p10 }
 0x6e9   :  { %v918_v47 = vpop.f32.mrb[20].mxu0 }
 0x6ea   :  { %v2043_v46 = vpop.f32.mrb[21].mxu0 }
 0x6eb   :  { %v921_v62 = vpop.f32.mrb[22].mxu0 }
 0x6ec   :  { %v925_v2 = vpack.c.bf16 %v921_v62, %v918_v47  ;;  %v2044_v8 = vpop.f32.mrb[23].mxu0 }
 0x6ee   :  { %927 = vrot.lane.b32.xlu0 %v925_v2, %s2355_s29 }
 0x6f1   :  { %v1045_v50 = vpop.f32.mrb[24].mxu0 }
 0x6f2   :  { %v2055_v54 = vpop.f32.mrb[25].mxu0 }
 0x6f3   :  { %v1048_v38 = vpop.f32.mrb[26].mxu0 }
 0x6f4   :  { %v1052_v51 = vpack.c.bf16 %v1048_v38, %v1045_v50  ;;  %v2056_v30 = vpop.f32.mrb[27].mxu0 }
 0x6f6   :  { %1054 = vrot.lane.b32.xlu1 %v1052_v51, %s2355_s29 }
 0x6f9   :  { %v1168_v58 = vpop.f32.mrb[28].mxu0 }
 0x6fa   :  { %v2067_v59 = vpop.f32.mrb[29].mxu0 }
 0x6fb   :  { %v1171_v61 = vpop.f32.mrb[30].mxu0 }
 0x6fc   :  { %v1175_v63 = vpack.c.bf16 %v1171_v61, %v1168_v58  ;;  %v2068_v1 = vpop.f32.mrb[31].mxu0 }
 0x6fe   :  { %1177 = vrot.lane.b32.xlu0 %v1175_v63, %s2370_s14 }
 0x723   :  { %v678_v22 = vpop.permute.xlu0 %677 }
 0x724   :  { %681 = vst.msk [vmem:[#allocation5] sm:$0xff] %vm680_vm4, %v678_v22 }
 0x72a   :  { %v1295_v29 = vpop.f32.mrb[32].mxu0 }
 0x72b   :  { %v805_v32 = vpop.permute.xlu0 %804  ;;  %v2079_v3 = vpop.f32.mrb[33].mxu0 }
 0x72c   :  { %807 = vst.msk [vmem:[#allocation5 + $0x8] sm:$0xff] %vm680_vm4, %v805_v32  ;;  %v1298_v5 = vpop.f32.mrb[34].mxu0 }
 0x72d   :  { %v1302_v9 = vpack.c.bf16 %v1298_v5, %v1295_v29  ;;  %v2080_v6 = vpop.f32.mrb[35].mxu0 }
 0x72f   :  { %1304 = vrot.lane.b32.xlu1 %v1302_v9, %s2370_s14 }
 0x732   :  { %v1418_v35 = vpop.f32.mrb[36].mxu0 }
 0x733   :  { %v2091_v60 = vpop.f32.mrb[37].mxu0 }
 0x734   :  { %v1421_v12 = vpop.f32.mrb[38].mxu0 }
 0x735   :  { %v1425_v57 = vpack.c.bf16 %v1421_v12, %v1418_v35  ;;  %v2092_v26 = vpop.f32.mrb[39].mxu0 }
 0x737   :  { %1427 = vrot.lane.b32.xlu0 %v1425_v57, %s2364_s8 }
 0x73a   :  { %v1545_v13 = vpop.f32.mrb[40].mxu0 }
 0x73b   :  { %v2103_v16 = vpop.f32.mrb[41].mxu0 }
 0x73c   :  { %v1548_v11 = vpop.f32.mrb[42].mxu0 }
 0x73d   :  { %v1552_v43 = vpack.c.bf16 %v1548_v11, %v1545_v13  ;;  %v2104_v7 = vpop.f32.mrb[43].mxu0 }
 0x73f   :  { %1554 = vrot.lane.b32.xlu1 %v1552_v43, %s2364_s8 }
 0x742   :  { %v1668_v21 = vpop.f32.mrb[44].mxu0 }
 0x743   :  { %v2115_v39 = vpop.f32.mrb[45].mxu0 }
 0x744   :  { %v1671_v20 = vpop.f32.mrb[46].mxu0 }
 0x745   :  { %v1675_v17 = vpack.c.bf16 %v1671_v20, %v1668_v21  ;;  %v2116_v15 = vpop.f32.mrb[47].mxu0 }
 0x747   :  { %1677 = vrot.lane.b32.xlu0 %v1675_v17, %s2375_s20 }
 0x74a   :  { %v1795_v19 = vpop.f32.mrb[48].mxu0 }
 0x74b   :  { %v2127_v14 = vpop.f32.mrb[49].mxu0 }
 0x74c   :  { %v1798_v33 = vpop.f32.mrb[50].mxu0 }
 0x74d   :  { %v1802_v55 = vpack.c.bf16 %v1798_v33, %v1795_v19  ;;  %v2128_v34 = vpop.f32.mrb[51].mxu0 }
 0x74f   :  { %1804 = vrot.lane.b32.xlu1 %v1802_v55, %s2375_s20 }
 0x760   :  { %v928_v28 = vpop.permute.xlu0 %927 }
 0x761   :  { %931 = vst.msk [vmem:[#allocation5] sm:$0xff] %vm930_vm5, %v928_v28 }
 0x768   :  { %v1055_v36 = vpop.permute.xlu1 %1054 }
 0x769   :  { %1057 = vst.msk [vmem:[#allocation5 + $0x8] sm:$0xff] %vm930_vm5, %v1055_v36 }
 0x770   :  { %v1178_v52 = vpop.permute.xlu0 %1177 }
 0x771   :  { %1181 = vst.msk [vmem:[#allocation5] sm:$0xff] %vm1180_vm6, %v1178_v52 }
 0x7a1   :  { %v1305_v37 = vpop.permute.xlu1 %1304 }
 0x7a2   :  { %1307 = vst.msk [vmem:[#allocation5 + $0x8] sm:$0xff] %vm1180_vm6, %v1305_v37 }
 0x7a9   :  { %v1428_v41 = vpop.permute.xlu0 %1427 }
 0x7aa   :  { %1431 = vst.msk [vmem:[#allocation5] sm:$0xff] %vm1430_vm7, %v1428_v41 }
 0x7b1   :  { %v1555_v42 = vpop.permute.xlu1 %1554 }
 0x7b2   :  { %1557 = vst.msk [vmem:[#allocation5 + $0x8] sm:$0xff] %vm1430_vm7, %v1555_v42 }
 0x7b9   :  { %v1678_v44 = vpop.permute.xlu0 %1677 }
 0x7ba   :  { %1681 = vst.msk [vmem:[#allocation5] sm:$0xff] %vm1680_vm8, %v1678_v44 }
 0x7c1   :  { %v1805_v45 = vpop.permute.xlu1 %1804  ;;  %v1808_v25 = vld [vmem:[#allocation5] sm:$0xff] }
 0x7c2   :  { %1807 = vst.msk [vmem:[#allocation5 + $0x8] sm:$0xff] %vm1680_vm8, %v1805_v45  ;;  %2135 = vmatprep.mubr.msk.bf16.mxu1 %vm99_vm0, %v1808_v25 }
 0x7c9   :  { %v1809_v31 = vld [vmem:[#allocation5 + $0x8] sm:$0xff] }
 0x7ca   :  { %2136 = vmatmul.mubr.msk.bf16.vlgmr.msra.gmra.mrb[52].mxu1 %vm99_vm0, %v1809_v31 }
 0x89d   :  { %v2137_v23 = vpop.f32.mrb[52].mxu1 }
 0x89e   :  { %v1875_v53 = vadd.f32 %v2137_v23, %v1929_v48  ;;  %v1866_v47 = vpop.f32.mrb[53].mxu1 }
 0x89f   :  { %v1867_v46 = vadd.f32 %v1929_v48, %v1866_v47  ;;  %v2138_v62 = vpop.f32.mrb[54].mxu1 }
 0x8a0   :  { %1883 = vst.msk [vmem:[#allocation12 + $0x10] sm:$0xff] %vm99_vm0, %v1875_v53  ;;  %v1878_v2 = vadd.f32 %v2138_v62, %v1929_v48  ;;  %v1869_v8 = vpop.f32.mrb[55].mxu1 }
 0x8a1   :  { %1881 = vst.msk [vmem:[#allocation12] sm:$0xff] %vm99_vm0, %v1867_v46  ;;  %v1870_v50 = vadd.f32 %v1929_v48, %v1869_v8 }
 0x8a2   :  { %1884 = vst.msk [vmem:[#allocation12 + $0x18] sm:$0xff] %vm99_vm0, %v1878_v2 }
 0x8a3   :  { %1882 = vst.msk [vmem:[#allocation12 + $0x8] sm:$0xff] %vm99_vm0, %v1870_v50 }
 0x8a4   :  { %2336 = shalt.err (!%p2333_p0)
}
 0x8a5   :  { %s2337_s26 = scalar_lea.hbm %s2926_s5, 512 }
 0x8a6   :  { %p2338_p1 = scmp.ne.s32.totalorder %s2926_s5, %s2337_s26  ;;  %p2341_p2 = scmp.lt.u32.totalorder %s2337_s26, %s2926_s5 }
 0x8a8   :  { %p2343_p3 = pnand %p2341_p2, %p2338_p1 }
 0x8aa   :  { %2346 = shalt.err (!%p2343_p3)
}
 0x8ab   :  { %1896 = dma.vmem_to_hbm [thread:$0]  %s1891_s23, 512, %s2926_s5, [#allocation8], %s2357_s1, %s2357_s1, %s2358_s17  }
 0x8ac   :  { %2351 = dma.done.wait [#allocation8], 512  }
 0x8ad   :  { %2352 = vsyncadd [#allocation8], 4294966784 }
 0x8ae   :  { %1900 = vsyncpa [#allocation7], 1 }
 0x8af   :  { %1901 = vsyncpa [#allocation10], 1 }
 0x8b0   :  { %1902 = vsyncpa [#allocation8], 1 }

</bundles_post_ra>
